<compile_context>
chip_gen: v5e
topology: v5e:2x2
jax: 0.10.0
libtpu: 0.0.40
codegen_flags: <defaults>
</compile_context>

<pallas_src>
import math

import jax
import jax.numpy as jnp
from jax import lax
from jax.experimental import pallas as pl
from jax.experimental.pallas import tpu as pltpu


def _round_up(n, m):
    return ((n + m - 1) // m) * m


def _default_vmem_limit():
    """Generation-aware VMEM limit (v7x has 64 MiB/TC, v5e/v6e have 128 MiB)."""
    try:
        cap = pltpu.get_tpu_info().vmem_capacity_bytes
    except Exception:
        cap = 64 * 1024 * 1024
    return min((cap * 3) // 4, 96 * 1024 * 1024)


def _tile_vmem_bytes(th, w, cin, cmid, cout):
    """Rough per-step VMEM footprint for row tile `th` (counts blocks x2 buffers,
    weights x2, the f32 slab, both im2col LHS buffers and both activations)."""
    m1 = (th + 2) * w + 2
    m2 = th * w
    slab = ((th + 4) * w + 4) * cin * 4
    l1 = m1 * 9 * cin * 4
    mid = m1 * cmid * 4
    l2 = m2 * 9 * cmid * 4
    outv = m2 * cout * 4
    blocks = (2 * th * w * cin * 2 +      # main input block (bf16), double buffered
              2 * 4 * w * cin * 2 +       # halo block (bf16)
              2 * th * w * cout * 4)      # output block (f32)
    weights = 2 * (9 * cin * cmid + 9 * cmid * cout + cmid + cout) * 4
    return blocks + weights + slab + l1 + mid + l2 + outv


def _pick_row_tile(ho2, w, cin, cmid, cout, n_b, budget, target_m=1024):
    """Pick a multiple-of-4 row tile: big enough M per step, within VMEM budget."""
    cands = list(range(4, _round_up(max(ho2, 1), 4) + 1, 4))
    feas = [t for t in cands if _tile_vmem_bytes(t, w, cin, cmid, cout) <= budget]
    if not feas:
        feas = [4]
    th = feas[-1]
    for t in feas:
        if t * w >= target_m:
            th = t
            break
    if n_b == 1:
        # v7x megacore: with batch == 1 only the row axis can split across the
        # two TensorCores, so prefer an even number of row tiles.
        nr = -(-ho2 // th)
        if nr % 2 == 1:
            for t in reversed(feas):
                if t < th and (-(-ho2 // t)) % 2 == 0 and 2 * t >= th:
                    th = t
                    break
    return th


def _conv3x3_relu_stage(xflat, width, m, w_flat, bias):
    """One 3x3 VALID conv + bias + ReLU on a row-flattened slab (fold-taps matmul).

    xflat:  (>= m + 2*width + 2, c) -- image rows concatenated, channels minor.
    w_flat: (9*c, n) -- taps stacked along K in (dy, dx, c) order.
    bias:   (1, n) f32.
    Returns (m, n) f32.  Within each image row, columns j >= width-2 hold
    wrap-around garbage (3x3 kernel only) and must be discarded downstream.
    """
    m_cols = []
    for dy in range(3):
        for dx in range(3):
            off = dy * width + dx
            m_cols.append(xflat[off:off + m, :])
    lhs = jnp.concatenate(m_cols, axis=-1)                       # (m, 9*c)
    acc = jnp.dot(lhs, w_flat, preferred_element_type=jnp.float32)
    return jnp.maximum(acc + bias, 0.0)


def conv_block_forward(x_nchw, w1_hwio, b1, w2_hwio, b2, *, row_tile=None):
    """relu(conv2(relu(conv1(x)))), two 3x3 VALID convs; NCHW in / NCHW out."""
    n_b, c_in, h, w = x_nchw.shape
    c_mid = w1_hwio.shape[-1]
    c_out = w2_hwio.shape[-1]
    assert h >= 5 and w >= 5, "need >=5x5 spatial input for two VALID 3x3 convs"
    ho2, wo2 = h - 4, w - 4

    vmem_limit = _default_vmem_limit()
    if row_tile is None:
        th = _pick_row_tile(ho2, w, c_in, c_mid, c_out, n_b, vmem_limit // 2)
    else:
        th = max(4, _round_up(int(row_tile), 4))
    num_r = -(-ho2 // th)                    # cdiv: arbitrary H supported
    ho2_pad = num_r * th
    h_pad = ho2_pad + 4
    hq = th // 4                             # halo block stride (th % 4 == 0)

    # Wrapper-side layout glue (not the hot loop): NCHW -> NHWC bf16, zero-pad
    # rows so the row tiling divides evenly; padded output rows are discarded.
    x = jnp.transpose(x_nchw, (0, 2, 3, 1)).astype(jnp.bfloat16)
    if h_pad > h:
        x = jnp.pad(x, ((0, 0), (0, h_pad - h), (0, 0), (0, 0)))
    # Weights as K-stacked (9*c, n) matrices, tap order (dy, dx, c); f32 biases.
    w1f = w1_hwio.reshape(9 * c_in, c_mid).astype(jnp.float32)
    w2f = w2_hwio.reshape(9 * c_mid, c_out).astype(jnp.float32)
    b1f = b1.reshape(1, c_mid).astype(jnp.float32)
    b2f = b2.reshape(1, c_out).astype(jnp.float32)

    def kernel(xm_ref, xh_ref, w1_ref, b1_ref, w2_ref, b2_ref, o_ref):
        # th main rows + 4 halo rows -> flattened f32 slab with 4 spare rows.
        # The spare rows (and the zero/overlap halo content of padded images)
        # only ever feed discarded wrap-around columns.
        xm = xm_ref[0].astype(jnp.float32).reshape(th * w, c_in)
        xh = xh_ref[0].astype(jnp.float32).reshape(4 * w, c_in)
        slab = jnp.concatenate(
            [xm, xh, jnp.zeros((4, c_in), jnp.float32)], axis=0)
        # conv1 + ReLU: th+2 valid rows (+2 spare flat rows); stays in VMEM.
        m1 = (th + 2) * w + 2
        mid = _conv3x3_relu_stage(slab, w, m1, w1_ref[...], b1_ref[...])
        # conv2 + ReLU: th rows; wrap-around columns j >= w-4 are garbage and
        # are sliced off by the wrapper (full-w store keeps the write aligned).
        m2 = th * w
        out = _conv3x3_relu_stage(mid, w, m2, w2_ref[...], b2_ref[...])
        o_ref[...] = out.reshape(1, th, w, c_out).astype(o_ref.dtype)

    grid = (n_b, num_r)
    out_full = pl.pallas_call(
        kernel,
        out_shape=jax.ShapeDtypeStruct((n_b, ho2_pad, w, c_out), jnp.float32),
        grid_spec=pltpu.PrefetchScalarGridSpec(
            num_scalar_prefetch=0,
            grid=grid,
            in_specs=[
                # Main rows and 4-row halo of the SAME HBM array; both streams
                # are auto-pipelined (double-buffered) by BlockSpec so the
                # input DMA overlaps compute of the previous tile.
                pl.BlockSpec((1, th, w, c_in), lambda b, r: (b, r, 0, 0)),
                pl.BlockSpec((1, 4, w, c_in), lambda b, r: (b, (r + 1) * hq, 0, 0)),
                pl.BlockSpec((9 * c_in, c_mid), lambda b, r: (0, 0)),
                pl.BlockSpec((1, c_mid), lambda b, r: (0, 0)),
                pl.BlockSpec((9 * c_mid, c_out), lambda b, r: (0, 0)),
                pl.BlockSpec((1, c_out), lambda b, r: (0, 0)),
            ],
            out_specs=pl.BlockSpec((1, th, w, c_out), lambda b, r: (b, r, 0, 0)),
        ),
        compiler_params=pltpu.CompilerParams(
            dimension_semantics=("parallel", "parallel"),
            vmem_limit_bytes=vmem_limit,
        ),
    )(x, x, w1f, b1f, w2f, b2f)

    # Drop padded rows + wrap-around columns; NHWC -> NCHW (PyTorch layout).
    out = out_full[:, :ho2, :wo2, :]
    return jnp.transpose(out, (0, 3, 1, 2))


class ConvBlockPallas:
    """Pallas equivalent of the PyTorch ConvBlock: relu(conv2(relu(conv1(x))))."""

    def __init__(self, in_channels, out_channels, key):
        k1, k2, k3, k4 = jax.random.split(key, 4)
        lim1 = 1.0 / math.sqrt(in_channels * 9)
        self.w1 = jax.random.uniform(k1, (3, 3, in_channels, out_channels),
                                     jnp.float32, -lim1, lim1)
        self.b1 = jax.random.uniform(k2, (out_channels,), jnp.float32, -lim1, lim1)
        lim2 = 1.0 / math.sqrt(out_channels * 9)
        self.w2 = jax.random.uniform(k3, (3, 3, out_channels, out_channels),
                                     jnp.float32, -lim2, lim2)
        self.b2 = jax.random.uniform(k4, (out_channels,), jnp.float32, -lim2, lim2)

    def __call__(self, x_nchw, *, row_tile=None):
        return conv_block_forward(x_nchw, self.w1, self.b1, self.w2, self.b2,
                                  row_tile=row_tile)


def _reference_forward(x_nchw, blk):
    """Pure-JAX reference (lax conv, HIGHEST precision).  The kernel stages its
    activations through bf16 HBM blocks, so the reference does the same cast;
    the matmul itself then differs only by default-vs-HIGHEST MXU precision."""
    x = jnp.transpose(x_nchw, (0, 2, 3, 1))
    x = x.astype(jnp.bfloat16).astype(jnp.float32)

    def conv(x, w, b):
        dn = lax.conv_dimension_numbers(x.shape, w.shape, ("NHWC", "HWIO", "NHWC"))
        y = lax.conv_general_dilated(x, w, (1, 1), "VALID", dimension_numbers=dn,
                                     precision=lax.Precision.HIGHEST)
        return jnp.maximum(y + b, 0.0)

    y = conv(x, blk.w1, blk.b1)
    y = conv(y, blk.w2, blk.b2)
    return jnp.transpose(y, (0, 3, 1, 2))


if __name__ == "__main__":
    key = jax.random.PRNGKey(0)
    k_param, k_x, k_x2 = jax.random.split(key, 3)

    in_channels, out_channels = 4, 8
    block = ConvBlockPallas(in_channels, out_channels, k_param)

    # PyTorch NCHW convention: (batch=2, C=4, H=16, W=16)
    x = jax.random.normal(k_x, (2, in_channels, 16, 16), dtype=jnp.float32)

    out = jax.block_until_ready(block(x))                 # auto row tiling
    assert out.shape == (2, out_channels, 12, 12), out.shape
    ref = jax.block_until_ready(_reference_forward(x, block))
    assert jnp.allclose(out, ref, atol=2e-2, rtol=2e-2), (
        float(jnp.max(jnp.abs(out - ref))))

    # Multi-row-tile path (halo blocks with r > 0).
    out_tiled = jax.block_until_ready(block(x, row_tile=4))
    assert jnp.allclose(out_tiled, ref, atol=2e-2, rtol=2e-2), (
        float(jnp.max(jnp.abs(out_tiled - ref))))

    # Awkward shape: batch=1, H=15, W=13 -> exercises row padding (cdiv tiling)
    # and the even-tile-count preference for single-batch inputs.
    x2 = jax.random.normal(k_x2, (1, in_channels, 15, 13), dtype=jnp.float32)
    out2 = jax.block_until_ready(block(x2))
    assert out2.shape == (1, out_channels, 11, 9), out2.shape
    ref2 = jax.block_until_ready(_reference_forward(x2, block))
    assert jnp.allclose(out2, ref2, atol=2e-2, rtol=2e-2), (
        float(jnp.max(jnp.abs(out2 - ref2))))

    print("KERNEL_OK")
</pallas_src>

<mosaic_0001>
module attributes {stable_mosaic.version = 11 : i64} {
  func.func @kernel(%arg0: i32, %arg1: i32, %arg2: memref<1x12x16x4xbf16, #tpu.memory_space<vmem>>, %arg3: memref<1x4x16x4xbf16, #tpu.memory_space<vmem>>, %arg4: memref<36x8xf32, #tpu.memory_space<vmem>>, %arg5: memref<1x8xf32, #tpu.memory_space<vmem>>, %arg6: memref<72x8xf32, #tpu.memory_space<vmem>>, %arg7: memref<1x8xf32, #tpu.memory_space<vmem>>, %arg8: memref<1x12x16x8xf32, #tpu.memory_space<vmem>>) attributes {dimension_semantics = [#tpu.dimension_semantics<parallel>, #tpu.dimension_semantics<parallel>], iteration_bounds = array<i64: 2, 1>, scalar_prefetch = 0 : i64, scratch_operands = 0 : i64, tpu.core_type = #tpu.core_type<tc>, window_params = [{transform_indices = @transform_0, window_bounds = array<i64: 1, 12, 16, 4>}, {transform_indices = @transform_1, window_bounds = array<i64: 1, 4, 16, 4>}, {pipeline_mode = #tpu.pipeline_mode<synchronous>, transform_indices = @transform_2, window_bounds = array<i64: 36, 8>}, {pipeline_mode = #tpu.pipeline_mode<synchronous>, transform_indices = @transform_3, window_bounds = array<i64: 1, 8>}, {pipeline_mode = #tpu.pipeline_mode<synchronous>, transform_indices = @transform_4, window_bounds = array<i64: 72, 8>}, {pipeline_mode = #tpu.pipeline_mode<synchronous>, transform_indices = @transform_5, window_bounds = array<i64: 1, 8>}, {transform_indices = @transform_6, window_bounds = array<i64: 1, 12, 16, 8>}]} {
    %c0 = arith.constant 0 : index
    %c0_0 = arith.constant 0 : index
    %c0_1 = arith.constant 0 : index
    %c0_2 = arith.constant 0 : index
    %0 = vector.load %arg2[%c0, %c0_0, %c0_1, %c0_2] : memref<1x12x16x4xbf16, #tpu.memory_space<vmem>>, vector<1x12x16x4xbf16>
    %1 = vector.shape_cast %0 : vector<1x12x16x4xbf16> to vector<12x16x4xbf16>
    %2 = arith.extf %1 : vector<12x16x4xbf16> to vector<12x16x4xf32>
    %3 = vector.shape_cast %2 : vector<12x16x4xf32> to vector<192x4xf32>
    %c0_3 = arith.constant 0 : index
    %c0_4 = arith.constant 0 : index
    %c0_5 = arith.constant 0 : index
    %c0_6 = arith.constant 0 : index
    %4 = vector.load %arg3[%c0_3, %c0_4, %c0_5, %c0_6] : memref<1x4x16x4xbf16, #tpu.memory_space<vmem>>, vector<1x4x16x4xbf16>
    %5 = vector.shape_cast %4 : vector<1x4x16x4xbf16> to vector<4x16x4xbf16>
    %6 = arith.extf %5 : vector<4x16x4xbf16> to vector<4x16x4xf32>
    %7 = vector.shape_cast %6 : vector<4x16x4xf32> to vector<64x4xf32>
    %cst = arith.constant 0.000000e+00 : f32
    %8 = vector.broadcast %cst : f32 to vector<4x4xf32>
    %9 = tpu.concatenate %3, %7, %8 in 0 : vector<192x4xf32>, vector<64x4xf32>, vector<4x4xf32> -> vector<260x4xf32>
    %c0_7 = arith.constant 0 : index
    %c0_8 = arith.constant 0 : index
    %10 = vector.load %arg4[%c0_7, %c0_8] : memref<36x8xf32, #tpu.memory_space<vmem>>, vector<36x8xf32>
    %c0_9 = arith.constant 0 : index
    %c0_10 = arith.constant 0 : index
    %11 = vector.load %arg5[%c0_9, %c0_10] : memref<1x8xf32, #tpu.memory_space<vmem>>, vector<1x8xf32>
    %12 = vector.extract_strided_slice %9 {offsets = [0, 0], sizes = [226, 4], strides = [1, 1]} : vector<260x4xf32> to vector<226x4xf32>
    %13 = vector.extract_strided_slice %9 {offsets = [1, 0], sizes = [226, 4], strides = [1, 1]} : vector<260x4xf32> to vector<226x4xf32>
    %14 = vector.extract_strided_slice %9 {offsets = [2, 0], sizes = [226, 4], strides = [1, 1]} : vector<260x4xf32> to vector<226x4xf32>
    %15 = vector.extract_strided_slice %9 {offsets = [16, 0], sizes = [226, 4], strides = [1, 1]} : vector<260x4xf32> to vector<226x4xf32>
    %16 = vector.extract_strided_slice %9 {offsets = [17, 0], sizes = [226, 4], strides = [1, 1]} : vector<260x4xf32> to vector<226x4xf32>
    %17 = vector.extract_strided_slice %9 {offsets = [18, 0], sizes = [226, 4], strides = [1, 1]} : vector<260x4xf32> to vector<226x4xf32>
    %18 = vector.extract_strided_slice %9 {offsets = [32, 0], sizes = [226, 4], strides = [1, 1]} : vector<260x4xf32> to vector<226x4xf32>
    %19 = vector.extract_strided_slice %9 {offsets = [33, 0], sizes = [226, 4], strides = [1, 1]} : vector<260x4xf32> to vector<226x4xf32>
    %20 = vector.extract_strided_slice %9 {offsets = [34, 0], sizes = [226, 4], strides = [1, 1]} : vector<260x4xf32> to vector<226x4xf32>
    %21 = tpu.concatenate %12, %13, %14, %15, %16, %17, %18, %19, %20 in 1 : vector<226x4xf32>, vector<226x4xf32>, vector<226x4xf32>, vector<226x4xf32>, vector<226x4xf32>, vector<226x4xf32>, vector<226x4xf32>, vector<226x4xf32>, vector<226x4xf32> -> vector<226x36xf32>
    %cst_11 = arith.constant dense<0.000000e+00> : vector<226x8xf32>
    %22 = tpu.matmul %21, %10, %cst_11 {dimension_numbers = #tpu.dot_dimension_numbers<[1], [0], [0], [1], [0, 0, 1, 1], [], []>} : vector<226x36xf32>, vector<36x8xf32>, vector<226x8xf32> -> vector<226x8xf32>
    %23 = vector.broadcast %11 : vector<1x8xf32> to vector<226x8xf32>
    %24 = arith.addf %22, %23 : vector<226x8xf32>
    %cst_12 = arith.constant 0.000000e+00 : f32
    %25 = vector.broadcast %cst_12 : f32 to vector<226x8xf32>
    %26 = arith.maximumf %24, %25 : vector<226x8xf32>
    %c0_13 = arith.constant 0 : index
    %c0_14 = arith.constant 0 : index
    %27 = vector.load %arg6[%c0_13, %c0_14] : memref<72x8xf32, #tpu.memory_space<vmem>>, vector<72x8xf32>
    %c0_15 = arith.constant 0 : index
    %c0_16 = arith.constant 0 : index
    %28 = vector.load %arg7[%c0_15, %c0_16] : memref<1x8xf32, #tpu.memory_space<vmem>>, vector<1x8xf32>
    %29 = vector.extract_strided_slice %26 {offsets = [0, 0], sizes = [192, 8], strides = [1, 1]} : vector<226x8xf32> to vector<192x8xf32>
    %30 = vector.extract_strided_slice %26 {offsets = [1, 0], sizes = [192, 8], strides = [1, 1]} : vector<226x8xf32> to vector<192x8xf32>
    %31 = vector.extract_strided_slice %26 {offsets = [2, 0], sizes = [192, 8], strides = [1, 1]} : vector<226x8xf32> to vector<192x8xf32>
    %32 = vector.extract_strided_slice %26 {offsets = [16, 0], sizes = [192, 8], strides = [1, 1]} : vector<226x8xf32> to vector<192x8xf32>
    %33 = vector.extract_strided_slice %26 {offsets = [17, 0], sizes = [192, 8], strides = [1, 1]} : vector<226x8xf32> to vector<192x8xf32>
    %34 = vector.extract_strided_slice %26 {offsets = [18, 0], sizes = [192, 8], strides = [1, 1]} : vector<226x8xf32> to vector<192x8xf32>
    %35 = vector.extract_strided_slice %26 {offsets = [32, 0], sizes = [192, 8], strides = [1, 1]} : vector<226x8xf32> to vector<192x8xf32>
    %36 = vector.extract_strided_slice %26 {offsets = [33, 0], sizes = [192, 8], strides = [1, 1]} : vector<226x8xf32> to vector<192x8xf32>
    %37 = vector.extract_strided_slice %26 {offsets = [34, 0], sizes = [192, 8], strides = [1, 1]} : vector<226x8xf32> to vector<192x8xf32>
    %38 = tpu.concatenate %29, %30, %31, %32, %33, %34, %35, %36, %37 in 1 : vector<192x8xf32>, vector<192x8xf32>, vector<192x8xf32>, vector<192x8xf32>, vector<192x8xf32>, vector<192x8xf32>, vector<192x8xf32>, vector<192x8xf32>, vector<192x8xf32> -> vector<192x72xf32>
    %cst_17 = arith.constant dense<0.000000e+00> : vector<192x8xf32>
    %39 = tpu.matmul %38, %27, %cst_17 {dimension_numbers = #tpu.dot_dimension_numbers<[1], [0], [0], [1], [0, 0, 1, 1], [], []>} : vector<192x72xf32>, vector<72x8xf32>, vector<192x8xf32> -> vector<192x8xf32>
    %40 = vector.broadcast %28 : vector<1x8xf32> to vector<192x8xf32>
    %41 = arith.addf %39, %40 : vector<192x8xf32>
    %cst_18 = arith.constant 0.000000e+00 : f32
    %42 = vector.broadcast %cst_18 : f32 to vector<192x8xf32>
    %43 = arith.maximumf %41, %42 : vector<192x8xf32>
    %44 = vector.shape_cast %43 : vector<192x8xf32> to vector<1x12x16x8xf32>
    %c0_19 = arith.constant 0 : index
    %c0_20 = arith.constant 0 : index
    %c0_21 = arith.constant 0 : index
    %c0_22 = arith.constant 0 : index
    %45 = vector.load %arg8[%c0_19, %c0_20, %c0_21, %c0_22] : memref<1x12x16x8xf32, #tpu.memory_space<vmem>>, vector<1x12x16x8xf32>
    tpu.vector_store %arg8[%c0_19, %c0_20, %c0_21, %c0_22], %44 {strides = array<i32>} : memref<1x12x16x8xf32, #tpu.memory_space<vmem>>, vector<1x12x16x8xf32>,
    return
  }
  func.func @transform_0(%arg0: i32, %arg1: i32) -> (i32, i32, i32, i32) {
    %c0_i32 = arith.constant 0 : i32
    %c0_i32_0 = arith.constant 0 : i32
    %c0_i32_1 = arith.constant 0 : i32
    return %arg0, %arg1, %c0_i32, %c0_i32_0 : i32, i32, i32, i32
  }
  func.func @transform_1(%arg0: i32, %arg1: i32) -> (i32, i32, i32, i32) {
    %c1_i32 = arith.constant 1 : i32
    %0 = arith.addi %arg1, %c1_i32 : i32
    %c3_i32 = arith.constant 3 : i32
    %1 = arith.muli %0, %c3_i32 : i32
    %c0_i32 = arith.constant 0 : i32
    %c0_i32_0 = arith.constant 0 : i32
    %c0_i32_1 = arith.constant 0 : i32
    return %arg0, %1, %c0_i32, %c0_i32_0 : i32, i32, i32, i32
  }
  func.func @transform_2(%arg0: i32, %arg1: i32) -> (i32, i32) {
    %c0_i32 = arith.constant 0 : i32
    %c0_i32_0 = arith.constant 0 : i32
    %c0_i32_1 = arith.constant 0 : i32
    return %c0_i32, %c0_i32_0 : i32, i32
  }
  func.func @transform_3(%arg0: i32, %arg1: i32) -> (i32, i32) {
    %c0_i32 = arith.constant 0 : i32
    %c0_i32_0 = arith.constant 0 : i32
    %c0_i32_1 = arith.constant 0 : i32
    return %c0_i32, %c0_i32_0 : i32, i32
  }
  func.func @transform_4(%arg0: i32, %arg1: i32) -> (i32, i32) {
    %c0_i32 = arith.constant 0 : i32
    %c0_i32_0 = arith.constant 0 : i32
    %c0_i32_1 = arith.constant 0 : i32
    return %c0_i32, %c0_i32_0 : i32, i32
  }
  func.func @transform_5(%arg0: i32, %arg1: i32) -> (i32, i32) {
    %c0_i32 = arith.constant 0 : i32
    %c0_i32_0 = arith.constant 0 : i32
    %c0_i32_1 = arith.constant 0 : i32
    return %c0_i32, %c0_i32_0 : i32, i32
  }
  func.func @transform_6(%arg0: i32, %arg1: i32) -> (i32, i32, i32, i32) {
    %c0_i32 = arith.constant 0 : i32
    %c0_i32_0 = arith.constant 0 : i32
    %c0_i32_1 = arith.constant 0 : i32
    return %arg0, %arg1, %c0_i32, %c0_i32_0 : i32, i32, i32, i32
  }
}

</mosaic_0001>

<bundles_post_ra>
// kernel: tpu_custom_call.1
= control target key start
LH: loop header
LB: loop body
LE: loop exit
PB: predicated region body
PF: predicated region fallthrough
CT: control target
= control target key end

     0   :  { %s3863_s21 = smov 0   ;;  %s3865_s22 = smov 0   ;;  %s6581_s0 = inlined_call_operand.vmem [shape: bf16[2,16,16,4], index: 0, kind: input, shape index: {}]   ;;  %s6582_s1 = inlined_call_operand.vmem [shape: bf16[2,16,16,4], index: 1, kind: input, shape index: {}]   ;;  %s6583_s2 = inlined_call_operand.vmem [shape: f32[36,8], index: 2, kind: input, shape index: {}]   ;;  %s6584_s3 = inlined_call_operand.vmem [shape: f32[1,8], index: 3, kind: input, shape index: {}]   ;;  %s6585_s4 = inlined_call_operand.vmem [shape: f32[72,8], index: 4, kind: input, shape index: {}]   ;;  %s6586_s5 = inlined_call_operand.vmem [shape: f32[1,8], index: 5, kind: input, shape index: {}]   ;;  %s6587_s6 = inlined_call_operand.vmem [shape: f32[2,12,16,8], index: 6, kind: output, shape index: {}]  }
   0x1   :  { %s3867_s23 = smov 0  }
   0x2 LB: > { %s28_s24 = sadd.s32 1, %s3809_s22  ;;  %p3032_p0 = scmp.ge.s32.totalorder %s3813_s23, 1  ;;  %s3813_s23 = sphi %s3867_s23, %s16_s23   ;;  %s3809_s22 = sphi %s3865_s22, %s7007_s22   ;;  %s3805_s21 = sphi %s3863_s21, %s7006_s21  }
   0x3   : > { %p30_p1 = scmp.ge.s32.totalorder %s28_s24, 2  ;;  %p270_p2 = scmp.lt.s32.totalorder %s3813_s23, 3 }
   0x5   : > { %s7009_s24 = smov (%p30_p1, %s28_s24), 0  ;;  %p271_p3 = pnand %p3032_p0, %p270_p2 }
   0x7   : > { %274 = sbr.rel (%p271_p3) target bundleno = 1370 (0x55a), region = 44 }
   0xc   : > { %p333_p4 = scmp.lt.s32.totalorder %s3805_s21, 1  ;;  %vm473_vm0 = vcmask 1046528   ;;  %s3815_s30 = smov 4   ;;  %vm618_vm1 = vcmask 1045504   ;;  %vm1305_vm2 = vcmask 31744   ;;  %vm1335_vm3 = vcmask 64512  }
   0xd   : > { %s3816_s10 = smov 8   ;;  %s3817_s11 = smov 12   ;;  %vm1365_vm4 = vcmask 97280   ;;  %vm1395_vm5 = vcmask 130048   ;;  %vm1425_vm6 = vcmask 162816   ;;  %vm1455_vm7 = vcmask 195584  }
   0xe   : > { %s7011_s21 = smov (!%p333_p4, %s3805_s21), 1  ;;  %s3818_s12 = smov 16   ;;  %vm1485_vm8 = vcmask 228352   ;;  %vm1636_vm9 = vcmask 1043456   ;;  %vm1548_vm10 = vcmask 293888   ;;  %vm1515_vm11 = vcmask 261120  }
   0xf   : > { %s3094_s25 = sshll.u32 %s7011_s21, 7  ;;  %s3819_s13 = smov 20   ;;  %vm2598_vm12 = vcmask 326656   ;;  %vm2623_vm13 = vcmask 392192   ;;  %vm2648_vm14 = vcmask 457728   ;;  %vm2673_vm15 = vcmask 523264  }
  0x10   : > { %s3889_s28 = scalar_lea.vmem %s6581_s0, %s3094_s25  ;;  %s3096_s29 = sadd.s32 96, %s3094_s25 }
  0x11   : > { %v3165_v0 = vld [vmem:[%s3889_s28 + $0x20] sm:$0xff]   ;;  %v3166_v1 = vld [vmem:[%s3889_s28 + $0x28] sm:$0xff]   ;;  %v3163_v2 = vld [vmem:[%s3889_s28 + $0x10] sm:$0xff]   ;;  %s3966_s9 = scalar_lea.vmem %s6582_s1, %s3096_s29  ;;  %s3820_s14 = smov 24  }
  0x12   : > { %v3894_v3 = vunpack.c.l.bf16 %v3165_v0  ;;  %v3896_v4 = vunpack.c.h.bf16 %v3165_v0  ;;  %v3898_v5 = vunpack.c.l.bf16 %v3166_v1  ;;  %v3900_v6 = vunpack.c.h.bf16 %v3166_v1  ;;  %v3164_v7 = vld [vmem:[%s3889_s28 + $0x18] sm:$0xff]   ;;  %v3098_v8 = vld [vmem:[%s3889_s28] sm:$0xff]   ;;  %v3162_v13 = vld [vmem:[%s3889_s28 + $0x8] sm:$0xff]   ;;  %s3822_s15 = smov 28   ;;  %s3823_s16 = smov 32  }
  0x13   : > { %v3904_v9 = vunpack.c.l.bf16 %v3163_v2  ;;  %v3906_v10 = vunpack.c.h.bf16 %v3163_v2  ;;  %v3908_v11 = vunpack.c.l.bf16 %v3164_v7  ;;  %v3910_v12 = vunpack.c.h.bf16 %v3164_v7  ;;  %v3167_v22 = vld [vmem:[%s3889_s28 + $0x30] sm:$0xff]   ;;  %v3169_v27 = vld [vmem:[%s3889_s28 + $0x40] sm:$0xff]   ;;  %v3170_v44 = vld [vmem:[%s3889_s28 + $0x48] sm:$0xff]  }
  0x14   : > { %v489_v14 = vrot.slane %v3894_v3, 1  ;;  %v491_v15 = vrot.slane %v3896_v4, 1  ;;  %v493_v16 = vrot.slane %v3898_v5, 1  ;;  %v3916_v17 = vunpack.c.l.bf16 %v3098_v8  ;;  %v3168_v49 = vld [vmem:[%s3889_s28 + $0x38] sm:$0xff]   ;;  %v3146_v62 = vld [vmem:[%s3966_s9] sm:$0xff]  }
  0x15   : > { %6717 = vst [vmem:[#allocation2_spill] sm:$0xff] %v3904_v9  ;;  %v481_v18 = vrot.slane %v3904_v9, 1  ;;  %v483_v19 = vrot.slane %v3906_v10, 1  ;;  %v485_v20 = vrot.slane %v3908_v11, 1  ;;  %v3921_v21 = vunpack.c.h.bf16 %v3098_v8  ;;  %v3172_v61 = vld [vmem:[%s3889_s28 + $0x58] sm:$0xff]  }
  0x16   : > { %6718 = vst [vmem:[#allocation3_spill] sm:$0xff] %v3906_v10  ;;  %v492_v23 = vsel %vm473_vm0, %v489_v14, %v491_v15  ;;  %v494_v24 = vsel %vm473_vm0, %v491_v15, %v493_v16  ;;  %v3926_v25 = vunpack.c.l.bf16 %v3162_v13  ;;  %v3928_v26 = vunpack.c.h.bf16 %v3162_v13 }
  0x17   : > { %6719 = vst [vmem:[#allocation4_spill] sm:$0xff] %v3908_v11  ;;  %v3931_v28 = vpack.i.bf16 %v494_v24, %v492_v23  ;;  %v484_v29 = vsel %vm473_vm0, %v481_v18, %v483_v19  ;;  %v486_v30 = vsel %vm473_vm0, %v483_v19, %v485_v20  ;;  %v474_v31 = vrot.slane %v3916_v17, 1 }
  0x18   : > { %6720 = vst [vmem:[#allocation5_spill] sm:$0xff] %v3910_v12  ;;  %v3936_v32 = vpack.i.bf16 %v486_v30, %v484_v29  ;;  %v475_v33 = vrot.slane %v3921_v21, 1  ;;  %v477_v34 = vrot.slane %v3926_v25, 1  ;;  %v3940_v35 = vunpack.c.l.bf16 %v3167_v22 }
  0x19   : > { %6721 = vst [vmem:[#allocation6_spill] sm:$0xff] %v3916_v17  ;;  %3249 = vrot.lane.b32.xlu2 %v3931_v28, %s3815_s30  ;;  %v495_v36 = vrot.slane %v3900_v6, 1  ;;  %v487_v37 = vrot.slane %v3910_v12, 1  ;;  %v479_v38 = vrot.slane %v3928_v26, 1  ;;  %v3949_v39 = vunpack.c.l.bf16 %v3169_v27 }
  0x1a   : > { %6722 = vst [vmem:[#allocation7_spill] sm:$0xff] %v3921_v21  ;;  %3239 = vrot.lane.b32.xlu1 %v3936_v32, %s3815_s30  ;;  %v476_v40 = vsel %vm473_vm0, %v474_v31, %v475_v33  ;;  %v478_v41 = vsel %vm473_vm0, %v475_v33, %v477_v34  ;;  %v497_v42 = vrot.slane %v3940_v35, 1  ;;  %v3956_v43 = vunpack.c.h.bf16 %v3169_v27 }
  0x1b   : > { %6723 = vst [vmem:[#allocation8_spill] sm:$0xff] %v3926_v25  ;;  %v3228_v45 = vpack.i.bf16 %v478_v41, %v476_v40  ;;  %v496_v46 = vsel %vm473_vm0, %v493_v16, %v495_v36  ;;  %v488_v47 = vsel %vm473_vm0, %v485_v20, %v487_v37  ;;  %v490_v48 = vsel %vm473_vm0, %v487_v37, %v489_v14  ;;  %v3171_v14 = vld [vmem:[%s3889_s28 + $0x50] sm:$0xff]   ;;  %v3173_v41 = vld [vmem:[%s3966_s9 + $0x8] sm:$0xff]  }
  0x1c   : > { %6724 = vst [vmem:[#allocation9_spill] sm:$0xff] %v3928_v26  ;;  %v498_v50 = vsel %vm473_vm0, %v495_v36, %v497_v42  ;;  %v3969_v51 = vpack.i.bf16 %v490_v48, %v488_v47  ;;  %v480_v52 = vsel %vm473_vm0, %v477_v34, %v479_v38  ;;  %v482_v54 = vsel %vm473_vm0, %v479_v38, %v481_v18  ;;  %v4029_v40 = vld [vmem:[%s3966_s9 + $0x10] sm:$0xff]  }
  0x1d   : > { %6725 = vst [vmem:[#allocation10_spill] sm:$0xff] %v3949_v39  ;;  %3229 = vrot.lane.b32.xlu0 %v3228_v45, %s3815_s30  ;;  %v3973_v53 = vpack.i.bf16 %v498_v50, %v496_v46  ;;  %v3976_v55 = vunpack.c.l.bf16 %v3170_v44  ;;  %v505_v56 = vrot.slane %v3949_v39, 1  ;;  %v507_v57 = vrot.slane %v3956_v43, 1 }
  0x1e   : > { %6726 = vst [vmem:[#allocation11_spill] sm:$0xff] %v3956_v43  ;;  %v3980_v58 = vunpack.c.l.bf16 %v3168_v49  ;;  %v3982_v59 = vunpack.c.h.bf16 %v3168_v49  ;;  %v3984_v60 = vunpack.c.h.bf16 %v3167_v22  ;;  %v3993_v2 = vpack.i.bf16 %v482_v54, %v480_v52 }
  0x1f   : > { %6727 = vst [vmem:[#allocation12_spill] sm:$0xff] %v3973_v53  ;;  %v509_v63 = vrot.slane %v3976_v55, 1  ;;  %v3995_v7 = vunpack.c.l.bf16 %v3172_v61  ;;  %v3997_v8 = vunpack.c.h.bf16 %v3172_v61  ;;  %v3999_v13 = vunpack.c.l.bf16 %v3146_v62 }
  0x20   : > { %6728 = vst [vmem:[#allocation13_spill] sm:$0xff] %v3976_v55  ;;  %v501_v0 = vrot.slane %v3980_v58, 1  ;;  %v503_v1 = vrot.slane %v3982_v59, 1  ;;  %v508_v15 = vsel %vm473_vm0, %v505_v56, %v507_v57  ;;  %v499_v18 = vrot.slane %v3984_v60, 1 }
  0x21   : > { %6729 = vst [vmem:[#allocation14_spill] sm:$0xff] %v3980_v58  ;;  %3254 = vrot.lane.b32.xlu2 %v3973_v53, %s3815_s30  ;;  %v510_v16 = vsel %vm473_vm0, %v507_v57, %v509_v63  ;;  %v4009_v22 = vunpack.c.l.bf16 %v3171_v14  ;;  %v4011_v23 = vunpack.c.h.bf16 %v3171_v14  ;;  %v517_v27 = vrot.slane %v3995_v7, 1 }
  0x22   : > { %6730 = vst [vmem:[#allocation15_spill] sm:$0xff] %v3982_v59  ;;  %3244 = vrot.lane.b32.xlu1 %v3969_v51, %s3815_s30  ;;  %v504_v19 = vsel %vm473_vm0, %v501_v0, %v503_v1  ;;  %v506_v20 = vsel %vm473_vm0, %v503_v1, %v505_v56  ;;  %v4015_v24 = vpack.i.bf16 %v510_v16, %v508_v15  ;;  %v519_v29 = vrot.slane %v3997_v8, 1 }
  0x23   : > { %6731 = vst [vmem:[#allocation16_spill] sm:$0xff] %v4009_v22  ;;  %v521_v30 = vrot.slane %v3999_v13, 1  ;;  %v4020_v31 = vpack.i.bf16 %v506_v20, %v504_v19  ;;  %v500_v33 = vsel %vm473_vm0, %v497_v42, %v499_v18  ;;  %v502_v34 = vsel %vm473_vm0, %v499_v18, %v501_v0 }
  0x24   : > { %6732 = vst [vmem:[#allocation17_spill] sm:$0xff] %v4015_v24  ;;  %v4024_v36 = vunpack.c.h.bf16 %v3170_v44  ;;  %v513_v37 = vrot.slane %v4009_v22, 1  ;;  %v515_v38 = vrot.slane %v4011_v23, 1  ;;  %v4034_v45 = vpack.i.bf16 %v502_v34, %v500_v33 }
  0x25   : > { %3234 = vrot.lane.b32.xlu0 %v3993_v2, %s3815_s30  ;;  %6733 = vst [vmem:[#allocation18_spill] sm:$0xff] %v4020_v31  ;;  %v520_v42 = vsel %vm473_vm0, %v517_v27, %v519_v29  ;;  %v522_v44 = vsel %vm473_vm0, %v519_v29, %v521_v30  ;;  %v4042_v47 = vunpack.c.l.bf16 %v4029_v40  ;;  %v4046_v50 = vunpack.c.l.bf16 %v3173_v41 }
  0x26   : > { %6734 = vst [vmem:[#allocation19_spill] sm:$0xff] %v4024_v36  ;;  %v511_v46 = vrot.slane %v4024_v36, 1  ;;  %v516_v48 = vsel %vm473_vm0, %v513_v37, %v515_v38  ;;  %v518_v49 = vsel %vm473_vm0, %v515_v38, %v517_v27  ;;  %v4048_v52 = vunpack.c.h.bf16 %v3173_v41 }
  0x27   : > { %6735 = vst [vmem:[#allocation20_spill] sm:$0xff] %v4034_v45  ;;  %v4052_v54 = vpack.i.bf16 %v522_v44, %v520_v42  ;;  %v4054_v56 = vunpack.c.h.bf16 %v3146_v62  ;;  %v4056_v57 = vpack.i.bf16 %v518_v49, %v516_v48  ;;  %v4061_v1 = vrot.slane %v4042_v47, 1 }
  0x28   : > { %v512_v61 = vsel %vm473_vm0, %v509_v63, %v511_v46  ;;  %v514_v0 = vsel %vm473_vm0, %v511_v46, %v513_v37  ;;  %v525_v14 = vrot.slane %v4046_v50, 1  ;;  %v527_v15 = vrot.slane %v4048_v52, 1 }
  0x29   : > { %3269 = vrot.lane.b32.xlu2 %v4015_v24, %s3815_s30  ;;  %6736 = vst [vmem:[#allocation21_spill] sm:$0xff] %v4052_v54  ;;  %v4067_v16 = vpack.i.bf16 %v514_v0, %v512_v61  ;;  %v523_v62 = vrot.slane %v4054_v56, 1  ;;  %v626_v20 = vrot.slane %v3904_v9, 2  ;;  %v628_v33 = vrot.slane %v3906_v10, 2 }
  0x2a   : > { %3264 = vrot.lane.b32.xlu1 %v4020_v31, %s3815_s30  ;;  %v528_v63 = vsel %vm473_vm0, %v525_v14, %v527_v15  ;;  %v530_v18 = vsel %vm473_vm0, %v527_v15, %v4061_v1  ;;  %v630_v34 = vrot.slane %v3908_v11, 2  ;;  %v622_v37 = vrot.slane %v3926_v25, 2 }
  0x2b   : > { %6737 = vst [vmem:[#allocation22_spill] sm:$0xff] %v4067_v16  ;;  %v524_v19 = vsel %vm473_vm0, %v521_v30, %v523_v62  ;;  %v4079_v27 = vpack.i.bf16 %v530_v18, %v528_v63  ;;  %v526_v29 = vsel %vm473_vm0, %v523_v62, %v525_v14  ;;  %v624_v38 = vrot.slane %v3928_v26, 2 }
  0x2c   : > { %v4088_v41 = vpack.i.bf16 %v526_v29, %v524_v19  ;;  %v629_v30 = vsel %vm618_vm1, %v626_v20, %v628_v33  ;;  %v631_v42 = vsel %vm618_vm1, %v628_v33, %v630_v34  ;;  %v619_v44 = vrot.slane %v3916_v17, 2 }
  0x2d   : > { %3259 = vrot.lane.b32.xlu0 %v4034_v45, %s3815_s30  ;;  %6738 = vst [vmem:[#allocation23_spill] sm:$0xff] %v4079_v27  ;;  %v620_v46 = vrot.slane %v3921_v21, 2  ;;  %v625_v48 = vsel %vm618_vm1, %v622_v37, %v624_v38  ;;  %v627_v49 = vsel %vm618_vm1, %v624_v38, %v626_v20  ;;  %v4100_v61 = vpack.i.bf16 %v631_v42, %v629_v30 }
  0x2e   : > { %6739 = vst [vmem:[#allocation24_spill] sm:$0xff] %v4088_v41  ;;  %v638_v0 = vrot.slane %v3898_v5, 2  ;;  %v640_v14 = vrot.slane %v3900_v6, 2  ;;  %v4104_v15 = vpack.i.bf16 %v627_v49, %v625_v48  ;;  %v642_v18 = vrot.slane %v3940_v35, 2 }
  0x2f   : > { %6740 = vst [vmem:[#allocation25_spill] sm:$0xff] %v4100_v61  ;;  %v621_v62 = vsel %vm618_vm1, %v619_v44, %v620_v46  ;;  %v623_v63 = vsel %vm618_vm1, %v620_v46, %v622_v37  ;;  %v634_v19 = vrot.slane %v3894_v3, 2  ;;  %v636_v20 = vrot.slane %v3896_v4, 2 }
  0x30   : > { %v3298_v29 = vpack.i.bf16 %v623_v63, %v621_v62  ;;  %v641_v33 = vsel %vm618_vm1, %v638_v0, %v640_v14  ;;  %v643_v38 = vsel %vm618_vm1, %v640_v14, %v642_v18  ;;  %v632_v37 = vrot.slane %v3910_v12, 2 }
  0x31   : > { %3284 = vrot.lane.b32.xlu2 %v4052_v54, %s3815_s30  ;;  %v637_v30 = vsel %vm618_vm1, %v634_v19, %v636_v20  ;;  %v639_v42 = vsel %vm618_vm1, %v636_v20, %v638_v0  ;;  %v4121_v44 = vpack.i.bf16 %v643_v38, %v641_v33  ;;  %v650_v46 = vrot.slane %v3949_v39, 2 }
  0x32   : > { %3279 = vrot.lane.b32.xlu1 %v4056_v57, %s3815_s30  ;;  %v652_v48 = vrot.slane %v3956_v43, 2  ;;  %v4125_v49 = vpack.i.bf16 %v639_v42, %v637_v30  ;;  %v633_v62 = vsel %vm618_vm1, %v630_v34, %v632_v37  ;;  %v635_v14 = vsel %vm618_vm1, %v632_v37, %v634_v19 }
  0x33   : > { %6741 = vst [vmem:[#allocation26_spill] sm:$0xff] %v4121_v44  ;;  %v654_v63 = vrot.slane %v3976_v55, 2  ;;  %v646_v21 = vrot.slane %v3980_v58, 2  ;;  %v648_v0 = vrot.slane %v3982_v59, 2  ;;  %v4134_v20 = vpack.i.bf16 %v635_v14, %v633_v62 }
  0x34   : > { %6742 = vst [vmem:[#allocation27_spill] sm:$0xff] %v4125_v49  ;;  %v644_v19 = vrot.slane %v3984_v60, 2  ;;  %v662_v30 = vrot.slane %v3995_v7, 2  ;;  %v664_v42 = vrot.slane %v3997_v8, 2  ;;  %v666_v17 = vrot.slane %v3999_v13, 2 }
  0x35   : > { %3274 = vrot.lane.b32.xlu0 %v4067_v16, %s3815_s30  ;;  %6743 = vst [vmem:[#allocation28_spill] sm:$0xff] %v4134_v20  ;;  %v655_v34 = vsel %vm618_vm1, %v652_v48, %v654_v63  ;;  %v649_v33 = vsel %vm618_vm1, %v646_v21, %v648_v0  ;;  %v651_v38 = vsel %vm618_vm1, %v648_v0, %v650_v46 }
  0x36   : > { %v4149_v62 = vpack.i.bf16 %v651_v38, %v649_v33  ;;  %v645_v14 = vsel %vm618_vm1, %v642_v18, %v644_v19  ;;  %v667_v18 = vsel %vm618_vm1, %v664_v42, %v666_v17 }
  0x38   : > { %6745 = vst [vmem:[#allocation30_spill] sm:$0xff] %v4149_v62 }
  0x39   : > { %587 = vrot.lane.b32.xlu2 %v4061_v1, %s3815_s30 }
  0x3a   : > { %3294 = vrot.lane.b32.xlu1 %v4079_v27, %s3815_s30 }
  0x3d   : > { %3289 = vrot.lane.b32.xlu0 %v4088_v41, %s3815_s30 }
  0x41   : > { %3309 = vrot.lane.b32.xlu2 %v4100_v61, %s3816_s10 }
  0x42   : > { %3304 = vrot.lane.b32.xlu1 %v4104_v15, %s3816_s10 }
  0x45   : > { %3299 = vrot.lane.b32.xlu0 %v3298_v29, %s3816_s10  ;;  %v653_v29 = vsel %vm618_vm1, %v650_v46, %v652_v48  ;;  %v647_v48 = vsel %vm618_vm1, %v644_v19, %v646_v21  ;;  %v660_v46 = vrot.slane %v4011_v23, 2  ;;  %v656_v21 = vrot.slane %v4024_v36, 2 }
  0x46   : > { %v4145_v37 = vpack.i.bf16 %v655_v34, %v653_v29  ;;  %v4158_v0 = vpack.i.bf16 %v647_v48, %v645_v14  ;;  %v665_v29 = vsel %vm618_vm1, %v662_v30, %v664_v42  ;;  %v670_v42 = vrot.slane %v4046_v50, 2 }
  0x47   : > { %v663_v19 = vsel %vm618_vm1, %v660_v46, %v662_v30  ;;  %v4169_v33 = vpack.i.bf16 %v667_v18, %v665_v29  ;;  %v657_v14 = vsel %vm618_vm1, %v654_v63, %v656_v21 }
  0x48   : > { %6744 = vst [vmem:[#allocation29_spill] sm:$0xff] %v4145_v37 }
  0x49   : > { %3324 = vrot.lane.b32.xlu2 %v4121_v44, %s3816_s10  ;;  %6746 = vst [vmem:[#allocation31_spill] sm:$0xff] %v4158_v0 }
  0x4a   : > { %3319 = vrot.lane.b32.xlu1 %v4125_v49, %s3816_s10  ;;  %v658_v49 = vrot.slane %v4009_v22, 2  ;;  %6747 = vst [vmem:[#allocation32_spill] sm:$0xff] %v4169_v33 }
  0x4c   : > { %v661_v34 = vsel %vm618_vm1, %v658_v49, %v660_v46  ;;  %v659_v48 = vsel %vm618_vm1, %v656_v21, %v658_v49  ;;  %v668_v46 = vrot.slane %v4054_v56, 2 }
  0x4d   : > { %3314 = vrot.lane.b32.xlu0 %v4134_v20, %s3816_s10  ;;  %v4171_v38 = vpack.i.bf16 %v663_v19, %v661_v34  ;;  %v4182_v30 = vpack.i.bf16 %v659_v48, %v657_v14  ;;  %v3368_v19 = vpack.i.bf16 %v3928_v26, %v3926_v25  ;;  %v4221_v14 = vpack.i.bf16 %v3984_v60, %v3940_v35 }
  0x4e   : > { %v669_v18 = vsel %vm618_vm1, %v666_v17, %v668_v46  ;;  %v671_v21 = vsel %vm618_vm1, %v668_v46, %v670_v42  ;;  %v4210_v17 = vpack.i.bf16 %v3906_v10, %v3904_v9  ;;  %v4225_v48 = vpack.i.bf16 %v3900_v6, %v3898_v5 }
  0x4f   : > { %6748 = vst [vmem:[#allocation33_spill] sm:$0xff] %v4182_v30  ;;  %v4198_v34 = vpack.i.bf16 %v671_v21, %v669_v18  ;;  %v4251_v18 = vpack.i.bf16 %v3982_v59, %v3980_v58  ;;  %v4296_v9 = vpack.i.bf16 %v4048_v52, %v4046_v50 }
  0x51   : > { %3339 = vrot.lane.b32.xlu2 %v4145_v37, %s3816_s10  ;;  %v672_v37 = vrot.slane %v4048_v52, 2 }
  0x52   : > { %3334 = vrot.lane.b32.xlu1 %v4149_v62, %s3816_s10  ;;  %v4176_v62 = vrot.slane %v4042_v47, 2 }
  0x53   : > { %v673_v63 = vsel %vm618_vm1, %v670_v42, %v672_v37  ;;  %v4231_v42 = vpack.i.bf16 %v3896_v4, %v3894_v3 }
  0x54   : > { %v675_v49 = vsel %vm618_vm1, %v672_v37, %v4176_v62  ;;  %v4206_v37 = vpack.i.bf16 %v3910_v12, %v3908_v11  ;;  %v4265_v12 = vpack.i.bf16 %v3997_v8, %v3995_v7  ;;  %v4276_v11 = vld [vmem:[%s3966_s9 + $0x18] sm:$0xff]   ;;  %s3824_s9 = smov 40  }
  0x55   : > { %3329 = vrot.lane.b32.xlu0 %v4158_v0, %s3816_s10  ;;  %v4192_v29 = vpack.i.bf16 %v675_v49, %v673_v63  ;;  %v4241_v63 = vpack.i.bf16 %v4024_v36, %v3976_v55  ;;  %v4245_v49 = vpack.i.bf16 %v3956_v43, %v3949_v39  ;;  %v4271_v36 = vpack.i.bf16 %v4011_v23, %v4009_v22 }
  0x56   : > { %v4279_v55 = vunpack.c.h.bf16 %v4029_v40  ;;  %v4286_v43 = vunpack.c.l.bf16 %v4276_v11 }
  0x58   : > { %v4290_v22 = vpack.i.bf16 %v4279_v55, %v4042_v47 }
  0x59   : > { %3354 = vrot.lane.b32.xlu2 %v4169_v33, %s3816_s10 }
  0x5a   : > { %3349 = vrot.lane.b32.xlu1 %v4171_v38, %s3816_s10 }
  0x5d   : > { %3344 = vrot.lane.b32.xlu0 %v4182_v30, %s3816_s10 }
  0x61   : > { %732 = vrot.lane.b32.xlu2 %v4176_v62, %s3816_s10 }
  0x62   : > { %3364 = vrot.lane.b32.xlu1 %v4192_v29, %s3816_s10 }
  0x65   : > { %3359 = vrot.lane.b32.xlu0 %v4198_v34, %s3816_s10 }
  0x69   : > { %3379 = vrot.lane.b32.xlu2 %v4206_v37, %s3817_s11 }
  0x6a   : > { %3374 = vrot.lane.b32.xlu1 %v4210_v17, %s3817_s11 }
  0x6d   : > { %3369 = vrot.lane.b32.xlu0 %v3368_v19, %s3817_s11  ;;  %v4261_v19 = vpack.i.bf16 %v4054_v56, %v3999_v13 }
  0x71   : > { %3394 = vrot.lane.b32.xlu2 %v4221_v14, %s3817_s11 }
  0x72   : > { %3389 = vrot.lane.b32.xlu1 %v4225_v48, %s3817_s11 }
  0x73   : > { %v4235_v46 = vpop.permute.xlu2 %3249 }
  0x75   : > { %3384 = vrot.lane.b32.xlu0 %v4231_v42, %s3817_s11 }
  0x79   : > { %3409 = vrot.lane.b32.xlu2 %v4241_v63, %s3817_s11 }
  0x7a   : > { %3404 = vrot.lane.b32.xlu1 %v4245_v49, %s3817_s11 }
  0x7b   : > { %v4255_v21 = vpop.permute.xlu2 %3254 }
  0x7d   : > { %3399 = vrot.lane.b32.xlu0 %v4251_v18, %s3817_s11 }
  0x81   : > { %3424 = vrot.lane.b32.xlu2 %v4261_v19, %s3817_s11 }
  0x82   : > { %3419 = vrot.lane.b32.xlu1 %v4265_v12, %s3817_s11 }
  0x83   : > { %v4281_v10 = vpop.permute.xlu2 %3269 }
  0x84   : > { %6749 = vst [vmem:[#allocation34_spill] sm:$0xff] %v4281_v10 }
  0x85   : > { %3414 = vrot.lane.b32.xlu0 %v4271_v36, %s3817_s11 }
  0x89   : > { %821 = vrot.lane.b32.xlu2 %v4286_v43, %s3817_s11 }
  0x8a   : > { %3434 = vrot.lane.b32.xlu1 %v4290_v22, %s3817_s11 }
  0x8b   : > { %v4300_v40 = vpop.permute.xlu2 %3284 }
  0x8c   : > { %v4302_v26 = vpop.permute.xlu1 %3239 }
  0x8d   : > { %6750 = vst [vmem:[#allocation35_spill] sm:$0xff] %v4302_v26  ;;  %3429 = vrot.lane.b32.xlu0 %v4296_v9, %s3817_s11  ;;  %s3826_s11 = smov 48  }
  0x8f   : > { %v4306_v59 = vpop.permute.xlu0 %3229 }
  0x90   : > { %6751 = vst [vmem:[#allocation36_spill] sm:$0xff] %v4306_v59 }
  0x91   : > { %3449 = vrot.lane.b32.xlu2 %v3969_v51, %s3818_s12 }
  0x92   : > { %3444 = vrot.lane.b32.xlu1 %v3936_v32, %s3818_s12 }
  0x93   : > { %v4312_v25 = vpop.permute.xlu2 %587 }
  0x94   : > { %v4314_v58 = vpop.permute.xlu1 %3244 }
  0x95   : > { %6752 = vst [vmem:[#allocation37_spill] sm:$0xff] %v4314_v58  ;;  %3439 = vrot.lane.b32.xlu0 %v3993_v2, %s3818_s12 }
  0x97   : > { %v4318_v26 = vpop.permute.xlu0 %3234 }
  0x98   : > { %6753 = vst [vmem:[#allocation38_spill] sm:$0xff] %v4318_v26  ;;  %v4343_v26 = vrot.slane %v4286_v43, 1 }
  0x99   : > { %3464 = vrot.lane.b32.xlu2 %v4034_v45, %s3818_s12 }
  0x9a   : > { %3459 = vrot.lane.b32.xlu1 %v3973_v53, %s3818_s12  ;;  %6757 = vst [vmem:[#allocation42_spill] sm:$0xff] %v4343_v26 }
  0x9b   : > { %v4324_v39 = vpop.permute.xlu2 %3309 }
  0x9c   : > { %6754 = vst [vmem:[#allocation39_spill] sm:$0xff] %v4324_v39  ;;  %v4326_v10 = vpop.permute.xlu1 %3264 }
  0x9d   : > { %6755 = vst [vmem:[#allocation40_spill] sm:$0xff] %v4326_v10  ;;  %3454 = vrot.lane.b32.xlu0 %v3931_v28, %s3818_s12  ;;  %v852_v10 = vrot.slane %v4279_v55, 1 }
  0x9f   : > { %v4330_v59 = vpop.permute.xlu0 %3259  ;;  %v855_v53 = vsel %vm473_vm0, %v852_v10, %v4343_v26 }
  0xa1   : > { %3479 = vrot.lane.b32.xlu2 %v4067_v16, %s3818_s12  ;;  %v853_v16 = vsel %vm473_vm0, %v4061_v1, %v852_v10 }
  0xa2   : > { %3474 = vrot.lane.b32.xlu1 %v4015_v24, %s3818_s12  ;;  %v4360_v45 = vpack.i.bf16 %v855_v53, %v853_v16 }
  0xa3   : > { %v3325_v2 = vpop.permute.xlu2 %3324 }
  0xa4   : > { %v4336_v58 = vpop.permute.xlu1 %3279  ;;  %6759 = vst [vmem:[#allocation44_spill] sm:$0xff] %v4360_v45 }
  0xa5   : > { %3469 = vrot.lane.b32.xlu0 %v4020_v31, %s3818_s12 }
  0xa7   : > { %v4340_v39 = vpop.permute.xlu0 %3274 }
  0xa8   : > { %6756 = vst [vmem:[#allocation41_spill] sm:$0xff] %v4340_v39 }
  0xa9   : > { %3494 = vrot.lane.b32.xlu2 %v4088_v41, %s3818_s12 }
  0xaa   : > { %3489 = vrot.lane.b32.xlu1 %v4052_v54, %s3818_s12  ;;  %v3256_v54 = vunpack.i.l.bf16 %v4255_v21 }
  0xab   : > { %v4350_v24 = vpop.permute.xlu2 %3339 }
  0xac   : > { %6758 = vst [vmem:[#allocation43_spill] sm:$0xff] %v4350_v24  ;;  %v4356_v39 = vpop.permute.xlu1 %3294 }
  0xad   : > { %3484 = vrot.lane.b32.xlu0 %v4056_v57, %s3818_s12 }
  0xaf   : > { %v4362_v31 = vpop.permute.xlu0 %3289 }
  0xb1   : > { %912 = vrot.lane.b32.xlu2 %v4343_v26, %s3818_s12  ;;  %v3326_v26 = vunpack.i.l.bf16 %v3325_v2 }
  0xb2   : > { %3504 = vrot.lane.b32.xlu1 %v4360_v45, %s3818_s12  ;;  %v3257_v45 = vunpack.i.h.bf16 %v4255_v21 }
  0xb3   : > { %v4368_v24 = vpop.permute.xlu2 %3354 }
  0xb4   : > { %v4370_v1 = vpop.permute.xlu1 %3304 }
  0xb5   : > { %6760 = vst [vmem:[#allocation45_spill] sm:$0xff] %v4370_v1  ;;  %3499 = vrot.lane.b32.xlu0 %v4079_v27, %s3818_s12 }
  0xb7   : > { %v4374_v10 = vpop.permute.xlu0 %3299 }
  0xb8   : > { %6761 = vst [vmem:[#allocation46_spill] sm:$0xff] %v4374_v10 }
  0xb9   : > { %3519 = vrot.lane.b32.xlu2 %v4134_v20, %s3819_s13 }
  0xba   : > { %3514 = vrot.lane.b32.xlu1 %v4100_v61, %s3819_s13  ;;  %v6765_v61 = vld [vmem:[#allocation27_spill] sm:$0xff] }
  0xbb   : > { %v4380_v53 = vpop.permute.xlu2 %732 }
  0xbc   : > { %v4382_v16 = vpop.permute.xlu1 %3319 }
  0xbd   : > { %3509 = vrot.lane.b32.xlu0 %v4104_v15, %s3819_s13 }
  0xbf   : > { %v4386_v1 = vpop.permute.xlu0 %3314 }
  0xc0   : > { %6762 = vst [vmem:[#allocation47_spill] sm:$0xff] %v4386_v1  ;;  %v3327_v1 = vunpack.i.h.bf16 %v3325_v2 }
  0xc1   : > { %3534 = vrot.lane.b32.xlu2 %v4158_v0, %s3819_s13 }
  0xc2   : > { %3529 = vrot.lane.b32.xlu1 %v4121_v44, %s3819_s13  ;;  %v6766_v44 = vld [vmem:[#allocation29_spill] sm:$0xff] }
  0xc3   : > { %v4392_v10 = vpop.permute.xlu2 %3379 }
  0xc4   : > { %6763 = vst [vmem:[#allocation48_spill] sm:$0xff] %v4392_v10  ;;  %v4394_v20 = vpop.permute.xlu1 %3334  ;;  %v1317_v10 = vsel %vm1305_vm2, %v3900_v6, %v3257_v45 }
  0xc5   : > { %6764 = vst [vmem:[#allocation49_spill] sm:$0xff] %v4394_v20  ;;  %3524 = vrot.lane.b32.xlu0 %v6765_v61, %s3819_s13  ;;  %v1316_v20 = vsel %vm1305_vm2, %v3898_v5, %v3256_v54  ;;  %v1347_v2 = vsel %vm1335_vm3, %v1317_v10, %v3327_v1  ;;  %v4425_v54 = vrot.slane %v4286_v43, 2  ;;  %v3286_v1 = vunpack.i.l.bf16 %v4300_v40 }
  0xc6   : > { %v1346_v27 = vsel %vm1335_vm3, %v1316_v20, %v3326_v26 }
  0xc7   : > { %v4400_v15 = vpop.permute.xlu0 %3329 }
  0xc9   : > { %3549 = vrot.lane.b32.xlu2 %v4182_v30, %s3819_s13  ;;  %v6767_v30 = vld [vmem:[#allocation30_spill] sm:$0xff] }
  0xca   : > { %3544 = vrot.lane.b32.xlu1 %v6766_v44, %s3819_s13 }
  0xcb   : > { %v3395_v0 = vpop.permute.xlu2 %3394 }
  0xcc   : > { %v3397_v21 = vunpack.i.h.bf16 %v3395_v0  ;;  %v3396_v61 = vunpack.i.l.bf16 %v3395_v0  ;;  %v4410_v41 = vpop.permute.xlu1 %3349  ;;  %v943_v0 = vrot.slane %v4279_v55, 2  ;;  %v3287_v55 = vunpack.i.h.bf16 %v4300_v40 }
  0xcd   : > { %3539 = vrot.lane.b32.xlu0 %v6767_v30, %s3819_s13 }
  0xce   : > { %v4417_v6 = vsel %vm1365_vm4, %v1346_v27, %v3396_v61  ;;  %v4420_v5 = vsel %vm1365_vm4, %v1347_v2, %v3397_v21  ;;  %v944_v27 = vsel %vm618_vm1, %v4176_v62, %v943_v0  ;;  %v946_v61 = vsel %vm618_vm1, %v943_v0, %v4425_v54 }
  0xcf   : > { %v4422_v45 = vpop.permute.xlu0 %3344  ;;  %v4444_v10 = vpack.i.bf16 %v946_v61, %v944_v27  ;;  %v3357_v2 = vunpack.i.h.bf16 %v4368_v24  ;;  %v3356_v62 = vunpack.i.l.bf16 %v4368_v24  ;;  %v1329_v0 = vsel %vm1305_vm2, %v3997_v8, %v3287_v55 }
  0xd0   : > { %6768 = vst [vmem:[#allocation29_spill] sm:$0xff] %v4422_v45  ;;  %v1328_v45 = vsel %vm1305_vm2, %v3995_v7, %v3286_v1  ;;  %v3252_v1 = vunpack.i.h.bf16 %v4235_v46 }
  0xd1   : > { %3564 = vrot.lane.b32.xlu2 %v4198_v34, %s3819_s13  ;;  %v1358_v24 = vsel %vm1335_vm3, %v1328_v45, %v3356_v62  ;;  %v3322_v45 = vunpack.i.h.bf16 %v4382_v16  ;;  %v3321_v62 = vunpack.i.l.bf16 %v4382_v16 }
  0xd2   : > { %3559 = vrot.lane.b32.xlu1 %v4169_v33, %s3819_s13  ;;  %v1359_v33 = vsel %vm1335_vm3, %v1329_v0, %v3357_v2  ;;  %v3251_v2 = vunpack.i.l.bf16 %v4235_v46 }
  0xd3   : > { %v4432_v26 = vpop.permute.xlu2 %3409 }
  0xd4   : > { %6769 = vst [vmem:[#allocation30_spill] sm:$0xff] %v4432_v26  ;;  %v4438_v20 = vpop.permute.xlu1 %3364 }
  0xd5   : > { %3554 = vrot.lane.b32.xlu0 %v4171_v38, %s3819_s13 }
  0xd7   : > { %v4446_v21 = vpop.permute.xlu0 %3359 }
  0xd9   : > { %1003 = vrot.lane.b32.xlu2 %v4425_v54, %s3819_s13 }
  0xda   : > { %3574 = vrot.lane.b32.xlu1 %v4444_v10, %s3819_s13 }
  0xdb   : > { %v3425_v40 = vpop.permute.xlu2 %3424 }
  0xdc   : > { %v3427_v27 = vunpack.i.h.bf16 %v3425_v40  ;;  %v3426_v61 = vunpack.i.l.bf16 %v3425_v40  ;;  %v4458_v26 = vpop.permute.xlu1 %3374  ;;  %v1334_v40 = vsel %vm1305_vm2, %v4042_v47, %v4312_v25  ;;  %v1315_v25 = vsel %vm1305_vm2, %v3896_v4, %v3252_v1 }
  0xdd   : > { %3569 = vrot.lane.b32.xlu0 %v4192_v29, %s3819_s13  ;;  %v3261_v1 = vunpack.i.l.bf16 %v4330_v59 }
  0xde   : > { %v4465_v8 = vsel %vm1365_vm4, %v1358_v24, %v3426_v61  ;;  %v4468_v7 = vsel %vm1365_vm4, %v1359_v33, %v3427_v27  ;;  %v1364_v33 = vsel %vm1335_vm3, %v1334_v40, %v4380_v53 }
  0xdf   : > { %v4470_v55 = vpop.permute.xlu0 %3369 }
  0xe1   : > { %3589 = vrot.lane.b32.xlu2 %v4231_v42, %s3820_s14  ;;  %v1314_v42 = vsel %vm1305_vm2, %v3894_v3, %v3251_v2  ;;  %v3332_v2 = vunpack.i.h.bf16 %v4400_v15 }
  0xe2   : > { %3584 = vrot.lane.b32.xlu1 %v4206_v37, %s3820_s14  ;;  %v1345_v37 = vsel %vm1335_vm3, %v1315_v25, %v3322_v45  ;;  %v1344_v53 = vsel %vm1335_vm3, %v1314_v42, %v3321_v62  ;;  %v3331_v45 = vunpack.i.l.bf16 %v4400_v15 }
  0xe3   : > { %v822_v0 = vpop.permute.xlu2 %821 }
  0xe4   : > { %v4488_v47 = vsel %vm1365_vm4, %v1364_v33, %v822_v0  ;;  %v3390_v46 = vpop.permute.xlu1 %3389 }
  0xe5   : > { %3579 = vrot.lane.b32.xlu0 %v4210_v17, %s3820_s14  ;;  %v3392_v16 = vunpack.i.h.bf16 %v3390_v46  ;;  %v3391_v27 = vunpack.i.l.bf16 %v3390_v46  ;;  %v3262_v17 = vunpack.i.h.bf16 %v4330_v59  ;;  %v3282_v59 = vunpack.i.h.bf16 %v4336_v58 }
  0xe7   : > { %v4497_v61 = vsel %vm1365_vm4, %v1344_v53, %v3391_v27  ;;  %v4500_v4 = vsel %vm1365_vm4, %v1345_v37, %v3392_v16  ;;  %v4502_v24 = vpop.permute.xlu0 %3384  ;;  %v1327_v16 = vsel %vm1305_vm2, %v4011_v23, %v3282_v59  ;;  %v3367_v23 = vunpack.i.h.bf16 %v4438_v20 }
  0xe9   : > { %3604 = vrot.lane.b32.xlu2 %v4251_v18, %s3820_s14  ;;  %v1319_v18 = vsel %vm1305_vm2, %v3984_v60, %v3262_v17  ;;  %v3296_v17 = vunpack.i.l.bf16 %v4356_v39 }
  0xea   : > { %3599 = vrot.lane.b32.xlu1 %v4221_v14, %s3820_s14  ;;  %v1318_v14 = vsel %vm1305_vm2, %v3940_v35, %v3261_v1  ;;  %v1349_v46 = vsel %vm1335_vm3, %v1319_v18, %v3332_v2  ;;  %v4560_v1 = vunpack.c.h.bf16 %v4276_v11 }
  0xeb   : > { %v4508_v3 = vpop.permute.xlu2 %3449  ;;  %v1348_v25 = vsel %vm1335_vm3, %v1318_v14, %v3331_v45 }
  0xec   : > { %v4512_v40 = vpop.permute.xlu1 %3404 }
  0xed   : > { %3594 = vrot.lane.b32.xlu0 %v4225_v48, %s3820_s14  ;;  %v3352_v48 = vunpack.i.h.bf16 %v4410_v41 }
  0xef   : > { %v3400_v62 = vpop.permute.xlu0 %3399  ;;  %v1357_v27 = vsel %vm1335_vm3, %v1327_v16, %v3352_v48 }
  0xf0   : > { %v3402_v33 = vunpack.i.h.bf16 %v3400_v62  ;;  %v3401_v0 = vunpack.i.l.bf16 %v3400_v62  ;;  %v3291_v62 = vunpack.i.l.bf16 %v4362_v31 }
  0xf1   : > { %3619 = vrot.lane.b32.xlu2 %v4271_v36, %s3820_s14 }
  0xf2   : > { %v4529_v15 = vsel %vm1365_vm4, %v1348_v25, %v3401_v0  ;;  %v4532_v60 = vsel %vm1365_vm4, %v1349_v46, %v3402_v33  ;;  %3614 = vrot.lane.b32.xlu1 %v4241_v63, %s3820_s14  ;;  %v3297_v63 = vunpack.i.h.bf16 %v4356_v39  ;;  %v1332_v39 = vsel %vm1305_vm2, %v4046_v50, %v3296_v17 }
  0xf3   : > { %v4536_v35 = vpop.permute.xlu2 %3464  ;;  %v3643_v50 = vpack.i.bf16 %v4560_v1, %v4286_v43  ;;  %v3821_v43 = vmov 0.0  }
  0xf4   : > { %v4538_v42 = vpop.permute.xlu1 %3419  ;;  %v1333_v45 = vsel %vm1305_vm2, %v4048_v52, %v3297_v63 }
  0xf5   : > { %3609 = vrot.lane.b32.xlu0 %v4245_v49, %s3820_s14  ;;  %v3422_v36 = vunpack.i.h.bf16 %v4538_v42  ;;  %v3366_v49 = vunpack.i.l.bf16 %v4438_v20  ;;  %v3362_v20 = vunpack.i.h.bf16 %v4446_v21  ;;  %v1363_v33 = vsel %vm1335_vm3, %v1333_v45, %v3367_v23  ;;  %v6770_v45 = vld [vmem:[#allocation18_spill] sm:$0xff] }
  0xf7   : > { %v4547_v37 = vsel %vm1365_vm4, %v1357_v27, %v3422_v36  ;;  %v4549_v53 = vpop.permute.xlu0 %3414  ;;  %v1362_v52 = vsel %vm1335_vm3, %v1332_v39, %v3366_v49 }
  0xf9   : > { %3634 = vrot.lane.b32.xlu2 %v4296_v9, %s3820_s14  ;;  %v3292_v9 = vunpack.i.h.bf16 %v4362_v31 }
  0xfa   : > { %3629 = vrot.lane.b32.xlu1 %v4261_v19, %s3820_s14  ;;  %v3361_v19 = vunpack.i.l.bf16 %v4446_v21 }
  0xfb   : > { %v4562_v2 = vpop.permute.xlu2 %3479  ;;  %v1331_v21 = vsel %vm1305_vm2, %v4054_v56, %v3292_v9 }
  0xfc   : > { %v3435_v18 = vpop.permute.xlu1 %3434  ;;  %v1361_v16 = vsel %vm1335_vm3, %v1331_v21, %v3362_v20  ;;  %v1125_v21 = vrot.slane %v3821_v43, 1 }
  0xfd   : > { %3624 = vrot.lane.b32.xlu0 %v4265_v12, %s3820_s14  ;;  %v3437_v11 = vunpack.i.h.bf16 %v3435_v18  ;;  %v3436_v14 = vunpack.i.l.bf16 %v3435_v18  ;;  %v1330_v12 = vsel %vm1305_vm2, %v3999_v13, %v3291_v62  ;;  %v3467_v62 = vunpack.i.h.bf16 %v4536_v35  ;;  %v6773_v18 = vld [vmem:[#allocation22_spill] sm:$0xff] }
  0xfe   : > { %v1360_v48 = vsel %vm1335_vm3, %v1330_v12, %v3361_v19  ;;  %v1123_v12 = vrot.slane %v4560_v1, 1 }
  0xff   : > { %v4579_v0 = vsel %vm1365_vm4, %v1362_v52, %v3436_v14  ;;  %v4582_v31 = vsel %vm1365_vm4, %v1363_v33, %v3437_v11  ;;  %v3430_v59 = vpop.permute.xlu0 %3429  ;;  %v1407_v52 = vsel %vm1395_vm5, %v4420_v5, %v3467_v62  ;;  %v6776_v5 = vld [vmem:[#allocation24_spill] sm:$0xff] }
 0x100   : > { %v3432_v25 = vunpack.i.h.bf16 %v3430_v59  ;;  %v3431_v46 = vunpack.i.l.bf16 %v3430_v59 }
 0x101   : > { %1092 = vrot.lane.b32.xlu2 %v3821_v43, %s3820_s14 }
 0x102   : > { %v4593_v36 = vsel %vm1365_vm4, %v1360_v48, %v3431_v46  ;;  %v4596_v27 = vsel %vm1365_vm4, %v1361_v16, %v3432_v25  ;;  %3644 = vrot.lane.b32.xlu1 %v3643_v50, %s3820_s14  ;;  %v6777_v46 = vld [vmem:[#allocation42_spill] sm:$0xff]  ;;  %v1126_v16 = vsel %vm473_vm0, %v1123_v12, %v1125_v21 }
 0x103   : > { %v3495_v56 = vpop.permute.xlu2 %3494  ;;  %v1124_v48 = vsel %vm473_vm0, %v6777_v46, %v1123_v12  ;;  %v6779_v12 = vld [vmem:[#allocation44_spill] sm:$0xff] }
 0x104   : > { %v4599_v13 = vpop.permute.xlu1 %3444 }
 0x105   : > { %3639 = vrot.lane.b32.xlu0 %v4290_v22, %s3820_s14  ;;  %v6771_v22 = vld [vmem:[#allocation20_spill] sm:$0xff] }
 0x107   : > { %v4603_v63 = vpop.permute.xlu0 %3439 }
 0x109   : > { %3659 = vrot.lane.b32.xlu2 %v3931_v28, %s3822_s15 }
 0x10a   : > { %3654 = vrot.lane.b32.xlu1 %v3969_v51, %s3822_s15  ;;  %v6772_v51 = vld [vmem:[#allocation12_spill] sm:$0xff] }
 0x10b   : > { %v913_v17 = vpop.permute.xlu2 %912 }
 0x10c   : > { %v4609_v23 = vpop.permute.xlu1 %3459 }
 0x10d   : > { %3649 = vrot.lane.b32.xlu0 %v3936_v32, %s3822_s15  ;;  %v3466_v32 = vunpack.i.l.bf16 %v4536_v35  ;;  %v6774_v35 = vld [vmem:[#allocation17_spill] sm:$0xff]  ;;  %v3461_v46 = vunpack.i.l.bf16 %v4609_v23 }
 0x10f   : > { %v4613_v49 = vpop.permute.xlu0 %3454  ;;  %v1406_v33 = vsel %vm1395_vm5, %v4417_v6, %v3466_v32  ;;  %v6775_v6 = vld [vmem:[#allocation23_spill] sm:$0xff]  ;;  %v3497_v32 = vunpack.i.h.bf16 %v3495_v56 }
 0x111   : > { %3674 = vrot.lane.b32.xlu2 %v6770_v45, %s3822_s15 }
 0x112   : > { %3669 = vrot.lane.b32.xlu1 %v6771_v22, %s3822_s15  ;;  %v6778_v22 = vld [vmem:[#allocation21_spill] sm:$0xff] }
 0x113   : > { %v4619_v39 = vpop.permute.xlu2 %3519 }
 0x114   : > { %v4621_v28 = vpop.permute.xlu1 %3474 }
 0x115   : > { %3664 = vrot.lane.b32.xlu0 %v6772_v51, %s3822_s15  ;;  %v3713_v51 = vpack.i.bf16 %v1126_v16, %v1124_v48  ;;  %v1424_v48 = vsel %vm1395_vm5, %v4488_v47, %v913_v17 }
 0x117   : > { %v4625_v9 = vpop.permute.xlu0 %3469 }
 0x119   : > { %3689 = vrot.lane.b32.xlu2 %v4056_v57, %s3822_s15 }
 0x11a   : > { %3684 = vrot.lane.b32.xlu1 %v6773_v18, %s3822_s15  ;;  %v3496_v18 = vunpack.i.l.bf16 %v3495_v56 }
 0x11b   : > { %v3535_v20 = vpop.permute.xlu2 %3534 }
 0x11c   : > { %v3537_v19 = vunpack.i.h.bf16 %v3535_v20  ;;  %v3536_v11 = vunpack.i.l.bf16 %v3535_v20  ;;  %v4633_v14 = vpop.permute.xlu1 %3489 }
 0x11d   : > { %3679 = vrot.lane.b32.xlu0 %v6774_v35, %s3822_s15  ;;  %v1419_v35 = vsel %vm1395_vm5, %v4468_v7, %v3497_v32  ;;  %v6781_v7 = vld [vmem:[#allocation28_spill] sm:$0xff]  ;;  %v6782_v32 = vld [vmem:[#allocation25_spill] sm:$0xff] }
 0x11e   : > { %v4642_v57 = vsel %vm1425_vm6, %v1406_v33, %v3536_v11  ;;  %v4645_v50 = vsel %vm1425_vm6, %v1407_v52, %v3537_v19  ;;  %v1418_v52 = vsel %vm1395_vm5, %v4465_v8, %v3496_v18  ;;  %v3462_v8 = vunpack.i.h.bf16 %v4609_v23 }
 0x11f   : > { %v4647_v59 = vpop.permute.xlu0 %3484 }
 0x120   : > { %v1405_v23 = vsel %vm1395_vm5, %v4500_v4, %v3462_v8  ;;  %v3472_v4 = vunpack.i.h.bf16 %v4625_v9 }
 0x121   : > { %3704 = vrot.lane.b32.xlu2 %v6775_v6, %s3822_s15 }
 0x122   : > { %3699 = vrot.lane.b32.xlu1 %v6776_v5, %s3822_s15  ;;  %v6780_v5 = vld [vmem:[#allocation27_spill] sm:$0xff] }
 0x123   : > { %v4655_v25 = vpop.permute.xlu2 %3549 }
 0x124   : > { %v4660_v45 = vpop.permute.xlu1 %3504 }
 0x125   : > { %3694 = vrot.lane.b32.xlu0 %v6778_v22, %s3822_s15 }
 0x127   : > { %v4664_v62 = vpop.permute.xlu0 %3499 }
 0x129   : > { %1183 = vrot.lane.b32.xlu2 %v1125_v21, %s3822_s15 }
 0x12a   : > { %3714 = vrot.lane.b32.xlu1 %v3713_v51, %s3822_s15 }
 0x12b   : > { %v3565_v20 = vpop.permute.xlu2 %3564 }
 0x12c   : > { %v3567_v19 = vunpack.i.h.bf16 %v3565_v20  ;;  %v3566_v11 = vunpack.i.l.bf16 %v3565_v20  ;;  %v4668_v33 = vpop.permute.xlu1 %3514 }
 0x12d   : > { %3709 = vrot.lane.b32.xlu0 %v6779_v12, %s3822_s15  ;;  %v3471_v12 = vunpack.i.l.bf16 %v4625_v9 }
 0x12e   : > { %v4677_v56 = vsel %vm1425_vm6, %v1418_v52, %v3566_v11  ;;  %v4680_v21 = vsel %vm1425_vm6, %v1419_v35, %v3567_v19  ;;  %v1404_v19 = vsel %vm1395_vm5, %v4497_v61, %v3461_v46  ;;  %v6783_v52 = vld [vmem:[#allocation31_spill] sm:$0xff] }
 0x12f   : > { %v4682_v6 = vpop.permute.xlu0 %3509 }
 0x131   : > { %3729 = vrot.lane.b32.xlu2 %v6780_v5, %s3823_s16  ;;  %v6784_v5 = vld [vmem:[#allocation26_spill] sm:$0xff] }
 0x132   : > { %3724 = vrot.lane.b32.xlu1 %v6781_v7, %s3823_s16 }
 0x133   : > { %v1004_v16 = vpop.permute.xlu2 %1003 }
 0x134   : > { %v4693_v22 = vsel %vm1425_vm6, %v1424_v48, %v1004_v16  ;;  %v3530_v51 = vpop.permute.xlu1 %3529  ;;  %v1409_v48 = vsel %vm1395_vm5, %v4532_v60, %v3472_v4  ;;  %v3492_v16 = vunpack.i.h.bf16 %v4633_v14  ;;  %v3507_v4 = vunpack.i.h.bf16 %v4660_v45 }
 0x135   : > { %3719 = vrot.lane.b32.xlu0 %v6782_v32, %s3823_s16  ;;  %v3532_v18 = vunpack.i.h.bf16 %v3530_v51  ;;  %v3531_v20 = vunpack.i.l.bf16 %v3530_v51  ;;  %v6785_v32 = vld [vmem:[#allocation33_spill] sm:$0xff] }
 0x137   : > { %v4702_v11 = vsel %vm1425_vm6, %v1404_v19, %v3531_v20  ;;  %v4705_v47 = vsel %vm1425_vm6, %v1405_v23, %v3532_v18  ;;  %v4707_v17 = vpop.permute.xlu0 %3524  ;;  %v1216_v23 = vrot.slane %v3821_v43, 2 }
 0x139   : > { %3744 = vrot.lane.b32.xlu2 %v6767_v30, %s3823_s16  ;;  %v1408_v30 = vsel %vm1395_vm5, %v4529_v15, %v3471_v12 }
 0x13a   : > { %3739 = vrot.lane.b32.xlu1 %v6783_v52, %s3823_s16  ;;  %v1214_v52 = vrot.slane %v4560_v1, 2  ;;  %v3502_v1 = vunpack.i.h.bf16 %v4664_v62 }
 0x13b   : > { %v4713_v35 = vpop.permute.xlu2 %3589 }
 0x13c   : > { %v4715_v61 = vpop.permute.xlu1 %3544  ;;  %v1215_v12 = vsel %vm618_vm1, %v4425_v54, %v1214_v52 }
 0x13d   : > { %3734 = vrot.lane.b32.xlu0 %v6784_v5, %s3823_s16  ;;  %v1217_v5 = vsel %vm618_vm1, %v1214_v52, %v1216_v23 }
 0x13f   : > { %v3540_v8 = vpop.permute.xlu0 %3539 }
 0x140   : > { %v3542_v46 = vunpack.i.h.bf16 %v3540_v8  ;;  %v3541_v7 = vunpack.i.l.bf16 %v3540_v8  ;;  %v3501_v8 = vunpack.i.l.bf16 %v4664_v62 }
 0x141   : > { %3759 = vrot.lane.b32.xlu2 %v4171_v38, %s3823_s16  ;;  %v1417_v38 = vsel %vm1395_vm5, %v4547_v37, %v3492_v16 }
 0x142   : > { %v4729_v51 = vsel %vm1425_vm6, %v1408_v30, %v3541_v7  ;;  %v4732_v9 = vsel %vm1425_vm6, %v1409_v48, %v3542_v46  ;;  %3754 = vrot.lane.b32.xlu1 %v6785_v32, %s3823_s16  ;;  %v1423_v7 = vsel %vm1395_vm5, %v4582_v31, %v3507_v4  ;;  %v3783_v30 = vpack.i.bf16 %v1217_v5, %v1215_v12 }
 0x143   : > { %v3605_v18 = vpop.permute.xlu2 %3604 }
 0x144   : > { %v4736_v20 = vpop.permute.xlu1 %3559 }
 0x145   : > { %6786 = vst [vmem:[#allocation18_spill] sm:$0xff] %v4736_v20  ;;  %3749 = vrot.lane.b32.xlu0 %v6766_v44, %s3823_s16  ;;  %v3562_v15 = vunpack.i.h.bf16 %v4736_v20  ;;  %v3506_v44 = vunpack.i.l.bf16 %v4660_v45 }
 0x147   : > { %v4744_v60 = vsel %vm1425_vm6, %v1417_v38, %v3562_v15  ;;  %v4746_v19 = vpop.permute.xlu0 %3554  ;;  %v1420_v15 = vsel %vm1395_vm5, %v4593_v36, %v3501_v8  ;;  %v1421_v38 = vsel %vm1395_vm5, %v4596_v27, %v3502_v1  ;;  %v3607_v1 = vunpack.i.h.bf16 %v3605_v18 }
 0x148   : > { %v3606_v8 = vunpack.i.l.bf16 %v3605_v18 }
 0x149   : > { %3774 = vrot.lane.b32.xlu2 %v4192_v29, %s3823_s16  ;;  %v6787_v29 = vld [vmem:[#allocation32_spill] sm:$0xff] }
 0x14a   : > { %3769 = vrot.lane.b32.xlu1 %v4198_v34, %s3823_s16  ;;  %v1422_v34 = vsel %vm1395_vm5, %v4579_v0, %v3506_v44 }
 0x14b   : > { %v4756_v37 = vpop.permute.xlu2 %3619 }
 0x14c   : > { %v3575_v43 = vpop.permute.xlu1 %3574 }
 0x14d   : > { %3764 = vrot.lane.b32.xlu0 %v6787_v29, %s3823_s16  ;;  %v3577_v46 = vunpack.i.h.bf16 %v3575_v43  ;;  %v3576_v45 = vunpack.i.l.bf16 %v3575_v43 }
 0x14f   : > { %v4770_v54 = vsel %vm1425_vm6, %v1422_v34, %v3576_v45  ;;  %v4773_v48 = vsel %vm1425_vm6, %v1423_v7, %v3577_v46  ;;  %v3570_v16 = vpop.permute.xlu0 %3569  ;;  %v1467_v7 = vsel %vm1455_vm7, %v4645_v50, %v3607_v1 }
 0x150   : > { %v3572_v62 = vunpack.i.h.bf16 %v3570_v16  ;;  %v3571_v32 = vunpack.i.l.bf16 %v3570_v16 }
 0x151   : > { %1274 = vrot.lane.b32.xlu2 %v1216_v23, %s3823_s16 }
 0x152   : > { %v4781_v0 = vsel %vm1425_vm6, %v1420_v15, %v3571_v32  ;;  %v4784_v31 = vsel %vm1425_vm6, %v1421_v38, %v3572_v62  ;;  %3784 = vrot.lane.b32.xlu1 %v3783_v30, %s3823_s16 }
 0x153   : > { %v3635_v52 = vpop.permute.xlu2 %3634 }
 0x154   : > { %v4787_v4 = vpop.permute.xlu1 %3584  ;;  %v3637_v38 = vunpack.i.h.bf16 %v3635_v52 }
 0x155   : > { %3779 = vrot.lane.b32.xlu0 %v4444_v10, %s3823_s16  ;;  %v1466_v10 = vsel %vm1455_vm7, %v4642_v57, %v3606_v8 }
 0x157   : > { %v4791_v36 = vpop.permute.xlu0 %3579 }
 0x15b   : > { %v1093_v44 = vpop.permute.xlu2 %1092 }
 0x15c   : > { %v3600_v27 = vpop.permute.xlu1 %3599 }
 0x15f   : > { %v4793_v12 = vpop.permute.xlu0 %3594 }
 0x163   : > { %v4795_v23 = vpop.permute.xlu2 %3659 }
 0x164   : > { %v4797_v5 = vpop.permute.xlu1 %3614 }
 0x167   : > { %v4799_v43 = vpop.permute.xlu0 %3609 }
 0x16b   : > { %v3675_v29 = vpop.permute.xlu2 %3674 }
 0x16c   : > { %v3677_v46 = vunpack.i.h.bf16 %v3675_v29  ;;  %v3676_v45 = vunpack.i.l.bf16 %v3675_v29  ;;  %v4801_v34 = vpop.permute.xlu1 %3629  ;;  %v3636_v29 = vunpack.i.l.bf16 %v3635_v52  ;;  %v442_v52 = vld [vmem:[%s6583_s2 + $0x20] sm:$0xf] }
 0x16d   : > { %3038 = vmatpush.msk.msra.mxu0 %vm1636_vm9, %v442_v52  ;;  %3176 = vmatpush.msk.msra.mxu2 %vm1636_vm9, %v442_v52 }
 0x16e   : > { %v4808_v30 = vsel %vm1485_vm8, %v1466_v10, %v3676_v45  ;;  %v4811_v16 = vsel %vm1485_vm8, %v1467_v7, %v3677_v46  ;;  %v1478_v1 = vsel %vm1455_vm7, %v4677_v56, %v3636_v29  ;;  %v1479_v46 = vsel %vm1455_vm7, %v4680_v21, %v3637_v38  ;;  %v441_v56 = vld [vmem:[%s6583_s2 + $0x18] sm:$0xff] }
 0x16f   : > { %6788 = vst [vmem:[#allocation20_spill] sm:$0xff] %v4808_v30  ;;  %v4813_v18 = vpop.permute.xlu0 %3624  ;;  %v3602_v21 = vunpack.i.h.bf16 %v3600_v27  ;;  %v3601_v38 = vunpack.i.l.bf16 %v3600_v27  ;;  %v1484_v29 = vsel %vm1455_vm7, %v4693_v22, %v1093_v44  ;;  %1652 = vmatpush.msra.mxu0 %v441_v56  ;;  %3177 = vmatpush.msra.mxu2 %v441_v56  ;;  %v439_v22 = vld [vmem:[%s6583_s2 + $0x8] sm:$0xff] }
 0x170   : > { %6789 = vst [vmem:[#allocation12_spill] sm:$0xff] %v4811_v16 }
 0x171   : > { %v1464_v27 = vsel %vm1455_vm7, %v4702_v11, %v3601_v38  ;;  %v1465_v52 = vsel %vm1455_vm7, %v4705_v47, %v3602_v21  ;;  %v438_v11 = vld [vmem:[%s6583_s2] sm:$0xff]  ;;  %v3612_v21 = vunpack.i.h.bf16 %v4799_v43  ;;  %v3611_v38 = vunpack.i.l.bf16 %v4799_v43 }
 0x173   : > { %v4815_v62 = vpop.permute.xlu2 %3689 }
 0x174   : > { %v4817_v32 = vpop.permute.xlu1 %3644 }
 0x177   : > { %v4819_v15 = vpop.permute.xlu0 %3639 }
 0x17b   : > { %v3705_v57 = vpop.permute.xlu2 %3704 }
 0x17c   : > { %v3707_v8 = vunpack.i.h.bf16 %v3705_v57  ;;  %v3706_v20 = vunpack.i.l.bf16 %v3705_v57  ;;  %v4821_v50 = vpop.permute.xlu1 %3654 }
 0x17e   : > { %v4828_v45 = vsel %vm1485_vm8, %v1478_v1, %v3706_v20  ;;  %v4831_v10 = vsel %vm1485_vm8, %v1479_v46, %v3707_v8  ;;  %v440_v20 = vld [vmem:[%s6583_s2 + $0x10] sm:$0xff] }
 0x17f   : > { %6790 = vst [vmem:[#allocation22_spill] sm:$0xff] %v4828_v45  ;;  %v4833_v7 = vpop.permute.xlu0 %3649  ;;  %1653 = vmatpush.msra.mxu0 %v440_v20  ;;  %3178 = vmatpush.msra.mxu2 %v440_v20 }
 0x180   : > { %6791 = vst [vmem:[#allocation17_spill] sm:$0xff] %v4831_v10 }
 0x181   : > { %1654 = vmatpush.msra.mxu0 %v439_v22  ;;  %3179 = vmatpush.msra.mxu2 %v439_v22 }
 0x183   : > { %v1184_v57 = vpop.permute.xlu2 %1183  ;;  %1655 = vmatpush.msra.mxu0 %v438_v11  ;;  %3180 = vmatpush.msra.mxu2 %v438_v11 }
 0x184   : > { %v4847_v8 = vsel %vm1485_vm8, %v1484_v29, %v1184_v57  ;;  %v3670_v1 = vpop.permute.xlu1 %3669  ;;  %v1468_v57 = vsel %vm1455_vm7, %v4729_v51, %v3611_v38 }
 0x185   : > { %6792 = vst [vmem:[#allocation23_spill] sm:$0xff] %v4847_v8  ;;  %v3672_v46 = vunpack.i.h.bf16 %v3670_v1  ;;  %v3671_v16 = vunpack.i.l.bf16 %v3670_v1  ;;  %v1469_v1 = vsel %vm1455_vm7, %v4732_v9, %v3612_v21  ;;  %v3647_v9 = vunpack.i.h.bf16 %v4817_v32 }
 0x186   : > { %v3646_v21 = vunpack.i.l.bf16 %v4817_v32 }
 0x187   : > { %v4853_v10 = vpop.permute.xlu0 %3664  ;;  %v4859_v44 = vsel %vm1485_vm8, %v1464_v27, %v3671_v16  ;;  %v4862_v56 = vsel %vm1485_vm8, %v1465_v52, %v3672_v46  ;;  %v3632_v46 = vunpack.i.h.bf16 %v4801_v34 }
 0x188   : > { %6793 = vst [vmem:[#allocation24_spill] sm:$0xff] %v4859_v44  ;;  %v1482_v8 = vsel %vm1455_vm7, %v4770_v54, %v3646_v21 }
 0x189   : > { %6794 = vst [vmem:[#allocation42_spill] sm:$0xff] %v4862_v56  ;;  %v1477_v11 = vsel %vm1455_vm7, %v4744_v60, %v3632_v46  ;;  %v1483_v60 = vsel %vm1455_vm7, %v4773_v48, %v3647_v9  ;;  %v6798_v46 = vld [vmem:[#allocation36_spill] sm:$0xff]  ;;  %v3441_v9 = vunpack.i.l.bf16 %v4603_v63  ;;  %v6812_v56 = vld [vmem:[#allocation14_spill] sm:$0xff] }
 0x18c   : > { %v4867_v47 = vpop.permute.xlu1 %3684 }
 0x18f   : > { %v3680_v20 = vpop.permute.xlu0 %3679 }
 0x190   : > { %v3682_v16 = vunpack.i.h.bf16 %v3680_v20  ;;  %v3681_v29 = vunpack.i.l.bf16 %v3680_v20 }
 0x192   : > { %v4877_v27 = vsel %vm1485_vm8, %v1468_v57, %v3681_v29  ;;  %v4880_v52 = vsel %vm1485_vm8, %v1469_v1, %v3682_v16  ;;  %v3642_v16 = vunpack.i.h.bf16 %v4819_v15  ;;  %v3641_v29 = vunpack.i.l.bf16 %v4819_v15 }
 0x193   : > { %6795 = vst [vmem:[#allocation21_spill] sm:$0xff] %v4877_v27  ;;  %v6801_v27 = vld [vmem:[#allocation46_spill] sm:$0xff] }
 0x194   : > { %6796 = vst [vmem:[#allocation44_spill] sm:$0xff] %v4880_v52  ;;  %v4882_v22 = vpop.permute.xlu1 %3699  ;;  %v3301_v30 = vunpack.i.l.bf16 %v6801_v27  ;;  %v1480_v54 = vsel %vm1455_vm7, %v4781_v0, %v3641_v29  ;;  %v1481_v48 = vsel %vm1455_vm7, %v4784_v31, %v3642_v16  ;;  %v3581_v0 = vunpack.i.l.bf16 %v4791_v36 }
 0x195   : > { %v3702_v43 = vunpack.i.h.bf16 %v4882_v22  ;;  %v3651_v16 = vunpack.i.l.bf16 %v4833_v7 }
 0x197   : > { %v4887_v20 = vpop.permute.xlu0 %3694  ;;  %v4890_v51 = vsel %vm1485_vm8, %v1477_v11, %v3702_v43  ;;  %v3231_v43 = vunpack.i.l.bf16 %v6798_v46 }
 0x198   : > { %6797 = vst [vmem:[#allocation27_spill] sm:$0xff] %v4890_v51  ;;  %v3546_v51 = vunpack.i.l.bf16 %v4715_v61 }
 0x19c   : > { %v3715_v38 = vpop.permute.xlu1 %3714 }
 0x19d   : > { %v3717_v57 = vunpack.i.h.bf16 %v3715_v38  ;;  %v3716_v1 = vunpack.i.l.bf16 %v3715_v38  ;;  %v3371_v38 = vunpack.i.l.bf16 %v4470_v55 }
 0x19f   : > { %v3710_v11 = vpop.permute.xlu0 %3709  ;;  %v4902_v52 = vsel %vm1485_vm8, %v1482_v8, %v3716_v1  ;;  %v4905_v32 = vsel %vm1485_vm8, %v1483_v60, %v3717_v57  ;;  %v6804_v57 = vld [vmem:[#allocation6_spill] sm:$0xff]  ;;  %v3511_v60 = vunpack.i.l.bf16 %v4682_v6 }
 0x1a0   : > { %6799 = vst [vmem:[#allocation28_spill] sm:$0xff] %v4902_v52  ;;  %v3712_v15 = vunpack.i.h.bf16 %v3710_v11  ;;  %v3711_v45 = vunpack.i.l.bf16 %v3710_v11  ;;  %v1306_v1 = vsel %vm1305_vm2, %v6804_v57, %v3231_v43  ;;  %v3302_v43 = vunpack.i.h.bf16 %v6801_v27  ;;  %v6810_v52 = vld [vmem:[#allocation10_spill] sm:$0xff] }
 0x1a1   : > { %6800 = vst [vmem:[#allocation25_spill] sm:$0xff] %v4905_v32  ;;  %v1336_v11 = vsel %vm1335_vm3, %v1306_v1, %v3301_v30  ;;  %v3372_v1 = vunpack.i.h.bf16 %v4470_v55  ;;  %v3512_v27 = vunpack.i.h.bf16 %v4682_v6  ;;  %v3406_v6 = vunpack.i.l.bf16 %v4512_v40 }
 0x1a2   : > { %v4915_v8 = vsel %vm1485_vm8, %v1480_v54, %v3711_v45  ;;  %v4918_v21 = vsel %vm1485_vm8, %v1481_v48, %v3712_v15  ;;  %v1366_v31 = vsel %vm1365_vm4, %v1336_v11, %v3371_v38  ;;  %v3232_v15 = vunpack.i.h.bf16 %v6798_v46  ;;  %v6805_v11 = vld [vmem:[#allocation34_spill] sm:$0xff] }
 0x1a3   : > { %6802 = vst [vmem:[#allocation31_spill] sm:$0xff] %v4915_v8  ;;  %v1396_v45 = vsel %vm1395_vm5, %v1366_v31, %v3441_v9  ;;  %v3442_v38 = vunpack.i.h.bf16 %v4603_v63  ;;  %v3271_v46 = vunpack.i.l.bf16 %v6805_v11  ;;  %v6806_v31 = vld [vmem:[#allocation7_spill] sm:$0xff] }
 0x1a4   : > { %6803 = vst [vmem:[#allocation26_spill] sm:$0xff] %v4918_v21  ;;  %v4925_v29 = vpop.permute.xlu1 %3724  ;;  %v1426_v54 = vsel %vm1425_vm6, %v1396_v45, %v3511_v60  ;;  %v1307_v60 = vsel %vm1305_vm2, %v6806_v31, %v3232_v15  ;;  %v3652_v15 = vunpack.i.h.bf16 %v4833_v7  ;;  %v3476_v21 = vunpack.i.l.bf16 %v4621_v28 }
 0x1a5   : > { %v1456_v30 = vsel %vm1455_vm7, %v1426_v54, %v3581_v0  ;;  %v6807_v0 = vld [vmem:[#allocation40_spill] sm:$0xff]  ;;  %v1337_v55 = vsel %vm1335_vm3, %v1307_v60, %v3302_v43  ;;  %v4946_v54 = vpop.permute.xlu2 %3729  ;;  %v4957_v43 = vsel %vm1305_vm2, %v6810_v52, %v3271_v46  ;;  %v3376_v52 = vunpack.i.l.bf16 %v4458_v26 }
 0x1a6   : > { %v1486_v32 = vsel %vm1485_vm8, %v1456_v30, %v3651_v16  ;;  %v3266_v45 = vunpack.i.l.bf16 %v6807_v0  ;;  %v3582_v16 = vunpack.i.h.bf16 %v4791_v36  ;;  %v1367_v30 = vsel %vm1365_vm4, %v1337_v55, %v3372_v1  ;;  %v6811_v36 = vld [vmem:[#allocation38_spill] sm:$0xff]  ;;  %v6813_v55 = vld [vmem:[#allocation45_spill] sm:$0xff] }
 0x1a7   : > { %v3720_v48 = vpop.permute.xlu0 %3719  ;;  %v3236_v60 = vunpack.i.l.bf16 %v6811_v36  ;;  %v3306_v7 = vunpack.i.l.bf16 %v6813_v55  ;;  %v3616_v46 = vunpack.i.l.bf16 %v4797_v5 }
 0x1a8   : > { %v3721_v57 = vunpack.i.l.bf16 %v3720_v48  ;;  %v3722_v31 = vunpack.i.h.bf16 %v3720_v48  ;;  %v1320_v1 = vsel %vm1305_vm2, %v6812_v56, %v3266_v45  ;;  %v3686_v56 = vunpack.i.l.bf16 %v4867_v47 }
 0x1aa   : > { %v1516_v9 = vsel %vm1515_vm11, %v1486_v32, %v3721_v57  ;;  %v6809_v32 = vld [vmem:[#allocation49_spill] sm:$0xff] }
 0x1ab   : > { %3039 = vmatmul.msk.f32.vlgmr.msra.gmra.mxu0 %vm1548_vm10, %v1516_v9  ;;  %v3336_v57 = vunpack.i.l.bf16 %v6809_v32  ;;  %v1397_v9 = vsel %vm1395_vm5, %v1367_v30, %v3442_v38 }
 0x1ac   : > { %v4948_v63 = vpop.permute.xlu1 %3739  ;;  %v1427_v8 = vsel %vm1425_vm6, %v1397_v9, %v3512_v27  ;;  %v3446_v27 = vunpack.i.l.bf16 %v4599_v13  ;;  %v6814_v9 = vld [vmem:[#allocation8_spill] sm:$0xff] }
 0x1ad   : > { %6808 = vst [vmem:[#allocation33_spill] sm:$0xff] %v4948_v63  ;;  %v1457_v38 = vsel %vm1455_vm7, %v1427_v8, %v3582_v16  ;;  %v1350_v48 = vsel %vm1335_vm3, %v1320_v1, %v3336_v57  ;;  %v1308_v63 = vsel %vm1305_vm2, %v6814_v9, %v3236_v60  ;;  %v3267_v8 = vunpack.i.h.bf16 %v6807_v0 }
 0x1ae   : > { %v1487_v30 = vsel %vm1485_vm8, %v1457_v38, %v3652_v15  ;;  %v1380_v44 = vsel %vm1365_vm4, %v1350_v48, %v3406_v6  ;;  %v3516_v57 = vunpack.i.l.bf16 %v4668_v33  ;;  %v1338_v15 = vsel %vm1335_vm3, %v1308_v63, %v3306_v7 }
 0x1af   : > { %v1517_v45 = vsel %vm1515_vm11, %v1487_v30, %v3722_v31  ;;  %v1410_v16 = vsel %vm1395_vm5, %v1380_v44, %v3476_v21  ;;  %v3337_v6 = vunpack.i.h.bf16 %v6809_v32  ;;  %v3586_v38 = vunpack.i.l.bf16 %v4787_v4 }
 0x1b0   : > { %v1440_v1 = vsel %vm1425_vm6, %v1410_v16, %v3546_v51  ;;  %v1368_v48 = vsel %vm1365_vm4, %v1338_v15, %v3376_v52  ;;  %v3656_v60 = vunpack.i.l.bf16 %v4821_v50  ;;  %v3407_v21 = vunpack.i.h.bf16 %v4512_v40  ;;  %v6815_v16 = vld [vmem:[#allocation15_spill] sm:$0xff] }
 0x1b1   : > { %v1470_v44 = vsel %vm1455_vm7, %v1440_v1, %v3616_v46  ;;  %v1398_v30 = vsel %vm1395_vm5, %v1368_v48, %v3446_v27  ;;  %v3726_v63 = vunpack.i.l.bf16 %v4925_v29  ;;  %v3237_v32 = vunpack.i.h.bf16 %v6811_v36  ;;  %v6816_v48 = vld [vmem:[#allocation9_spill] sm:$0xff] }
 0x1b2   : > { %v1500_v51 = vsel %vm1485_vm8, %v1470_v44, %v3686_v56  ;;  %v3477_v7 = vunpack.i.h.bf16 %v4621_v28  ;;  %v1428_v52 = vsel %vm1425_vm6, %v1398_v30, %v3516_v57  ;;  %v1321_v46 = vsel %vm1305_vm2, %v6815_v16, %v3267_v8  ;;  %v6818_v30 = vld [vmem:[#allocation43_spill] sm:$0xff] }
 0x1b3   : > { %3040 = vmatmul.msk.f32.gmra.mxu0 %vm1548_vm10, %v1517_v45  ;;  %v4990_v45 = vpop.permute.xlu2 %3744  ;;  %v3307_v40 = vunpack.i.h.bf16 %v6813_v55  ;;  %v3547_v27 = vunpack.i.h.bf16 %v4715_v61  ;;  %v1458_v15 = vsel %vm1455_vm7, %v1428_v52, %v3586_v38  ;;  %v1351_v56 = vsel %vm1335_vm3, %v1321_v46, %v3337_v6 }
 0x1b4   : > { %v3755_v31 = vpop.permute.xlu1 %3754  ;;  %v3377_v36 = vunpack.i.h.bf16 %v4458_v26  ;;  %v3617_v28 = vunpack.i.h.bf16 %v4797_v5  ;;  %v1488_v57 = vsel %vm1485_vm8, %v1458_v15, %v3656_v60  ;;  %v1381_v1 = vsel %vm1365_vm4, %v1351_v56, %v3407_v21  ;;  %v6817_v5 = vld [vmem:[#allocation35_spill] sm:$0xff]  ;;  %v5021_v21 = vpop.permute.xlu0 %3734  ;;  %v6820_v15 = vld [vmem:[#allocation2_spill] sm:$0xff] }
 0x1b5   : > { %v3756_v0 = vunpack.i.l.bf16 %v3755_v31  ;;  %v3447_v8 = vunpack.i.h.bf16 %v4599_v13  ;;  %v3687_v55 = vunpack.i.h.bf16 %v4867_v47  ;;  %v1518_v61 = vsel %vm1515_vm11, %v1488_v57, %v3726_v63  ;;  %v6821_v56 = vld [vmem:[#allocation39_spill] sm:$0xff] }
 0x1b6   : > { %v1309_v38 = vsel %vm1305_vm2, %v6816_v48, %v3237_v32  ;;  %v3517_v6 = vunpack.i.h.bf16 %v4668_v33  ;;  %v3757_v26 = vunpack.i.h.bf16 %v3755_v31  ;;  %v3241_v60 = vunpack.i.l.bf16 %v6817_v5  ;;  %v6819_v31 = vld [vmem:[#allocation30_spill] sm:$0xff] }
 0x1b7   : > { %v1530_v9 = vsel %vm1515_vm11, %v1500_v51, %v3756_v0  ;;  %v1411_v0 = vsel %vm1395_vm5, %v1381_v1, %v3477_v7  ;;  %v1339_v44 = vsel %vm1335_vm3, %v1309_v38, %v3307_v40  ;;  %v3587_v47 = vunpack.i.h.bf16 %v4787_v4  ;;  %v6822_v1 = vld [vmem:[#allocation48_spill] sm:$0xff] }
 0x1b8   : > { %3053 = vmatmul.msk.f32.vlgmr.msra.gmra.mxu2 %vm1548_vm10, %v1530_v9  ;;  %v1441_v13 = vsel %vm1425_vm6, %v1411_v0, %v3547_v27  ;;  %v3341_v63 = vunpack.i.l.bf16 %v6818_v30  ;;  %v1369_v51 = vsel %vm1365_vm4, %v1339_v44, %v3377_v36  ;;  %v3657_v32 = vunpack.i.h.bf16 %v4821_v50 }
 0x1b9   : > { %v1471_v33 = vsel %vm1455_vm7, %v1441_v13, %v3617_v28  ;;  %v3411_v7 = vunpack.i.l.bf16 %v6819_v31  ;;  %v1399_v52 = vsel %vm1395_vm5, %v1369_v51, %v3447_v8  ;;  %v3727_v9 = vunpack.i.h.bf16 %v4925_v29 }
 0x1ba   : > { %v1501_v16 = vsel %vm1485_vm8, %v1471_v33, %v3687_v55  ;;  %v3272_v4 = vunpack.i.h.bf16 %v6805_v11  ;;  %v3481_v46 = vunpack.i.l.bf16 %v4562_v2  ;;  %v1429_v40 = vsel %vm1425_vm6, %v1399_v52, %v3517_v6 }
 0x1bb   : > { %3041 = vmatmul.msk.f32.gmra.mxu0 %vm1548_vm10, %v1518_v61  ;;  %v1531_v27 = vsel %vm1515_vm11, %v1501_v16, %v3757_v26  ;;  %v1310_v50 = vsel %vm1305_vm2, %v6820_v15, %v3241_v60  ;;  %v3311_v36 = vunpack.i.l.bf16 %v6821_v56  ;;  %v3551_v28 = vunpack.i.l.bf16 %v4655_v25  ;;  %v5039_v57 = vpop.permute.xlu2 %3759  ;;  %v6823_v26 = vld [vmem:[#allocation11_spill] sm:$0xff] }
 0x1bc   : > { %v1459_v29 = vsel %vm1455_vm7, %v1429_v40, %v3587_v47  ;;  %v1352_v11 = vsel %vm1335_vm3, %v4957_v43, %v3341_v63  ;;  %v3381_v8 = vunpack.i.l.bf16 %v6822_v1  ;;  %v3621_v55 = vunpack.i.l.bf16 %v4756_v37 }
 0x1bd   : > { %v1489_v61 = vsel %vm1485_vm8, %v1459_v29, %v3657_v32  ;;  %v1382_v48 = vsel %vm1365_vm4, %v1352_v11, %v3411_v7  ;;  %v3451_v38 = vunpack.i.l.bf16 %v4508_v3  ;;  %v3691_v0 = vunpack.i.l.bf16 %v4815_v62 }
 0x1be   : > { %v1519_v6 = vsel %vm1515_vm11, %v1489_v61, %v3727_v9  ;;  %v1323_v60 = vsel %vm1305_vm2, %v6823_v26, %v3272_v4  ;;  %v1412_v44 = vsel %vm1395_vm5, %v1382_v48, %v3481_v46  ;;  %v3521_v43 = vunpack.i.l.bf16 %v4619_v39  ;;  %v5069_v46 = vpop.permute.xlu0 %3749 }
 0x1bf   : > { %v3761_v13 = vunpack.i.l.bf16 %v5039_v57  ;;  %v3242_v47 = vunpack.i.h.bf16 %v6817_v5  ;;  %v1340_v63 = vsel %vm1335_vm3, %v1310_v50, %v3311_v36  ;;  %v1442_v51 = vsel %vm1425_vm6, %v1412_v44, %v3551_v28  ;;  %v6824_v50 = vld [vmem:[#allocation3_spill] sm:$0xff]  ;;  %v6826_v44 = vld [vmem:[#allocation29_spill] sm:$0xff] }
 0x1c0   : > { %3054 = vmatmul.msk.f32.gmra.mxu2 %vm1548_vm10, %v1531_v27  ;;  %v3591_v32 = vunpack.i.l.bf16 %v4713_v35  ;;  %v3342_v33 = vunpack.i.h.bf16 %v6818_v30  ;;  %v1370_v7 = vsel %vm1365_vm4, %v1340_v63, %v3381_v8  ;;  %v3661_v52 = vunpack.i.l.bf16 %v4795_v23 }
 0x1c1   : > { %v1472_v9 = vsel %vm1455_vm7, %v1442_v51, %v3621_v55  ;;  %v3412_v16 = vunpack.i.h.bf16 %v6819_v31  ;;  %v1400_v4 = vsel %vm1395_vm5, %v1370_v7, %v3451_v38  ;;  %v3731_v5 = vunpack.i.l.bf16 %v4946_v54 }
 0x1c2   : > { %v1502_v40 = vsel %vm1485_vm8, %v1472_v9, %v3691_v0  ;;  %v3482_v27 = vunpack.i.h.bf16 %v4562_v2  ;;  %v1430_v30 = vsel %vm1425_vm6, %v1400_v4, %v3521_v43  ;;  %v1311_v36 = vsel %vm1305_vm2, %v6824_v50, %v3242_v47  ;;  %v6828_v9 = vld [vmem:[#allocation13_spill] sm:$0xff] }
 0x1c3   : > { %3042 = vmatmul.msk.f32.gmra.mxu0 %vm1548_vm10, %v1519_v6  ;;  %v1532_v15 = vsel %vm1515_vm11, %v1502_v40, %v3761_v13  ;;  %v3312_v28 = vunpack.i.h.bf16 %v6821_v56  ;;  %v3552_v31 = vunpack.i.h.bf16 %v4655_v25  ;;  %v1460_v29 = vsel %vm1455_vm7, %v1430_v30, %v3591_v32  ;;  %v6827_v32 = vld [vmem:[#allocation37_spill] sm:$0xff] }
 0x1c4   : > { %v1353_v11 = vsel %vm1335_vm3, %v1323_v60, %v3342_v33  ;;  %v3382_v8 = vunpack.i.h.bf16 %v6822_v1  ;;  %v3622_v2 = vunpack.i.h.bf16 %v4756_v37  ;;  %v1490_v55 = vsel %vm1485_vm8, %v1460_v29, %v3661_v52  ;;  %v6825_v1 = vld [vmem:[#allocation41_spill] sm:$0xff] }
 0x1c5   : > { %v1383_v61 = vsel %vm1365_vm4, %v1353_v11, %v3412_v16  ;;  %v3452_v48 = vunpack.i.h.bf16 %v4508_v3  ;;  %v3692_v56 = vunpack.i.h.bf16 %v4815_v62  ;;  %v1520_v25 = vsel %vm1515_vm11, %v1490_v55, %v3731_v5  ;;  %v6829_v16 = vld [vmem:[#allocation47_spill] sm:$0xff]  ;;  %v6830_v11 = vld [vmem:[#allocation4_spill] sm:$0xff] }
 0x1c6   : > { %v1413_v38 = vsel %vm1395_vm5, %v1383_v61, %v3482_v27  ;;  %v3522_v0 = vunpack.i.h.bf16 %v4619_v39  ;;  %v3762_v6 = vunpack.i.h.bf16 %v5039_v57  ;;  %v1341_v37 = vsel %vm1335_vm3, %v1311_v36, %v3312_v28  ;;  %v5113_v40 = vpop.permute.xlu0 %3764 }
 0x1c7   : > { %v3276_v26 = vunpack.i.l.bf16 %v6825_v1  ;;  %v1443_v60 = vsel %vm1425_vm6, %v1413_v38, %v3552_v31  ;;  %v3592_v3 = vunpack.i.h.bf16 %v4713_v35  ;;  %v1371_v62 = vsel %vm1365_vm4, %v1341_v37, %v3382_v8 }
 0x1c8   : > { %3055 = vmatmul.msk.f32.gmra.mxu2 %vm1548_vm10, %v1532_v15  ;;  %v3346_v43 = vunpack.i.l.bf16 %v6826_v44  ;;  %v3662_v13 = vunpack.i.h.bf16 %v4795_v23  ;;  %v1473_v39 = vsel %vm1455_vm7, %v1443_v60, %v3622_v2  ;;  %v1401_v57 = vsel %vm1395_vm5, %v1371_v62, %v3452_v48 }
 0x1c9   : > { %v3416_v47 = vunpack.i.l.bf16 %v4549_v53  ;;  %v3732_v63 = vunpack.i.h.bf16 %v4946_v54  ;;  %v1503_v51 = vsel %vm1485_vm8, %v1473_v39, %v3692_v56  ;;  %v3246_v33 = vunpack.i.l.bf16 %v6827_v32 }
 0x1ca   : > { %v1431_v35 = vsel %vm1425_vm6, %v1401_v57, %v3522_v0  ;;  %v3486_v7 = vunpack.i.l.bf16 %v4647_v59  ;;  %v1533_v52 = vsel %vm1515_vm11, %v1503_v51, %v3762_v6  ;;  %v1324_v23 = vsel %vm1305_vm2, %v6828_v9, %v3276_v26  ;;  %v6831_v57 = vld [vmem:[#allocation19_spill] sm:$0xff] }
 0x1cb   : > { %3043 = vmatmul.msk.f32.gmra.mxu0 %vm1548_vm10, %v1520_v25  ;;  %v3316_v4 = vunpack.i.l.bf16 %v6829_v16  ;;  %v3556_v5 = vunpack.i.l.bf16 %v4746_v19  ;;  %v1461_v54 = vsel %vm1455_vm7, %v1431_v35, %v3592_v3  ;;  %v1354_v27 = vsel %vm1335_vm3, %v1324_v23, %v3346_v43  ;;  %v6832_v23 = vld [vmem:[#allocation5_spill] sm:$0xff] }
 0x1cc   : > { %v3386_v30 = vunpack.i.l.bf16 %v4502_v24  ;;  %v3626_v15 = vunpack.i.l.bf16 %v4813_v18  ;;  %v1491_v50 = vsel %vm1485_vm8, %v1461_v54, %v3662_v13  ;;  %v1384_v36 = vsel %vm1365_vm4, %v1354_v27, %v3416_v47 }
 0x1cd   : > { %v3456_v28 = vunpack.i.l.bf16 %v4613_v49  ;;  %v3696_v31 = vunpack.i.l.bf16 %v4887_v20  ;;  %v1521_v29 = vsel %vm1515_vm11, %v1491_v50, %v3732_v63  ;;  %v1312_v8 = vsel %vm1305_vm2, %v6830_v11, %v3246_v33 }
 0x1ce   : > { %v1414_v2 = vsel %vm1395_vm5, %v1384_v36, %v3486_v7  ;;  %v3526_v55 = vunpack.i.l.bf16 %v4707_v17  ;;  %v3766_v61 = vunpack.i.l.bf16 %v5113_v40  ;;  %v3277_v48 = vunpack.i.h.bf16 %v6825_v1 }
 0x1cf   : > { %v1342_v56 = vsel %vm1335_vm3, %v1312_v8, %v3316_v4  ;;  %v1444_v25 = vsel %vm1425_vm6, %v1414_v2, %v3556_v5  ;;  %v3596_v38 = vunpack.i.l.bf16 %v4793_v12  ;;  %v3347_v0 = vunpack.i.h.bf16 %v6826_v44  ;;  %v3770_v8 = vpop.permute.xlu1 %3769 }
 0x1d0   : > { %3056 = vmatmul.msk.f32.gmra.mxu2 %vm1548_vm10, %v1533_v52  ;;  %v1372_v6 = vsel %vm1365_vm4, %v1342_v56, %v3386_v30  ;;  %v3666_v37 = vunpack.i.l.bf16 %v4853_v10  ;;  %v1474_v26 = vsel %vm1455_vm7, %v1444_v25, %v3626_v15  ;;  %v3417_v60 = vunpack.i.h.bf16 %v4549_v53 }
 0x1d1   : > { %v1402_v3 = vsel %vm1395_vm5, %v1372_v6, %v3456_v28  ;;  %v3736_v1 = vunpack.i.l.bf16 %v5021_v21  ;;  %v1504_v62 = vsel %vm1485_vm8, %v1474_v26, %v3696_v31  ;;  %v3247_v43 = vunpack.i.h.bf16 %v6827_v32  ;;  %v6833_v31 = vld [vmem:[#allocation16_spill] sm:$0xff]  ;;  %v6835_v6 = vld [vmem:[#allocation33_spill] sm:$0xff] }
 0x1d2   : > { %v3487_v13 = vunpack.i.h.bf16 %v4647_v59  ;;  %v1432_v44 = vsel %vm1425_vm6, %v1402_v3, %v3526_v55  ;;  %v1534_v39 = vsel %vm1515_vm11, %v1504_v62, %v3766_v61  ;;  %v1325_v47 = vsel %vm1305_vm2, %v6831_v57, %v3277_v48  ;;  %v6837_v62 = vld [vmem:[#allocation27_spill] sm:$0xff] }
 0x1d3   : > { %3044 = vmatmul.msk.f32.gmra.mxu0 %vm1548_vm10, %v1521_v29  ;;  %v3317_v63 = vunpack.i.h.bf16 %v6829_v16  ;;  %v3557_v53 = vunpack.i.h.bf16 %v4746_v19  ;;  %v1462_v51 = vsel %vm1455_vm7, %v1432_v44, %v3596_v38  ;;  %v1355_v33 = vsel %vm1335_vm3, %v1325_v47, %v3347_v0  ;;  %v6838_v44 = vld [vmem:[#allocation42_spill] sm:$0xff] }
 0x1d4   : > { %v3387_v32 = vunpack.i.h.bf16 %v4502_v24  ;;  %v3627_v59 = vunpack.i.h.bf16 %v4813_v18  ;;  %v1492_v35 = vsel %vm1485_vm8, %v1462_v51, %v3666_v37  ;;  %v1385_v7 = vsel %vm1365_vm4, %v1355_v33, %v3417_v60  ;;  %v6840_v51 = vld [vmem:[#allocation20_spill] sm:$0xff] }
 0x1d5   : > { %v3457_v52 = vunpack.i.h.bf16 %v4613_v49  ;;  %v3697_v9 = vunpack.i.h.bf16 %v4887_v20  ;;  %v1522_v19 = vsel %vm1515_vm11, %v1492_v35, %v3736_v1  ;;  %v1313_v16 = vsel %vm1305_vm2, %v6832_v23, %v3247_v43  ;;  %v6841_v35 = vld [vmem:[#allocation17_spill] sm:$0xff] }
 0x1d6   : > { %v1415_v4 = vsel %vm1395_vm5, %v1385_v7, %v3487_v13  ;;  %v3527_v5 = vunpack.i.h.bf16 %v4707_v17  ;;  %v3767_v24 = vunpack.i.h.bf16 %v5113_v40  ;;  %v3281_v18 = vunpack.i.l.bf16 %v4336_v58  ;;  %v3775_v13 = vpop.permute.xlu2 %3774 }
 0x1d7   : > { %v1343_v54 = vsel %vm1335_vm3, %v1313_v16, %v3317_v63  ;;  %v1445_v49 = vsel %vm1425_vm6, %v1415_v4, %v3557_v53  ;;  %v3597_v20 = vunpack.i.h.bf16 %v4793_v12  ;;  %v3351_v27 = vunpack.i.l.bf16 %v4410_v41  ;;  %v6839_v63 = vld [vmem:[#allocation22_spill] sm:$0xff]  ;;  %v6843_v4 = vld [vmem:[#allocation31_spill] sm:$0xff] }
 0x1d8   : > { %3057 = vmatmul.msk.f32.gmra.mxu2 %vm1548_vm10, %v1534_v39  ;;  %v1373_v30 = vsel %vm1365_vm4, %v1343_v54, %v3387_v32  ;;  %v3667_v15 = vunpack.i.h.bf16 %v4853_v10  ;;  %v1475_v17 = vsel %vm1455_vm7, %v1445_v49, %v3627_v59  ;;  %v3421_v40 = vunpack.i.l.bf16 %v4538_v42  ;;  %v6834_v10 = vld [vmem:[#allocation18_spill] sm:$0xff] }
 0x1d9   : > { %v1403_v50 = vsel %vm1395_vm5, %v1373_v30, %v3457_v52  ;;  %v3737_v58 = vunpack.i.h.bf16 %v5021_v21  ;;  %v1505_v36 = vsel %vm1485_vm8, %v1475_v17, %v3697_v9  ;;  %v3491_v28 = vunpack.i.l.bf16 %v4633_v14  ;;  %v3780_v52 = vpop.permute.xlu0 %3779  ;;  %v6842_v9 = vld [vmem:[#allocation12_spill] sm:$0xff]  ;;  %v6845_v49 = vld [vmem:[#allocation26_spill] sm:$0xff] }
 0x1da   : > { %v1433_v12 = vsel %vm1425_vm6, %v1403_v50, %v3527_v5  ;;  %v1535_v41 = vsel %vm1515_vm11, %v1505_v36, %v3767_v24  ;;  %v1326_v29 = vsel %vm1305_vm2, %v6833_v31, %v3281_v18  ;;  %v3561_v11 = vunpack.i.l.bf16 %v6834_v10  ;;  %v6846_v30 = vld [vmem:[#allocation44_spill] sm:$0xff]  ;;  %v6848_v36 = vld [vmem:[#allocation25_spill] sm:$0xff] }
 0x1db   : > { %3045 = vmatmul.msk.f32.gmra.mxu0 %vm1548_vm10, %v1522_v19  ;;  %v1463_v42 = vsel %vm1455_vm7, %v1433_v12, %v3597_v20  ;;  %v1356_v21 = vsel %vm1335_vm3, %v1326_v29, %v3351_v27  ;;  %v3631_v2 = vunpack.i.l.bf16 %v4801_v34  ;;  %v3701_v61 = vunpack.i.l.bf16 %v4882_v22  ;;  %v6836_v22 = vld [vmem:[#allocation24_spill] sm:$0xff]  ;;  %v3785_v27 = vpop.permute.xlu1 %3784  ;;  %v6849_v12 = vld [vmem:[#allocation23_spill] sm:$0xff]  ;;  %v5251_v29 = vld [vmem:[%s6584_s3] ss:$0 sm:$0xff] }
 0x1dc   : > { %v1493_v14 = vsel %vm1485_vm8, %v1463_v42, %v3667_v15  ;;  %v1386_v55 = vsel %vm1365_vm4, %v1356_v21, %v3421_v40  ;;  %v3771_v25 = vunpack.i.l.bf16 %v3770_v8  ;;  %v3741_v37 = vunpack.i.l.bf16 %v6835_v6  ;;  %v6847_v40 = vld [vmem:[#allocation28_spill] sm:$0xff] }
 0x1dd   : > { %v1523_v48 = vsel %vm1515_vm11, %v1493_v14, %v3737_v58  ;;  %v1416_v56 = vsel %vm1395_vm5, %v1386_v55, %v3491_v28  ;;  %v3772_v3 = vunpack.i.h.bf16 %v3770_v8  ;;  %v3742_v1 = vunpack.i.h.bf16 %v6835_v6 }
 0x1de   : > { %v1446_v38 = vsel %vm1425_vm6, %v1416_v56, %v3561_v11  ;;  %v1524_v60 = vsel %vm1515_vm11, %v6836_v22, %v3741_v37  ;;  %v3776_v57 = vunpack.i.l.bf16 %v3775_v13  ;;  %v3746_v47 = vunpack.i.l.bf16 %v4990_v45  ;;  %v1275_v28 = vpop.permute.xlu2 %1274 }
 0x1df   : > { %v1476_v0 = vsel %vm1455_vm7, %v1446_v38, %v3631_v2  ;;  %v1537_v43 = vsel %vm1515_vm11, %v6837_v62, %v3772_v3  ;;  %v1525_v39 = vsel %vm1515_vm11, %v6838_v44, %v3742_v1  ;;  %v3777_v32 = vunpack.i.h.bf16 %v3775_v13 }
 0x1e0   : > { %3058 = vmatmul.msk.f32.gmra.mxu2 %vm1548_vm10, %v1535_v41  ;;  %v1506_v34 = vsel %vm1485_vm8, %v1476_v0, %v3701_v61  ;;  %v1538_v53 = vsel %vm1515_vm11, %v6839_v63, %v3776_v57  ;;  %v1526_v33 = vsel %vm1515_vm11, %v6840_v51, %v3746_v47  ;;  %v3747_v59 = vunpack.i.h.bf16 %v4990_v45  ;;  %v6844_v45 = vld [vmem:[#allocation21_spill] sm:$0xff] }
 0x1e1   : > { %v1536_v26 = vsel %vm1515_vm11, %v1506_v34, %v3771_v25  ;;  %v1539_v7 = vsel %vm1515_vm11, %v6841_v35, %v3777_v32  ;;  %v3781_v23 = vunpack.i.l.bf16 %v3780_v52  ;;  %v3751_v16 = vunpack.i.l.bf16 %v5069_v46 }
 0x1e2   : > { %v1527_v19 = vsel %vm1515_vm11, %v6842_v9, %v3747_v59  ;;  %v3782_v18 = vunpack.i.h.bf16 %v3780_v52  ;;  %v3752_v54 = vunpack.i.h.bf16 %v5069_v46  ;;  %v3786_v17 = vunpack.i.l.bf16 %v3785_v27 }
 0x1e3   : > { %3046 = vmatmul.msk.f32.gmra.mxu0 %vm1548_vm10, %v1523_v48  ;;  %v1540_v5 = vsel %vm1515_vm11, %v6843_v4, %v3781_v23  ;;  %v1528_v24 = vsel %vm1515_vm11, %v6844_v45, %v3751_v16  ;;  %v3787_v58 = vunpack.i.h.bf16 %v3785_v27  ;;  %v1544_v41 = vsel %vm1515_vm11, %v6849_v12, %v1275_v28 }
 0x1e4   : > { %v1541_v20 = vsel %vm1515_vm11, %v6845_v49, %v3782_v18  ;;  %v1529_v15 = vsel %vm1515_vm11, %v6846_v30, %v3752_v54  ;;  %v1542_v50 = vsel %vm1515_vm11, %v6847_v40, %v3786_v17  ;;  %vm2701_vm2 = vcmask 588800  }
 0x1e5   : > { %v1543_v46 = vsel %vm1515_vm11, %v6848_v36, %v3787_v58 }
 0x1e8   : > { %3059 = vmatmul.msk.f32.gmra.mxu2 %vm1548_vm10, %v1536_v26 }
 0x1eb   : > { %3047 = vmatmul.msk.f32.gmra.mxu0 %vm1548_vm10, %v1524_v60 }
 0x1f0   : > { %3060 = vmatmul.msk.f32.gmra.mxu2 %vm1548_vm10, %v1537_v43 }
 0x1f3   : > { %3048 = vmatmul.msk.f32.gmra.mxu0 %vm1548_vm10, %v1525_v39 }
 0x1f8   : > { %3061 = vmatmul.msk.f32.gmra.mxu2 %vm1548_vm10, %v1538_v53 }
 0x1fb   : > { %3049 = vmatmul.msk.f32.gmra.mxu0 %vm1548_vm10, %v1526_v33 }
 0x200   : > { %3062 = vmatmul.msk.f32.gmra.mxu2 %vm1548_vm10, %v1539_v7 }
 0x203   : > { %3050 = vmatmul.msk.f32.gmra.mxu0 %vm1548_vm10, %v1527_v19 }
 0x208   : > { %3063 = vmatmul.msk.f32.gmra.mxu2 %vm1548_vm10, %v1540_v5 }
 0x20b   : > { %3051 = vmatmul.msk.f32.gmra.mxu0 %vm1548_vm10, %v1528_v24 }
 0x210   : > { %3064 = vmatmul.msk.f32.gmra.mxu2 %vm1548_vm10, %v1541_v20 }
 0x213   : > { %3052 = vmatmul.msk.f32.gmra.mxu0 %vm1548_vm10, %v1529_v15 }
 0x218   : > { %3065 = vmatmul.msk.f32.gmra.mxu2 %vm1548_vm10, %v1542_v50 }
 0x220   : > { %3066 = vmatmul.msk.f32.gmra.mxu2 %vm1548_vm10, %v1543_v46 }
 0x228   : > { %v1657_v31 = vpop.f32.mrf.mxu0  ;;  %3067 = vmatmul.msk.f32.gmra.mxu2 %vm1548_vm10, %v1544_v41 }
 0x229   : > { %v1658_v10 = vadd.f32 %v5251_v29, %v1657_v31 }
 0x22b   : > { %v5254_v8 = vmax.f32 %v1658_v10, 0.0 }
 0x22d   : > { %6850 = vst [vmem:[#allocation32_spill] sm:$0xff] %v5254_v8  ;;  %v1808_v2 = vrot.slane %v5254_v8, 1 }
 0x230   : > { %v1660_v11 = vpop.f32.mrf.mxu0 }
 0x231   : > { %v1661_v42 = vadd.f32 %v5251_v29, %v1660_v11 }
 0x233   : > { %v5257_v21 = vmax.f32 %v1661_v42, 0.0 }
 0x235   : > { %6851 = vst [vmem:[#allocation36_spill] sm:$0xff] %v5257_v21  ;;  %v1809_v14 = vrot.slane %v5257_v21, 1 }
 0x237   : > { %v1810_v55 = vsel %vm473_vm0, %v1808_v2, %v1809_v14 }
 0x238   : > { %v1663_v61 = vpop.f32.mrf.mxu0  ;;  %1857 = vrot.lane.b32.xlu0 %v1810_v55, %s3816_s10 }
 0x239   : > { %v1664_v48 = vadd.f32 %v5251_v29, %v1663_v61 }
 0x23b   : > { %v5264_v56 = vmax.f32 %v1664_v48, 0.0  ;;  %v1699_v25 = vpop.f32.mrf.mxu2 }
 0x23c   : > { %v1700_v12 = vadd.f32 %v5251_v29, %v1699_v25 }
 0x23d   : > { %v1811_v38 = vrot.slane %v5264_v56, 1 }
 0x23f   : > { %v1812_v0 = vsel %vm473_vm0, %v1809_v14, %v1811_v38  ;;  %v5349_v14 = vmax.f32 %v1700_v12, 0.0 }
 0x240   : > { %v1666_v6 = vpop.f32.mrf.mxu0  ;;  %1859 = vrot.lane.b32.xlu1 %v1812_v0, %s3816_s10 }
 0x241   : > { %v1667_v37 = vadd.f32 %v5251_v29, %v1666_v6  ;;  %v1835_v0 = vrot.slane %v5349_v14, 1 }
 0x243   : > { %v5270_v34 = vmax.f32 %v1667_v37, 0.0  ;;  %v1702_v26 = vpop.f32.mrf.mxu2 }
 0x244   : > { %v1703_v58 = vadd.f32 %v5251_v29, %v1702_v26 }
 0x245   : > { %v1813_v22 = vrot.slane %v5270_v34, 1 }
 0x246   : > { %v5337_v10 = vmax.f32 %v1703_v58, 0.0 }
 0x247   : > { %v5274_v60 = vsel %vm473_vm0, %v1811_v38, %v1813_v22 }
 0x248   : > { %v1669_v3 = vpop.f32.mrf.mxu0  ;;  %1861 = vrot.lane.b32.xlu2 %v5274_v60, %s3816_s10  ;;  %6855 = vst [vmem:[#allocation7_spill] sm:$0xff] %v5337_v10  ;;  %v1837_v25 = vrot.slane %v5337_v10, 1 }
 0x249   : > { %v1670_v1 = vadd.f32 %v5251_v29, %v1669_v3 }
 0x24a   : > { %v5361_v26 = vsel %vm473_vm0, %v1835_v0, %v1837_v25 }
 0x24b   : > { %v5279_v62 = vmax.f32 %v1670_v1, 0.0  ;;  %v1705_v43 = vpop.f32.mrf.mxu2  ;;  %6859 = vst [vmem:[#allocation38_spill] sm:$0xff] %v5361_v26 }
 0x24c   : > { %v1706_v20 = vadd.f32 %v5251_v29, %v1705_v43 }
 0x24d   : > { %v1815_v13 = vrot.slane %v5279_v62, 1 }
 0x24e   : > { %v5327_v40 = vmax.f32 %v1706_v20, 0.0 }
 0x24f   : > { %v5283_v44 = vsel %vm473_vm0, %v1813_v22, %v1815_v13 }
 0x250   : > { %v1672_v39 = vpop.f32.mrf.mxu0  ;;  %1863 = vrot.lane.b32.xlu0 %v5283_v44, %s3816_s10  ;;  %6853 = vst [vmem:[#allocation6_spill] sm:$0xff] %v5327_v40  ;;  %v1839_v31 = vrot.slane %v5327_v40, 1 }
 0x251   : > { %v1673_v57 = vadd.f32 %v5251_v29, %v1672_v39 }
 0x253   : > { %v5288_v47 = vmax.f32 %v1673_v57, 0.0  ;;  %v1708_v63 = vpop.f32.mrf.mxu2 }
 0x254   : > { %v1709_v18 = vadd.f32 %v5251_v29, %v1708_v63 }
 0x255   : > { %v1817_v53 = vrot.slane %v5288_v47, 1 }
 0x256   : > { %v5320_v30 = vmax.f32 %v1709_v18, 0.0 }
 0x257   : > { %v5292_v51 = vsel %vm473_vm0, %v1815_v13, %v1817_v53 }
 0x258   : > { %v1675_v33 = vpop.f32.mrf.mxu0  ;;  %1865 = vrot.lane.b32.xlu1 %v5292_v51, %s3816_s10  ;;  %v1841_v28 = vrot.slane %v5320_v30, 1 }
 0x259   : > { %v1676_v32 = vadd.f32 %v5251_v29, %v1675_v33 }
 0x25a   : > { %v5343_v42 = vsel %vm473_vm0, %v1839_v31, %v1841_v28 }
 0x25b   : > { %v5297_v59 = vmax.f32 %v1676_v32, 0.0  ;;  %v1711_v35 = vpop.f32.mrf.mxu2  ;;  %6857 = vst [vmem:[#allocation49_spill] sm:$0xff] %v5343_v42 }
 0x25c   : > { %v1712_v61 = vadd.f32 %v5251_v29, %v1711_v35 }
 0x25d   : > { %v1819_v7 = vrot.slane %v5297_v59, 1 }
 0x25e   : > { %v5358_v37 = vmax.f32 %v1712_v61, 0.0 }
 0x25f   : > { %v5301_v52 = vsel %vm473_vm0, %v1817_v53, %v1819_v7 }
 0x260   : > { %v1678_v9 = vpop.f32.mrf.mxu0  ;;  %1867 = vrot.lane.b32.xlu2 %v5301_v52, %s3816_s10  ;;  %v1843_v39 = vrot.slane %v5358_v37, 1 }
 0x261   : > { %v1679_v19 = vadd.f32 %v5251_v29, %v1678_v9 }
 0x262   : > { %v5380_v32 = vsel %vm473_vm0, %v1841_v28, %v1843_v39 }
 0x263   : > { %v5306_v23 = vmax.f32 %v1679_v19, 0.0  ;;  %v1714_v16 = vpop.f32.mrf.mxu2  ;;  %v5392_v19 = vsel %vm473_vm0, %v1837_v25, %v1839_v31 }
 0x264   : > { %v1715_v57 = vadd.f32 %v5251_v29, %v1714_v16  ;;  %6864 = vst [vmem:[#allocation9_spill] sm:$0xff] %v5392_v19 }
 0x265   : > { %6852 = vst [vmem:[#allocation46_spill] sm:$0xff] %v5306_v23  ;;  %v1821_v4 = vrot.slane %v5306_v23, 1 }
 0x267   : > { %v5310_v5 = vsel %vm473_vm0, %v1819_v7, %v1821_v4  ;;  %v5385_v7 = vmax.f32 %v1715_v57, 0.0 }
 0x268   : > { %v1681_v45 = vpop.f32.mrf.mxu0  ;;  %1869 = vrot.lane.b32.xlu0 %v5310_v5, %s3816_s10 }
 0x269   : > { %v1682_v24 = vadd.f32 %v5251_v29, %v1681_v45  ;;  %6863 = vst [vmem:[#allocation15_spill] sm:$0xff] %v5385_v7  ;;  %v1845_v18 = vrot.slane %v5385_v7, 1 }
 0x26b   : > { %v5316_v54 = vmax.f32 %v1682_v24, 0.0  ;;  %v1717_v49 = vpop.f32.mrf.mxu2 }
 0x26c   : > { %v1718_v43 = vadd.f32 %v5251_v29, %v1717_v49 }
 0x26d   : > { %v1823_v27 = vrot.slane %v5316_v54, 1 }
 0x26e   : > { %v5377_v33 = vmax.f32 %v1718_v43, 0.0 }
 0x26f   : > { %v5323_v15 = vsel %vm473_vm0, %v1821_v4, %v1823_v27 }
 0x270   : > { %v1684_v17 = vpop.f32.mrf.mxu0  ;;  %1871 = vrot.lane.b32.xlu1 %v5323_v15, %s3816_s10  ;;  %6861 = vst [vmem:[#allocation45_spill] sm:$0xff] %v5377_v33  ;;  %v1847_v24 = vrot.slane %v5377_v33, 1 }
 0x271   : > { %v1685_v50 = vadd.f32 %v5251_v29, %v1684_v17 }
 0x272   : > { %v5409_v17 = vsel %vm473_vm0, %v1845_v18, %v1847_v24 }
 0x273   : > { %v5331_v36 = vmax.f32 %v1685_v50, 0.0  ;;  %v1720_v46 = vpop.f32.mrf.mxu2 }
 0x274   : > { %v1721_v4 = vadd.f32 %v5251_v29, %v1720_v46  ;;  %v5416_v46 = vsel %vm473_vm0, %v1843_v39, %v1845_v18  ;;  %v1929_v18 = vrot.slane %v5254_v8, 2 }
 0x275   : > { %6854 = vst [vmem:[#allocation34_spill] sm:$0xff] %v5331_v36  ;;  %v1825_v41 = vrot.slane %v5331_v36, 1 }
 0x276   : > { %v5403_v20 = vmax.f32 %v1721_v4, 0.0  ;;  %v1934_v4 = vrot.slane %v5270_v34, 2 }
 0x277   : > { %v5340_v11 = vsel %vm473_vm0, %v1823_v27, %v1825_v41 }
 0x278   : > { %6856 = vst [vmem:[#allocation40_spill] sm:$0xff] %v5340_v11  ;;  %v1687_v2 = vpop.f32.mrf.mxu0  ;;  %1873 = vrot.lane.b32.xlu2 %v5340_v11, %s3816_s10  ;;  %1889 = vrot.lane.b32.xlu1 %v5343_v42, %s3816_s10  ;;  %v1849_v12 = vrot.slane %v5403_v20, 1 }
 0x279   : > { %v1688_v55 = vadd.f32 %v5251_v29, %v1687_v2 }
 0x27a   : > { %v5429_v25 = vsel %vm473_vm0, %v1847_v24, %v1849_v12  ;;  %v1930_v24 = vrot.slane %v5257_v21, 2 }
 0x27b   : > { %v5353_v48 = vmax.f32 %v1688_v55, 0.0  ;;  %v1723_v38 = vpop.f32.mrf.mxu2  ;;  %6868 = vst [vmem:[#allocation2_spill] sm:$0xff] %v5429_v25 }
 0x27c   : > { %v1724_v55 = vadd.f32 %v5251_v29, %v1723_v38 }
 0x27d   : > { %6858 = vst [vmem:[#allocation10_spill] sm:$0xff] %v5353_v48  ;;  %v1827_v6 = vrot.slane %v5353_v48, 1 }
 0x27e   : > { %v5441_v39 = vmax.f32 %v1724_v55, 0.0 }
 0x27f   : > { %v5364_v22 = vsel %vm473_vm0, %v1825_v41, %v1827_v6 }
 0x280   : > { %6860 = vst [vmem:[#allocation14_spill] sm:$0xff] %v5364_v22  ;;  %v1690_v3 = vpop.f32.mrf.mxu0  ;;  %1885 = vrot.lane.b32.xlu2 %v5361_v26, %s3816_s10  ;;  %1875 = vrot.lane.b32.xlu0 %v5364_v22, %s3816_s10 }
 0x281   : > { %v1691_v1 = vadd.f32 %v5251_v29, %v1690_v3 }
 0x283   : > { %v5372_v13 = vmax.f32 %v1691_v1, 0.0  ;;  %v1726_v53 = vpop.f32.mrf.mxu2 }
 0x284   : > { %v1727_v41 = vadd.f32 %v5251_v29, %v1726_v53 }
 0x285   : > { %v1829_v63 = vrot.slane %v5372_v13, 1 }
 0x287   : > { %v5383_v35 = vsel %vm473_vm0, %v1827_v6, %v1829_v63  ;;  %v5431_v6 = vmax.f32 %v1727_v41, 0.0  ;;  %v1936_v41 = vrot.slane %v5279_v62, 2 }
 0x288   : > { %6862 = vst [vmem:[#allocation8_spill] sm:$0xff] %v5383_v35  ;;  %v1693_v9 = vpop.f32.mrf.mxu0  ;;  %1891 = vrot.lane.b32.xlu2 %v5380_v32, %s3816_s10  ;;  %1877 = vrot.lane.b32.xlu1 %v5383_v35, %s3816_s10 }
 0x289   : > { %v1694_v16 = vadd.f32 %v5251_v29, %v1693_v9  ;;  %1887 = vrot.lane.b32.xlu0 %v5392_v19, %s3816_s10  ;;  %v1853_v38 = vrot.slane %v5431_v6, 1 }
 0x28b   : > { %v5398_v45 = vmax.f32 %v1694_v16, 0.0  ;;  %v1729_v50 = vpop.f32.mrf.mxu2  ;;  %v1932_v16 = vrot.slane %v5264_v56, 2 }
 0x28c   : > { %v1730_v31 = vadd.f32 %v5251_v29, %v1729_v50 }
 0x28d   : > { %6865 = vst [vmem:[#allocation35_spill] sm:$0xff] %v5398_v45  ;;  %v1831_v49 = vrot.slane %v5398_v45, 1  ;;  %v1933_v50 = vsel %vm618_vm1, %v1930_v24, %v1932_v16 }
 0x28e   : > { %v5433_v3 = vmax.f32 %v1730_v31, 0.0 }
 0x28f   : > { %v5406_v27 = vsel %vm473_vm0, %v1829_v63, %v1831_v49 }
 0x290   : > { %6866 = vst [vmem:[#allocation43_spill] sm:$0xff] %v5406_v27  ;;  %v1696_v58 = vpop.f32.mrf.mxu0  ;;  %1879 = vrot.lane.b32.xlu2 %v5406_v27, %s3816_s10  ;;  %1895 = vrot.lane.b32.xlu1 %v5409_v17, %s3816_s10  ;;  %v6643_v57 = vrot.slane %v5433_v3, 1 }
 0x291   : > { %v1697_v28 = vadd.f32 %v5251_v29, %v1696_v58  ;;  %1893 = vrot.lane.b32.xlu0 %v5416_v46, %s3816_s10  ;;  %6869 = vst [vmem:[#allocation39_spill] sm:$0xff] %v5433_v3  ;;  %v1931_v58 = vsel %vm618_vm1, %v1929_v18, %v1930_v24 }
 0x292   : > { %v5455_v63 = vsel %vm473_vm0, %v1853_v38, %v6643_v57  ;;  %v1958_v57 = vrot.slane %v5337_v10, 2 }
 0x293   : > { %v5424_v2 = vmax.f32 %v1697_v28, 0.0  ;;  %6872 = vst [vmem:[#allocation3_spill] sm:$0xff] %v5455_v63  ;;  %v1938_v28 = vrot.slane %v5288_v47, 2 }
 0x295   : > { %6867 = vst [vmem:[#allocation30_spill] sm:$0xff] %v5424_v2  ;;  %v1833_v61 = vrot.slane %v5424_v2, 1  ;;  %v5489_v55 = vsel %vm618_vm1, %v1936_v41, %v1938_v28  ;;  %v1954_v8 = vrot.slane %v5424_v2, 2 }
 0x297   : > { %v5436_v1 = vsel %vm473_vm0, %v1833_v61, %v1835_v0  ;;  %v5439_v43 = vsel %vm473_vm0, %v1831_v49, %v1833_v61  ;;  %v1851_v0 = vrot.slane %v5441_v39, 1  ;;  %v5474_v49 = vsel %vm618_vm1, %v1932_v16, %v1934_v4 }
 0x298   : > { %6870 = vst [vmem:[#allocation48_spill] sm:$0xff] %v5436_v1  ;;  %1897 = vrot.lane.b32.xlu2 %v5429_v25, %s3816_s10  ;;  %1883 = vrot.lane.b32.xlu1 %v5436_v1, %s3816_s10  ;;  %v5496_v61 = vsel %vm618_vm1, %v1934_v4, %v1936_v41  ;;  %v1942_v16 = vrot.slane %v5306_v23, 2 }
 0x299   : > { %6871 = vst [vmem:[#allocation11_spill] sm:$0xff] %v5439_v43  ;;  %1881 = vrot.lane.b32.xlu0 %v5439_v43, %s3816_s10  ;;  %v5458_v53 = vsel %vm473_vm0, %v1851_v0, %v1853_v38  ;;  %v5465_v9 = vsel %vm473_vm0, %v1849_v12, %v1851_v0  ;;  %v1940_v12 = vrot.slane %v5297_v59, 2  ;;  %v1944_v38 = vrot.slane %v5316_v54, 2 }
 0x29a   : > { %6873 = vst [vmem:[#allocation41_spill] sm:$0xff] %v5458_v53  ;;  %v1946_v0 = vrot.slane %v5331_v36, 2 }
 0x29b   : > { %6874 = vst [vmem:[#allocation29_spill] sm:$0xff] %v5465_v9  ;;  %v5486_v31 = vsel %vm618_vm1, %v1938_v28, %v1940_v12  ;;  %v5507_v18 = vsel %vm618_vm1, %v1942_v16, %v1944_v38  ;;  %v5514_v4 = vsel %vm618_vm1, %v1940_v12, %v1942_v16  ;;  %v1948_v28 = vrot.slane %v5353_v48, 2 }
 0x29c   : > { %v5504_v24 = vsel %vm618_vm1, %v1944_v38, %v1946_v0 }
 0x29d   : > { %v5532_v12 = vsel %vm618_vm1, %v1946_v0, %v1948_v28 }
 0x29e   : > { %6877 = vst [vmem:[#allocation47_spill] sm:$0xff] %v5532_v12 }
 0x2a0   : > { %1903 = vrot.lane.b32.xlu2 %v5455_v63, %s3816_s10  ;;  %1901 = vrot.lane.b32.xlu1 %v5458_v53, %s3816_s10 }
 0x2a1   : > { %1899 = vrot.lane.b32.xlu0 %v5465_v9, %s3816_s10  ;;  %s3825_s10 = smov 56  }
 0x2a2   : > { %v5536_v16 = vpop.permute.xlu2 %1861 }
 0x2a3   : > { %6878 = vst [vmem:[#allocation4_spill] sm:$0xff] %v5536_v16 }
 0x2a8   : > { %1982 = vrot.lane.b32.xlu2 %v5474_v49, %s3818_s12  ;;  %1980 = vrot.lane.b32.xlu1 %v1933_v50, %s3818_s12  ;;  %v1950_v50 = vrot.slane %v5372_v13, 2 }
 0x2a9   : > { %1978 = vrot.lane.b32.xlu0 %v1931_v58, %s3818_s12  ;;  %v1952_v58 = vrot.slane %v5398_v45, 2 }
 0x2aa   : > { %v5525_v38 = vsel %vm618_vm1, %v1948_v28, %v1950_v50 }
 0x2ab   : > { %v5522_v41 = vsel %vm618_vm1, %v1950_v50, %v1952_v58  ;;  %6876 = vst [vmem:[#allocation13_spill] sm:$0xff] %v5525_v38  ;;  %v1956_v50 = vrot.slane %v5349_v14, 2  ;;  %v5552_v0 = vsel %vm618_vm1, %v1952_v58, %v1954_v8 }
 0x2ac   : > { %6875 = vst [vmem:[#allocation37_spill] sm:$0xff] %v5522_v41 }
 0x2ad   : > { %v5542_v21 = vsel %vm618_vm1, %v1956_v50, %v1958_v57  ;;  %6881 = vst [vmem:[#allocation16_spill] sm:$0xff] %v5552_v0 }
 0x2ae   : > { %6879 = vst [vmem:[#allocation19_spill] sm:$0xff] %v5542_v21 }
 0x2b0   : > { %1988 = vrot.lane.b32.xlu2 %v5486_v31, %s3818_s12  ;;  %1986 = vrot.lane.b32.xlu1 %v5489_v55, %s3818_s12 }
 0x2b1   : > { %1984 = vrot.lane.b32.xlu0 %v5496_v61, %s3818_s12 }
 0x2b8   : > { %1994 = vrot.lane.b32.xlu2 %v5504_v24, %s3818_s12  ;;  %1992 = vrot.lane.b32.xlu1 %v5507_v18, %s3818_s12 }
 0x2b9   : > { %1990 = vrot.lane.b32.xlu0 %v5514_v4, %s3818_s12 }
 0x2ba   : > { %v5556_v28 = vpop.permute.xlu2 %1867 }
 0x2bb   : > { %6882 = vst [vmem:[#allocation18_spill] sm:$0xff] %v5556_v28  ;;  %v5581_v28 = vpop.permute.xlu1 %1859 }
 0x2bc   : > { %6887 = vst [vmem:[#allocation22_spill] sm:$0xff] %v5581_v28 }
 0x2c0   : > { %2000 = vrot.lane.b32.xlu2 %v5522_v41, %s3818_s12  ;;  %1998 = vrot.lane.b32.xlu1 %v5525_v38, %s3818_s12  ;;  %v5545_v41 = vsel %vm618_vm1, %v1954_v8, %v1956_v50  ;;  %v1962_v38 = vrot.slane %v5320_v30, 2  ;;  %v1960_v50 = vrot.slane %v5327_v40, 2 }
 0x2c1   : > { %1996 = vrot.lane.b32.xlu0 %v5532_v12, %s3818_s12  ;;  %6880 = vst [vmem:[#allocation5_spill] sm:$0xff] %v5545_v41  ;;  %v1964_v12 = vrot.slane %v5358_v37, 2 }
 0x2c2   : > { %v5572_v8 = vsel %vm618_vm1, %v1958_v57, %v1960_v50 }
 0x2c3   : > { %v5562_v16 = vsel %vm618_vm1, %v1962_v38, %v1964_v12  ;;  %6885 = vst [vmem:[#allocation27_spill] sm:$0xff] %v5572_v8 }
 0x2c4   : > { %6883 = vst [vmem:[#allocation33_spill] sm:$0xff] %v5562_v16 }
 0x2c8   : > { %2006 = vrot.lane.b32.xlu2 %v5542_v21, %s3818_s12  ;;  %2004 = vrot.lane.b32.xlu1 %v5545_v41, %s3818_s12  ;;  %v5565_v21 = vsel %vm618_vm1, %v1960_v50, %v1962_v38  ;;  %v1968_v41 = vrot.slane %v5377_v33, 2  ;;  %v1966_v38 = vrot.slane %v5385_v7, 2  ;;  %v5598_v50 = vpop.permute.xlu0 %1857 }
 0x2c9   : > { %2002 = vrot.lane.b32.xlu0 %v5552_v0, %s3818_s12  ;;  %6884 = vst [vmem:[#allocation24_spill] sm:$0xff] %v5565_v21  ;;  %v1970_v0 = vrot.slane %v5403_v20, 2 }
 0x2ca   : > { %v5594_v57 = vsel %vm618_vm1, %v1964_v12, %v1966_v38 }
 0x2cb   : > { %6890 = vst [vmem:[#allocation12_spill] sm:$0xff] %v5594_v57 }
 0x2d0   : > { %2012 = vrot.lane.b32.xlu2 %v5562_v16, %s3818_s12  ;;  %2010 = vrot.lane.b32.xlu1 %v5565_v21, %s3818_s12  ;;  %v5584_v16 = vsel %vm618_vm1, %v1968_v41, %v1970_v0  ;;  %v5587_v21 = vsel %vm618_vm1, %v1966_v38, %v1968_v41  ;;  %v6670_v41 = vrot.slane %v5433_v3, 2 }
 0x2d1   : > { %2008 = vrot.lane.b32.xlu0 %v5572_v8, %s3818_s12  ;;  %6888 = vst [vmem:[#allocation20_spill] sm:$0xff] %v5584_v16  ;;  %v1972_v8 = vrot.slane %v5441_v39, 2 }
 0x2d2   : > { %v5576_v58 = vpop.permute.xlu2 %1873  ;;  %6889 = vst [vmem:[#allocation17_spill] sm:$0xff] %v5587_v21 }
 0x2d3   : > { %6886 = vst [vmem:[#allocation42_spill] sm:$0xff] %v5576_v58  ;;  %v1974_v58 = vrot.slane %v5431_v6, 2 }
 0x2d5   : > { %v5610_v12 = vsel %vm618_vm1, %v1974_v58, %v6670_v41  ;;  %v5613_v38 = vsel %vm618_vm1, %v1972_v8, %v1974_v58 }
 0x2d6   : > { %6892 = vst [vmem:[#allocation21_spill] sm:$0xff] %v5610_v12 }
 0x2d7   : > { %6893 = vst [vmem:[#allocation26_spill] sm:$0xff] %v5613_v38 }
 0x2d8   : > { %2018 = vrot.lane.b32.xlu2 %v5584_v16, %s3818_s12  ;;  %2016 = vrot.lane.b32.xlu1 %v5587_v21, %s3818_s12  ;;  %v5605_v16 = vpop.permute.xlu1 %1865  ;;  %v5620_v21 = vsel %vm618_vm1, %v1970_v0, %v1972_v8 }
 0x2d9   : > { %2014 = vrot.lane.b32.xlu0 %v5594_v57, %s3818_s12  ;;  %6894 = vst [vmem:[#allocation44_spill] sm:$0xff] %v5620_v21  ;;  %v5624_v57 = vpop.permute.xlu0 %1863 }
 0x2da   : > { %v5600_v28 = vpop.permute.xlu2 %1885 }
 0x2db   : > { %6891 = vst [vmem:[#allocation31_spill] sm:$0xff] %v5600_v28 }
 0x2e0   : > { %2024 = vrot.lane.b32.xlu2 %v5610_v12, %s3818_s12  ;;  %2022 = vrot.lane.b32.xlu1 %v5613_v38, %s3818_s12 }
 0x2e1   : > { %2020 = vrot.lane.b32.xlu0 %v5620_v21, %s3818_s12  ;;  %v5636_v0 = vpop.permute.xlu0 %1869  ;;  %s3827_s12 = smov 64  }
 0x2e2   : > { %v5626_v28 = vpop.permute.xlu2 %1891  ;;  %v5628_v41 = vpop.permute.xlu1 %1871  ;;  %6897 = vst [vmem:[#allocation23_spill] sm:$0xff] %v5636_v0 }
 0x2e3   : > { %6895 = vst [vmem:[#allocation28_spill] sm:$0xff] %v5626_v28 }
 0x2e4   : > { %6896 = vst [vmem:[#allocation25_spill] sm:$0xff] %v5628_v41 }
 0x2e8   : > { %2055 = vrot.lane.b32.xlu2 %v5279_v62, %s3820_s14  ;;  %2053 = vrot.lane.b32.xlu1 %v5270_v34, %s3820_s14 }
 0x2e9   : > { %2051 = vrot.lane.b32.xlu0 %v5264_v56, %s3820_s14 }
 0x2ea   : > { %v5638_v8 = vpop.permute.xlu2 %1879  ;;  %v5644_v58 = vpop.permute.xlu1 %1889 }
 0x2eb   : > { %6898 = vst [vmem:[#allocation50_spill] sm:$0xff] %v5644_v58 }
 0x2f0   : > { %2061 = vrot.lane.b32.xlu2 %v5306_v23, %s3820_s14  ;;  %2059 = vrot.lane.b32.xlu1 %v5297_v59, %s3820_s14 }
 0x2f1   : > { %2057 = vrot.lane.b32.xlu0 %v5288_v47, %s3820_s14 }
 0x2f2   : > { %v5648_v12 = vpop.permute.xlu2 %1897  ;;  %v5650_v38 = vpop.permute.xlu0 %1875 }
 0x2f3   : > { %6899 = vst [vmem:[#allocation51_spill] sm:$0xff] %v5648_v12 }
 0x2f4   : > { %6900 = vst [vmem:[#allocation52_spill] sm:$0xff] %v5650_v38 }
 0x2f8   : > { %2067 = vrot.lane.b32.xlu2 %v5353_v48, %s3820_s14  ;;  %2065 = vrot.lane.b32.xlu1 %v5331_v36, %s3820_s14 }
 0x2f9   : > { %2063 = vrot.lane.b32.xlu0 %v5316_v54, %s3820_s14 }
 0x2fa   : > { %v5658_v21 = vpop.permute.xlu2 %1903  ;;  %v5660_v0 = vpop.permute.xlu1 %1877 }
 0x2fb   : > { %6901 = vst [vmem:[#allocation53_spill] sm:$0xff] %v5660_v0  ;;  %v5662_v58 = vpop.permute.xlu0 %1887 }
 0x2fc   : > { %6902 = vst [vmem:[#allocation54_spill] sm:$0xff] %v5662_v58 }
 0x300   : > { %2073 = vrot.lane.b32.xlu2 %v5424_v2, %s3820_s14  ;;  %2071 = vrot.lane.b32.xlu1 %v5398_v45, %s3820_s14 }
 0x301   : > { %2069 = vrot.lane.b32.xlu0 %v5372_v13, %s3820_s14 }
 0x302   : > { %v5670_v38 = vpop.permute.xlu2 %1982  ;;  %v5672_v36 = vpop.permute.xlu1 %1895 }
 0x303   : > { %6903 = vst [vmem:[#allocation55_spill] sm:$0xff] %v5672_v36  ;;  %v5674_v48 = vpop.permute.xlu0 %1893 }
 0x304   : > { %6904 = vst [vmem:[#allocation56_spill] sm:$0xff] %v5674_v48 }
 0x308   : > { %2079 = vrot.lane.b32.xlu2 %v5327_v40, %s3820_s14  ;;  %2077 = vrot.lane.b32.xlu1 %v5337_v10, %s3820_s14  ;;  %v1732_v40 = vpop.f32.mrf.mxu2 }
 0x309   : > { %2075 = vrot.lane.b32.xlu0 %v5349_v14, %s3820_s14 }
 0x30a   : > { %v5682_v58 = vpop.permute.xlu2 %1988  ;;  %v5684_v45 = vpop.permute.xlu1 %1883 }
 0x30b   : > { %6905 = vst [vmem:[#allocation57_spill] sm:$0xff] %v5684_v45  ;;  %v5686_v2 = vpop.permute.xlu0 %1881 }
 0x30c   : > { %6906 = vst [vmem:[#allocation58_spill] sm:$0xff] %v5686_v2  ;;  %v1733_v2 = vadd.f32 %v5251_v29, %v1732_v40 }
 0x30e   : > { %v5713_v12 = vmax.f32 %v1733_v2, 0.0 }
 0x310   : > { %2085 = vrot.lane.b32.xlu2 %v5385_v7, %s3820_s14  ;;  %2083 = vrot.lane.b32.xlu1 %v5358_v37, %s3820_s14  ;;  %6907 = vst [vmem:[#allocation59_spill] sm:$0xff] %v5713_v12 }
 0x311   : > { %2081 = vrot.lane.b32.xlu0 %v5320_v30, %s3820_s14 }
 0x312   : > { %v5694_v48 = vpop.permute.xlu2 %1994  ;;  %v5696_v36 = vpop.permute.xlu1 %1901 }
 0x313   : > { %v5698_v10 = vpop.permute.xlu0 %1899 }
 0x318   : > { %2091 = vrot.lane.b32.xlu2 %v5441_v39, %s3820_s14  ;;  %2089 = vrot.lane.b32.xlu1 %v5403_v20, %s3820_s14 }
 0x319   : > { %2087 = vrot.lane.b32.xlu0 %v5377_v33, %s3820_s14 }
 0x31a   : > { %v5707_v45 = vpop.permute.xlu2 %2000  ;;  %v5709_v7 = vpop.permute.xlu1 %1980 }
 0x31b   : > { %v5711_v0 = vpop.permute.xlu0 %1978 }
 0x320   : > { %2097 = vrot.lane.b32.xlu2 %v5713_v12, %s3820_s14  ;;  %2095 = vrot.lane.b32.xlu1 %v5433_v3, %s3820_s14 }
 0x321   : > { %2093 = vrot.lane.b32.xlu0 %v5431_v6, %s3820_s14 }
 0x322   : > { %v5721_v33 = vpop.permute.xlu2 %2006  ;;  %v5723_v40 = vpop.permute.xlu1 %1986 }
 0x323   : > { %v5725_v23 = vpop.permute.xlu0 %1984 }
 0x324   : > { %6908 = vst [vmem:[#allocation60_spill] sm:$0xff] %v5725_v23 }
 0x328   : > { %2132 = vrot.lane.b32.xlu2 %v5292_v51, %s3823_s16  ;;  %2130 = vrot.lane.b32.xlu1 %v5283_v44, %s3823_s16 }
 0x329   : > { %2128 = vrot.lane.b32.xlu0 %v5274_v60, %s3823_s16 }
 0x32a   : > { %v5733_v2 = vpop.permute.xlu2 %2012  ;;  %v5735_v41 = vpop.permute.xlu1 %1992 }
 0x32b   : > { %6909 = vst [vmem:[#allocation61_spill] sm:$0xff] %v5733_v2  ;;  %v5737_v28 = vpop.permute.xlu0 %1990 }
 0x32c   : > { %6910 = vst [vmem:[#allocation62_spill] sm:$0xff] %v5735_v41 }
 0x32d   : > { %6911 = vst [vmem:[#allocation63_spill] sm:$0xff] %v5737_v28 }
 0x330   : > { %2138 = vrot.lane.b32.xlu2 %v5323_v15, %s3823_s16  ;;  %2136 = vrot.lane.b32.xlu1 %v5310_v5, %s3823_s16 }
 0x331   : > { %2134 = vrot.lane.b32.xlu0 %v5301_v52, %s3823_s16 }
 0x332   : > { %v5745_v23 = vpop.permute.xlu2 %2018  ;;  %v5747_v44 = vpop.permute.xlu1 %1998 }
 0x333   : > { %6912 = vst [vmem:[#allocation64_spill] sm:$0xff] %v5747_v44  ;;  %v5749_v60 = vpop.permute.xlu0 %1996  ;;  %v6928_v44 = vld [vmem:[#allocation27_spill] sm:$0xff] }
 0x334   : > { %6913 = vst [vmem:[#allocation65_spill] sm:$0xff] %v5749_v60 }
 0x338   : > { %2144 = vrot.lane.b32.xlu2 %v5383_v35, %s3823_s16  ;;  %2142 = vrot.lane.b32.xlu1 %v5364_v22, %s3823_s16 }
 0x339   : > { %2140 = vrot.lane.b32.xlu0 %v5340_v11, %s3823_s16  ;;  %v1735_v11 = vpop.f32.mrf.mxu2 }
 0x33a   : > { %v2025_v28 = vpop.permute.xlu2 %2024  ;;  %v5757_v41 = vpop.permute.xlu1 %2004 }
 0x33b   : > { %6914 = vst [vmem:[#allocation66_spill] sm:$0xff] %v5757_v41  ;;  %v5759_v2 = vpop.permute.xlu0 %2002 }
 0x33c   : > { %6915 = vst [vmem:[#allocation67_spill] sm:$0xff] %v5759_v2 }
 0x340   : > { %2150 = vrot.lane.b32.xlu2 %v5436_v1, %s3823_s16  ;;  %2148 = vrot.lane.b32.xlu1 %v5439_v43, %s3823_s16 }
 0x341   : > { %2146 = vrot.lane.b32.xlu0 %v5406_v27, %s3823_s16 }
 0x342   : > { %v5767_v35 = vpop.permute.xlu2 %2055  ;;  %v5769_v22 = vpop.permute.xlu1 %2010 }
 0x343   : > { %6916 = vst [vmem:[#allocation68_spill] sm:$0xff] %v5769_v22  ;;  %v5771_v60 = vpop.permute.xlu0 %2008 }
 0x344   : > { %6917 = vst [vmem:[#allocation69_spill] sm:$0xff] %v5771_v60 }
 0x348   : > { %2156 = vrot.lane.b32.xlu2 %v5343_v42, %s3823_s16  ;;  %2154 = vrot.lane.b32.xlu1 %v5392_v19, %s3823_s16 }
 0x349   : > { %2152 = vrot.lane.b32.xlu0 %v5361_v26, %s3823_s16  ;;  %v1736_v26 = vadd.f32 %v5251_v29, %v1735_v11  ;;  %v2124_v11 = vrot.slane %v5713_v12, 1 }
 0x34a   : > { %v5779_v1 = vpop.permute.xlu2 %2061  ;;  %v5781_v43 = vpop.permute.xlu1 %2016 }
 0x34b   : > { %6918 = vst [vmem:[#allocation70_spill] sm:$0xff] %v5781_v43  ;;  %v5783_v27 = vpop.permute.xlu0 %2014  ;;  %v5798_v43 = vmax.f32 %v1736_v26, 0.0 }
 0x34c   : > { %6919 = vst [vmem:[#allocation71_spill] sm:$0xff] %v5783_v27 }
 0x34d   : > { %6920 = vst [vmem:[#allocation72_spill] sm:$0xff] %v5798_v43  ;;  %v6710_v2 = vrot.slane %v5798_v43, 1 }
 0x34f   : > { %v5817_v26 = vsel %vm473_vm0, %v2124_v11, %v6710_v2 }
 0x350   : > { %2162 = vrot.lane.b32.xlu2 %v5409_v17, %s3823_s16  ;;  %2160 = vrot.lane.b32.xlu1 %v5416_v46, %s3823_s16  ;;  %6921 = vst [vmem:[#allocation73_spill] sm:$0xff] %v5817_v26 }
 0x351   : > { %2158 = vrot.lane.b32.xlu0 %v5380_v32, %s3823_s16 }
 0x352   : > { %v5791_v42 = vpop.permute.xlu2 %2067  ;;  %v5793_v19 = vpop.permute.xlu1 %2022 }
 0x353   : > { %v5796_v60 = vpop.permute.xlu0 %2020 }
 0x358   : > { %2168 = vrot.lane.b32.xlu2 %v5458_v53, %s3823_s16  ;;  %2166 = vrot.lane.b32.xlu1 %v5465_v9, %s3823_s16  ;;  %v6922_v53 = vrot.slane %v5433_v3, 1  ;;  %v2525_v3 = vsel %vm1335_vm3, %v5431_v6, %v5658_v21 }
 0x359   : > { %2164 = vrot.lane.b32.xlu0 %v5429_v25, %s3823_s16 }
 0x35a   : > { %v5806_v27 = vpop.permute.xlu2 %2073  ;;  %v5808_v22 = vpop.permute.xlu1 %2053  ;;  %v5822_v9 = vsel %vm473_vm0, %v6922_v53, %v2124_v11 }
 0x35b   : > { %v5811_v29 = vpop.permute.xlu0 %2051  ;;  %6923 = vst [vmem:[#allocation74_spill] sm:$0xff] %v5822_v9 }
 0x360   : > { %2174 = vrot.lane.b32.xlu2 %v5817_v26, %s3823_s16  ;;  %2172 = vrot.lane.b32.xlu1 %v5822_v9, %s3823_s16 }
 0x361   : > { %2170 = vrot.lane.b32.xlu0 %v5455_v63, %s3823_s16  ;;  %v2549_v63 = vsel %vm1395_vm5, %v2525_v3, %v2025_v28 }
 0x362   : > { %v5830_v12 = vpop.permute.xlu2 %2079  ;;  %v5832_v43 = vpop.permute.xlu1 %2059 }
 0x363   : > { %v5834_v2 = vpop.permute.xlu0 %2057 }
 0x368   : > { %2208 = vrot.lane.b32.xlu2 %v5489_v55, %s3824_s9  ;;  %2206 = vrot.lane.b32.xlu1 %v5496_v61, %s3824_s9 }
 0x369   : > { %2204 = vrot.lane.b32.xlu0 %v5474_v49, %s3824_s9 }
 0x36a   : > { %v5842_v53 = vpop.permute.xlu2 %2085  ;;  %v5844_v11 = vpop.permute.xlu1 %2065 }
 0x36b   : > { %v5846_v26 = vpop.permute.xlu0 %2063 }
 0x370   : > { %2214 = vrot.lane.b32.xlu2 %v5507_v18, %s3824_s9  ;;  %2212 = vrot.lane.b32.xlu1 %v5514_v4, %s3824_s9 }
 0x371   : > { %2210 = vrot.lane.b32.xlu0 %v5486_v31, %s3824_s9 }
 0x372   : > { %v5854_v9 = vpop.permute.xlu2 %2091  ;;  %v5856_v61 = vpop.permute.xlu1 %2071 }
 0x373   : > { %6924 = vst [vmem:[#allocation75_spill] sm:$0xff] %v5854_v9  ;;  %v5858_v49 = vpop.permute.xlu0 %2069 }
 0x374   : > { %6925 = vst [vmem:[#allocation76_spill] sm:$0xff] %v5856_v61  ;;  %v6927_v61 = vld [vmem:[#allocation4_spill] sm:$0xff] }
 0x375   : > { %6926 = vst [vmem:[#allocation77_spill] sm:$0xff] %v5858_v49  ;;  %v2504_v9 = vsel %vm1335_vm3, %v5264_v56, %v6927_v61  ;;  %v6929_v61 = vld [vmem:[#allocation18_spill] sm:$0xff] }
 0x376   : > { %v2528_v21 = vsel %vm1395_vm5, %v2504_v9, %v5670_v38 }
 0x378   : > { %2354 = vrot.lane.b32.xlu2 %v5292_v51, %s3825_s10  ;;  %2277 = vrot.lane.b32.xlu1 %v5279_v62, %s3826_s11 }
 0x379   : > { %2216 = vrot.lane.b32.xlu0 %v5504_v24, %s3824_s9 }
 0x37a   : > { %v2098_v25 = vpop.permute.xlu2 %2097  ;;  %v5870_v41 = vpop.permute.xlu1 %2077 }
 0x37b   : > { %v5873_v49 = vsel %vm1455_vm7, %v2549_v63, %v2098_v25  ;;  %v5875_v51 = vpop.permute.xlu0 %2075  ;;  %v2552_v25 = vsel %vm1455_vm7, %v2528_v21, %v5767_v35 }
 0x380   : > { %2230 = vrot.lane.b32.xlu2 %v6928_v44, %s3824_s9  ;;  %2279 = vrot.lane.b32.xlu1 %v5288_v47, %s3826_s11  ;;  %v2507_v44 = vsel %vm1335_vm3, %v5288_v47, %v6929_v61 }
 0x381   : > { %2430 = vrot.lane.b32.xlu0 %v5489_v55, %s3827_s12  ;;  %v2531_v35 = vsel %vm1395_vm5, %v2507_v44, %v5682_v58  ;;  %v2524_v58 = vsel %vm1335_vm3, %v5441_v39, %v5696_v36  ;;  %v2523_v44 = vsel %vm1335_vm3, %v5403_v20, %v5698_v10 }
 0x382   : > { %v2133_v3 = vpop.permute.xlu2 %2132  ;;  %v5890_v63 = vpop.permute.xlu1 %2083  ;;  %v2555_v9 = vsel %vm1455_vm7, %v2531_v35, %v5779_v1  ;;  %v2548_v61 = vsel %vm1395_vm5, %v2524_v58, %v5793_v19  ;;  %v2513_v19 = vsel %vm1335_vm3, %v5372_v13, %v5638_v8 }
 0x383   : > { %v5893_v56 = vsel %vm1515_vm11, %v2552_v25, %v2133_v3  ;;  %v5895_v28 = vpop.permute.xlu0 %2081  ;;  %v2537_v58 = vsel %vm1395_vm5, %v2513_v19, %v5707_v45 }
 0x388   : > { %2432 = vrot.lane.b32.xlu2 %v5486_v31, %s3827_s12  ;;  %2303 = vrot.lane.b32.xlu1 %v5320_v30, %s3826_s11  ;;  %v6930_v31 = vld [vmem:[#allocation42_spill] sm:$0xff] }
 0x389   : > { %2356 = vrot.lane.b32.xlu0 %v5301_v52, %s3825_s10  ;;  %v2510_v25 = vsel %vm1335_vm3, %v5316_v54, %v6930_v31  ;;  %v6931_v52 = vld [vmem:[#allocation33_spill] sm:$0xff]  ;;  %v6932_v31 = vld [vmem:[#allocation22_spill] sm:$0xff] }
 0x38a   : > { %v2139_v55 = vpop.permute.xlu2 %2138  ;;  %v5910_v38 = vpop.permute.xlu1 %2089  ;;  %v2534_v1 = vsel %vm1395_vm5, %v2510_v25, %v5694_v48  ;;  %v2547_v48 = vsel %vm1395_vm5, %v2523_v44, %v5796_v60  ;;  %v6934_v60 = vld [vmem:[#allocation32_spill] sm:$0xff] }
 0x38b   : > { %v5913_v47 = vsel %vm1515_vm11, %v2555_v9, %v2139_v55  ;;  %v5915_v21 = vpop.permute.xlu0 %2087  ;;  %v2558_v3 = vsel %vm1455_vm7, %v2534_v1, %v5791_v42  ;;  %v6933_v42 = vld [vmem:[#allocation36_spill] sm:$0xff]  ;;  %v2502_v1 = vsel %vm1335_vm3, %v6934_v60, %v5598_v50 }
 0x38c   : > { %v2503_v25 = vsel %vm1335_vm3, %v6933_v42, %v6932_v31  ;;  %v2526_v8 = vsel %vm1395_vm5, %v2502_v1, %v5711_v0  ;;  %v2505_v31 = vsel %vm1335_vm3, %v5270_v34, %v5624_v57 }
 0x38d   : > { %v2527_v44 = vsel %vm1395_vm5, %v2503_v25, %v5709_v7  ;;  %v2550_v45 = vsel %vm1455_vm7, %v2526_v8, %v5811_v29  ;;  %v6937_v29 = vld [vmem:[#allocation12_spill] sm:$0xff] }
 0x390   : > { %2281 = vrot.lane.b32.xlu2 %v5297_v59, %s3826_s11  ;;  %2456 = vrot.lane.b32.xlu1 %v6931_v52, %s3827_s12 }
 0x391   : > { %2380 = vrot.lane.b32.xlu0 %v5380_v32, %s3825_s10 }
 0x392   : > { %v2145_v35 = vpop.permute.xlu2 %2144  ;;  %v2096_v9 = vpop.permute.xlu1 %2095 }
 0x393   : > { %v5941_v36 = vsel %vm1515_vm11, %v2558_v3, %v2145_v35  ;;  %v5944_v32 = vsel %vm1455_vm7, %v2548_v61, %v2096_v9  ;;  %v2094_v55 = vpop.permute.xlu0 %2093  ;;  %v6935_v3 = vld [vmem:[#allocation24_spill] sm:$0xff]  ;;  %v2561_v61 = vsel %vm1455_vm7, %v2537_v58, %v5806_v27  ;;  %v2506_v27 = vsel %vm1335_vm3, %v5279_v62, %v5605_v16 }
 0x394   : > { %v5947_v10 = vsel %vm1455_vm7, %v2547_v48, %v2094_v55  ;;  %v2530_v62 = vsel %vm1395_vm5, %v2506_v27, %v5723_v40  ;;  %v6938_v16 = vld [vmem:[#allocation60_spill] sm:$0xff] }
 0x395   : > { %v2529_v25 = vsel %vm1395_vm5, %v2505_v31, %v6938_v16  ;;  %v6939_v58 = vld [vmem:[#allocation28_spill] sm:$0xff]  ;;  %v6946_v16 = vld [vmem:[#allocation51_spill] sm:$0xff] }
 0x398   : > { %2305 = vrot.lane.b32.xlu2 %v5358_v37, %s3826_s11  ;;  %2358 = vrot.lane.b32.xlu1 %v5310_v5, %s3825_s10  ;;  %v2551_v5 = vsel %vm1455_vm7, %v2527_v44, %v5808_v22  ;;  %v6936_v22 = vld [vmem:[#allocation31_spill] sm:$0xff]  ;;  %v6941_v44 = vld [vmem:[#allocation46_spill] sm:$0xff] }
 0x399   : > { %2232 = vrot.lane.b32.xlu0 %v6935_v3, %s3824_s9  ;;  %v2516_v55 = vsel %vm1335_vm3, %v5349_v14, %v6936_v22 }
 0x39a   : > { %v2151_v35 = vpop.permute.xlu2 %2150  ;;  %v2131_v50 = vpop.permute.xlu1 %2130  ;;  %v2540_v42 = vsel %vm1395_vm5, %v2516_v55, %v5721_v33  ;;  %v2553_v33 = vsel %vm1455_vm7, %v2529_v25, %v5834_v2  ;;  %v6942_v2 = vld [vmem:[#allocation23_spill] sm:$0xff] }
 0x39b   : > { %v5977_v9 = vsel %vm1515_vm11, %v2561_v61, %v2151_v35  ;;  %v5980_v7 = vsel %vm1515_vm11, %v2551_v5, %v2131_v50  ;;  %v2129_v48 = vpop.permute.xlu0 %2128  ;;  %v2564_v19 = vsel %vm1455_vm7, %v2540_v42, %v5830_v12  ;;  %v2519_v12 = vsel %vm1335_vm3, %v5320_v30, %v6939_v58  ;;  %v6943_v5 = vld [vmem:[#allocation61_spill] sm:$0xff]  ;;  %v6944_v50 = vld [vmem:[#allocation62_spill] sm:$0xff] }
 0x39c   : > { %v5983_v0 = vsel %vm1515_vm11, %v2550_v45, %v2129_v48  ;;  %v2508_v61 = vsel %vm1335_vm3, %v5297_v59, %v6942_v2  ;;  %v2543_v35 = vsel %vm1395_vm5, %v2519_v12, %v6943_v5  ;;  %v6945_v45 = vld [vmem:[#allocation63_spill] sm:$0xff] }
 0x39d   : > { %v2532_v48 = vsel %vm1395_vm5, %v2508_v61, %v6945_v45  ;;  %v6953_v12 = vld [vmem:[#allocation15_spill] sm:$0xff] }
 0x39e   : > { %v2556_v22 = vsel %vm1455_vm7, %v2532_v48, %v5846_v26  ;;  %v6950_v26 = vld [vmem:[#allocation52_spill] sm:$0xff] }
 0x3a0   : > { %2458 = vrot.lane.b32.xlu2 %v6937_v29, %s3827_s12  ;;  %2382 = vrot.lane.b32.xlu1 %v5416_v46, %s3825_s10  ;;  %v2554_v46 = vsel %vm1455_vm7, %v2530_v62, %v5832_v43  ;;  %v6940_v43 = vld [vmem:[#allocation25_spill] sm:$0xff] }
 0x3a1   : > { %2434 = vrot.lane.b32.xlu0 %v5514_v4, %s3827_s12  ;;  %v2509_v8 = vsel %vm1335_vm3, %v6941_v44, %v6940_v43  ;;  %v6954_v43 = vld [vmem:[#allocation65_spill] sm:$0xff] }
 0x3a2   : > { %v2157_v60 = vpop.permute.xlu2 %2156  ;;  %v2137_v34 = vpop.permute.xlu1 %2136  ;;  %v2533_v30 = vsel %vm1395_vm5, %v2509_v8, %v6944_v50 }
 0x3a3   : > { %v6013_v57 = vsel %vm1515_vm11, %v2564_v19, %v2157_v60  ;;  %v6016_v40 = vsel %vm1515_vm11, %v2554_v46, %v2137_v34  ;;  %v2135_v4 = vpop.permute.xlu0 %2134  ;;  %v6949_v19 = vld [vmem:[#allocation10_spill] sm:$0xff] }
 0x3a4   : > { %v6019_v1 = vsel %vm1515_vm11, %v2553_v33, %v2135_v4  ;;  %v6951_v60 = vld [vmem:[#allocation34_spill] sm:$0xff]  ;;  %v6952_v4 = vld [vmem:[#allocation64_spill] sm:$0xff] }
 0x3a5   : > { %v2511_v34 = vsel %vm1335_vm3, %v6951_v60, %v6950_v26 }
 0x3a8   : > { %2360 = vrot.lane.b32.xlu2 %v5323_v15, %s3825_s10  ;;  %2234 = vrot.lane.b32.xlu1 %v6931_v52, %s3824_s9  ;;  %v2567_v15 = vsel %vm1455_vm7, %v2543_v35, %v5842_v53  ;;  %v2557_v52 = vsel %vm1455_vm7, %v2533_v30, %v5844_v11  ;;  %v6947_v53 = vld [vmem:[#allocation45_spill] sm:$0xff] }
 0x3a9   : > { %2283 = vrot.lane.b32.xlu0 %v6941_v44, %s3826_s11  ;;  %v2522_v25 = vsel %vm1335_vm3, %v6947_v53, %v6946_v16  ;;  %v6948_v11 = vld [vmem:[#allocation53_spill] sm:$0xff]  ;;  %v2535_v44 = vsel %vm1395_vm5, %v2511_v34, %v6954_v43  ;;  %v6962_v16 = vld [vmem:[#allocation66_spill] sm:$0xff] }
 0x3aa   : > { %v2163_v27 = vpop.permute.xlu2 %2162  ;;  %v2143_v59 = vpop.permute.xlu1 %2142  ;;  %v2512_v46 = vsel %vm1335_vm3, %v6949_v19, %v6948_v11  ;;  %v2546_v33 = vsel %vm1395_vm5, %v2522_v25, %v5745_v23  ;;  %v6957_v35 = vld [vmem:[#allocation77_spill] sm:$0xff] }
 0x3ab   : > { %v6049_v55 = vsel %vm1515_vm11, %v2567_v15, %v2163_v27  ;;  %v6052_v31 = vsel %vm1515_vm11, %v2557_v52, %v2143_v59  ;;  %v2141_v42 = vpop.permute.xlu0 %2140  ;;  %v2536_v58 = vsel %vm1395_vm5, %v2512_v46, %v6952_v4  ;;  %v2559_v23 = vsel %vm1455_vm7, %v2535_v44, %v6957_v35  ;;  %v6958_v15 = vld [vmem:[#allocation57_spill] sm:$0xff]  ;;  %v6959_v52 = vld [vmem:[#allocation30_spill] sm:$0xff]  ;;  %v6964_v46 = vld [vmem:[#allocation67_spill] sm:$0xff] }
 0x3ac   : > { %v6055_v62 = vsel %vm1515_vm11, %v2556_v22, %v2141_v42  ;;  %v2515_v27 = vsel %vm1335_vm3, %v6959_v52, %v6958_v15  ;;  %v6960_v59 = vld [vmem:[#allocation58_spill] sm:$0xff]  ;;  %v6961_v22 = vld [vmem:[#allocation35_spill] sm:$0xff]  ;;  %v6963_v11 = vld [vmem:[#allocation17_spill] sm:$0xff] }
 0x3ad   : > { %v2514_v42 = vsel %vm1335_vm3, %v6961_v22, %v6960_v59  ;;  %v2539_v25 = vsel %vm1395_vm5, %v2515_v27, %v6962_v16  ;;  %v6971_v35 = vld [vmem:[#allocation69_spill] sm:$0xff] }
 0x3ae   : > { %v2538_v26 = vsel %vm1395_vm5, %v2514_v42, %v6964_v46  ;;  %v2563_v34 = vsel %vm1455_vm7, %v2539_v25, %v5870_v41  ;;  %v1781_v42 = vld [vmem:[%s6585_s4 + $0x40] sm:$0xff]  ;;  %v6972_v25 = vld [vmem:[#allocation55_spill] sm:$0xff] }
 0x3af   : > { %2781 = vmatpush.msra.mxu1 %v1781_v42  ;;  %3181 = vmatpush.msra.mxu3 %v1781_v42  ;;  %v2521_v46 = vsel %vm1335_vm3, %v6953_v12, %v6972_v25 }
 0x3b0   : > { %2384 = vrot.lane.b32.xlu2 %v5409_v17, %s3825_s10  ;;  %2436 = vrot.lane.b32.xlu1 %v5507_v18, %s3827_s12  ;;  %v6955_v17 = vld [vmem:[#allocation75_spill] sm:$0xff]  ;;  %v6956_v18 = vld [vmem:[#allocation76_spill] sm:$0xff] }
 0x3b1   : > { %2307 = vrot.lane.b32.xlu0 %v6953_v12, %s3826_s11  ;;  %v2570_v8 = vsel %vm1455_vm7, %v2546_v33, %v6955_v17  ;;  %v2560_v2 = vsel %vm1455_vm7, %v2536_v58, %v6956_v18  ;;  %v6965_v17 = vld [vmem:[#allocation50_spill] sm:$0xff]  ;;  %v1778_v12 = vld [vmem:[%s6585_s4 + $0x28] sm:$0xff] }
 0x3b2   : > { %v2169_v61 = vpop.permute.xlu2 %2168  ;;  %v2149_v5 = vpop.permute.xlu1 %2148 }
 0x3b3   : > { %v6085_v50 = vsel %vm1515_vm11, %v2570_v8, %v2169_v61  ;;  %v6088_v30 = vsel %vm1515_vm11, %v2560_v2, %v2149_v5  ;;  %v2147_v45 = vpop.permute.xlu0 %2146  ;;  %v6966_v8 = vld [vmem:[#allocation6_spill] sm:$0xff]  ;;  %v6969_v2 = vld [vmem:[#allocation68_spill] sm:$0xff] }
 0x3b4   : > { %v6091_v48 = vsel %vm1515_vm11, %v2559_v23, %v2147_v45  ;;  %v2518_v41 = vsel %vm1335_vm3, %v6966_v8, %v6965_v17  ;;  %v6970_v5 = vld [vmem:[#allocation40_spill] sm:$0xff]  ;;  %v6977_v17 = vld [vmem:[#allocation71_spill] sm:$0xff] }
 0x3b5   : > { %v2542_v61 = vsel %vm1395_vm5, %v2518_v41, %v6969_v2 }
 0x3b6   : > { %v2566_v45 = vsel %vm1455_vm7, %v2542_v61, %v5890_v63  ;;  %v1780_v63 = vld [vmem:[%s6585_s4 + $0x38] sm:$0xff] }
 0x3b7   : > { %2782 = vmatpush.msra.mxu1 %v1780_v63  ;;  %3182 = vmatpush.msra.mxu3 %v1780_v63  ;;  %v6979_v63 = vld [vmem:[#allocation44_spill] sm:$0xff] }
 0x3b8   : > { %2236 = vrot.lane.b32.xlu2 %v6937_v29, %s3824_s9  ;;  %2285 = vrot.lane.b32.xlu1 %v5316_v54, %s3826_s11  ;;  %v2562_v54 = vsel %vm1455_vm7, %v2538_v26, %v5875_v51  ;;  %v6967_v51 = vld [vmem:[#allocation54_spill] sm:$0xff]  ;;  %v6973_v26 = vld [vmem:[#allocation20_spill] sm:$0xff] }
 0x3b9   : > { %2460 = vrot.lane.b32.xlu0 %v6963_v11, %s3827_s12 }
 0x3ba   : > { %v2175_v29 = vpop.permute.xlu2 %2174  ;;  %v2155_v33 = vpop.permute.xlu1 %2154 }
 0x3bb   : > { %v6115_v4 = vsel %vm1515_vm11, %v5873_v49, %v2175_v29  ;;  %v6118_v58 = vsel %vm1515_vm11, %v2563_v34, %v2155_v33  ;;  %v2153_v43 = vpop.permute.xlu0 %2152  ;;  %v6968_v49 = vld [vmem:[#allocation7_spill] sm:$0xff]  ;;  %v6974_v34 = vld [vmem:[#allocation56_spill] sm:$0xff]  ;;  %v6975_v33 = vld [vmem:[#allocation70_spill] sm:$0xff] }
 0x3bc   : > { %v6121_v44 = vsel %vm1515_vm11, %v2562_v54, %v2153_v43  ;;  %v2517_v18 = vsel %vm1335_vm3, %v6968_v49, %v6967_v51  ;;  %v2520_v29 = vsel %vm1335_vm3, %v5358_v37, %v6974_v34  ;;  %v2545_v54 = vsel %vm1395_vm5, %v2521_v46, %v6975_v33  ;;  %v6976_v43 = vld [vmem:[#allocation2_spill] sm:$0xff] }
 0x3bd   : > { %v2541_v23 = vsel %vm1395_vm5, %v2517_v18, %v6971_v35  ;;  %v2569_v41 = vsel %vm1455_vm7, %v2545_v54, %v5910_v38  ;;  %v1777_v38 = vld [vmem:[%s6585_s4 + $0x20] sm:$0xff] }
 0x3c0   : > { %2438 = vrot.lane.b32.xlu2 %v5504_v24, %s3827_s12  ;;  %2309 = vrot.lane.b32.xlu1 %v6947_v53, %s3826_s11  ;;  %v2565_v53 = vsel %vm1455_vm7, %v2541_v23, %v5895_v28  ;;  %v1779_v28 = vld [vmem:[%s6585_s4 + $0x30] sm:$0xff]  ;;  %v6978_v23 = vld [vmem:[#allocation14_spill] sm:$0xff] }
 0x3c1   : > { %2362 = vrot.lane.b32.xlu0 %v6970_v5, %s3825_s10  ;;  %2783 = vmatpush.msra.mxu1 %v1779_v28 }
 0x3c2   : > { %v6141_v24 = vpop.permute.xlu2 %2208  ;;  %v2161_v15 = vpop.permute.xlu1 %2160  ;;  %3183 = vmatpush.msra.mxu3 %v1779_v28  ;;  %v6980_v28 = vld [vmem:[#allocation29_spill] sm:$0xff] }
 0x3c3   : > { %v6146_v27 = vsel %vm1515_vm11, %v2566_v45, %v2161_v15  ;;  %v2159_v59 = vpop.permute.xlu0 %2158  ;;  %2784 = vmatpush.msra.mxu1 %v1778_v12  ;;  %v1774_v45 = vld [vmem:[%s6585_s4 + $0x8] sm:$0xff] }
 0x3c4   : > { %v6152_v16 = vsel %vm1515_vm11, %v2565_v53, %v2159_v59  ;;  %3184 = vmatpush.msra.mxu3 %v1778_v12  ;;  %v6983_v12 = vld [vmem:[#allocation41_spill] sm:$0xff] }
 0x3c5   : > { %2785 = vmatpush.msra.mxu1 %v1777_v38 }
 0x3c6   : > { %3185 = vmatpush.msra.mxu3 %v1777_v38 }
 0x3c8   : > { %2287 = vrot.lane.b32.xlu2 %v6951_v60, %s3826_s11  ;;  %2462 = vrot.lane.b32.xlu1 %v6973_v26, %s3827_s12  ;;  %v2544_v60 = vsel %vm1395_vm5, %v2520_v29, %v6977_v17  ;;  %v6982_v29 = vld [vmem:[#allocation8_spill] sm:$0xff]  ;;  %v6984_v17 = vld [vmem:[#allocation13_spill] sm:$0xff] }
 0x3c9   : > { %2386 = vrot.lane.b32.xlu0 %v6976_v43, %s3825_s10  ;;  %v2568_v18 = vsel %vm1455_vm7, %v2544_v60, %v5915_v21  ;;  %v1776_v21 = vld [vmem:[%s6585_s4 + $0x18] sm:$0xff] }
 0x3ca   : > { %v2215_v51 = vpop.permute.xlu2 %2214  ;;  %v2167_v37 = vpop.permute.xlu1 %2166  ;;  %2786 = vmatpush.msra.mxu1 %v1776_v21  ;;  %3186 = vmatpush.msra.mxu3 %v1776_v21 }
 0x3cb   : > { %v6185_v2 = vsel %vm2598_vm12, %v5913_v47, %v2215_v51  ;;  %v6188_v61 = vsel %vm1515_vm11, %v2569_v41, %v2167_v37  ;;  %v2165_v5 = vpop.permute.xlu0 %2164  ;;  %v1775_v47 = vld [vmem:[%s6585_s4 + $0x10] sm:$0xff] }
 0x3cc   : > { %v6194_v35 = vsel %vm1515_vm11, %v2568_v18, %v2165_v5  ;;  %2787 = vmatpush.msra.mxu1 %v1775_v47  ;;  %3187 = vmatpush.msra.mxu3 %v1775_v47 }
 0x3ce   : > { %2788 = vmatpush.msra.mxu1 %v1774_v45  ;;  %3188 = vmatpush.msra.mxu3 %v1774_v45 }
 0x3d0   : > { %2311 = vrot.lane.b32.xlu2 %v5403_v20, %s3826_s11  ;;  %2364 = vrot.lane.b32.xlu1 %v6978_v23, %s3825_s10  ;;  %v1773_v20 = vld [vmem:[%s6585_s4] sm:$0xff] }
 0x3d1   : > { %2238 = vrot.lane.b32.xlu0 %v6963_v11, %s3824_s9  ;;  %2789 = vmatpush.msra.mxu1 %v1773_v20 }
 0x3d2   : > { %v2355_v15 = vpop.permute.xlu2 %2354  ;;  %v2173_v53 = vpop.permute.xlu1 %2172  ;;  %3189 = vmatpush.msra.mxu3 %v1773_v20  ;;  %v6989_v20 = vld [vmem:[#allocation37_spill] sm:$0xff] }
 0x3d3   : > { %v6213_v59 = vsel %vm1515_vm11, %v5944_v32, %v2173_v53  ;;  %v2171_v42 = vpop.permute.xlu0 %2170  ;;  %v6981_v32 = vld [vmem:[#allocation47_spill] sm:$0xff] }
 0x3d4   : > { %v6220_v11 = vsel %vm1515_vm11, %v5947_v10, %v2171_v42  ;;  %v6988_v42 = vld [vmem:[#allocation3_spill] sm:$0xff] }
 0x3d8   : > { %2464 = vrot.lane.b32.xlu2 %v6979_v63, %s3827_s12  ;;  %2388 = vrot.lane.b32.xlu1 %v6980_v28, %s3825_s10 }
 0x3d9   : > { %2440 = vrot.lane.b32.xlu0 %v6981_v32, %s3827_s12 }
 0x3da   : > { %v2231_v25 = vpop.permute.xlu2 %2230  ;;  %v2207_v46 = vpop.permute.xlu1 %2206 }
 0x3db   : > { %v2205_v34 = vpop.permute.xlu0 %2204  ;;  %v2600_v38 = vsel %vm2598_vm12, %v5980_v7, %v2207_v46  ;;  %v2612_v7 = vsel %vm2598_vm12, %v6118_v58, %v2231_v25 }
 0x3e0   : > { %2366 = vrot.lane.b32.xlu2 %v6982_v29, %s3825_s10  ;;  %2240 = vrot.lane.b32.xlu1 %v6973_v26, %s3824_s9 }
 0x3e1   : > { %2289 = vrot.lane.b32.xlu0 %v6949_v19, %s3826_s11 }
 0x3e2   : > { %v2433_v10 = vpop.permute.xlu2 %2432  ;;  %v2213_v33 = vpop.permute.xlu1 %2212 }
 0x3e3   : > { %v6236_v54 = vsel %vm2598_vm12, %v6016_v40, %v2213_v33  ;;  %v6238_v43 = vpop.permute.xlu0 %2210  ;;  %v2599_v40 = vsel %vm2598_vm12, %v5983_v0, %v2205_v34 }
 0x3e8   : > { %2390 = vrot.lane.b32.xlu2 %v6983_v12, %s3825_s10  ;;  %2442 = vrot.lane.b32.xlu1 %v6984_v17, %s3827_s12  ;;  %v6990_v12 = vld [vmem:[#allocation16_spill] sm:$0xff] }
 0x3e9   : > { %2313 = vrot.lane.b32.xlu0 %v5441_v39, %s3826_s11  ;;  %v6985_v39 = vld [vmem:[#allocation26_spill] sm:$0xff] }
 0x3ea   : > { %v2282_v26 = vpop.permute.xlu2 %2281  ;;  %v2278_v60 = vpop.permute.xlu1 %2277 }
 0x3eb   : > { %v2217_v19 = vpop.permute.xlu0 %2216  ;;  %v2624_v51 = vsel %vm2623_vm13, %v2599_v40, %v2278_v60  ;;  %v6991_v60 = vld [vmem:[#allocation39_spill] sm:$0xff] }
 0x3ec   : > { %v6248_v41 = vsel %vm2598_vm12, %v6055_v62, %v2217_v19  ;;  %v2649_v5 = vsel %vm2648_vm14, %v2624_v51, %v2355_v15  ;;  %v2601_v19 = vsel %vm2598_vm12, %v5893_v56, %v6141_v24  ;;  %v6994_v24 = vrot.slane %v6991_v60, 2 }
 0x3f0   : > { %2291 = vrot.lane.b32.xlu2 %v5372_v13, %s3826_s11  ;;  %2218 = vrot.lane.b32.xlu1 %v6981_v32, %s3824_s9  ;;  %v6986_v13 = vld [vmem:[#allocation43_spill] sm:$0xff] }
 0x3f1   : > { %2466 = vrot.lane.b32.xlu0 %v6985_v39, %s3827_s12 }
 0x3f2   : > { %v2306_v37 = vpop.permute.xlu2 %2305  ;;  %v2280_v62 = vpop.permute.xlu1 %2279 }
 0x3f3   : > { %v2431_v18 = vpop.permute.xlu0 %2430  ;;  %v2625_v23 = vsel %vm2623_vm13, %v2600_v38, %v2280_v62 }
 0x3f4   : > { %v2674_v0 = vsel %vm2673_vm15, %v2649_v5, %v2431_v18  ;;  %v6993_v5 = vld [vmem:[#allocation59_spill] sm:$0xff] }
 0x3f5   : > { %3068 = vmatmul.msk.f32.vlgmr.msra.gmra.mxu1 %vm2701_vm2, %v2674_v0  ;;  %v2200_v0 = vrot.slane %v6993_v5, 2 }
 0x3f8   : > { %2315 = vrot.lane.b32.xlu2 %v5431_v6, %s3826_s11  ;;  %2368 = vrot.lane.b32.xlu1 %v6986_v13, %s3825_s10  ;;  %v6987_v6 = vld [vmem:[#allocation21_spill] sm:$0xff] }
 0x3f9   : > { %2242 = vrot.lane.b32.xlu0 %v6979_v63, %s3824_s9 }
 0x3fa   : > { %v2459_v21 = vpop.permute.xlu2 %2458  ;;  %v2304_v47 = vpop.permute.xlu1 %2303 }
 0x3fb   : > { %v2357_v45 = vpop.permute.xlu0 %2356  ;;  %v2637_v32 = vsel %vm2623_vm13, %v2612_v7, %v2304_v47 }
 0x3fc   : > { %v2650_v15 = vsel %vm2648_vm14, %v2625_v23, %v2357_v45 }
 0x3fd   : > { %v2675_v53 = vsel %vm2673_vm15, %v2650_v15, %v2433_v10  ;;  %v6996_v15 = vld [vmem:[#allocation48_spill] sm:$0xff] }
 0x3fe   : > { %3069 = vmatmul.msk.f32.gmra.mxu1 %vm2701_vm2, %v2675_v53 }
 0x400   : > { %2468 = vrot.lane.b32.xlu2 %v6987_v6, %s3827_s12  ;;  %2392 = vrot.lane.b32.xlu1 %v6988_v42, %s3825_s10 }
 0x401   : > { %2444 = vrot.lane.b32.xlu0 %v6989_v20, %s3827_s12 }
 0x402   : > { %v2361_v63 = vpop.permute.xlu2 %2360  ;;  %v2457_v28 = vpop.permute.xlu1 %2456 }
 0x403   : > { %v2381_v46 = vpop.permute.xlu0 %2380 }
 0x404   : > { %v2662_v34 = vsel %vm2648_vm14, %v2637_v32, %v2381_v46  ;;  %v6997_v32 = vld [vmem:[#allocation73_spill] sm:$0xff] }
 0x405   : > { %v2687_v29 = vsel %vm2673_vm15, %v2662_v34, %v2457_v28 }
 0x406   : > { %3081 = vmatmul.msk.f32.vlgmr.msra.gmra.mxu3 %vm2701_vm2, %v2687_v29  ;;  %v6999_v29 = vld [vmem:[#allocation72_spill] sm:$0xff] }
 0x408   : > { %2244 = vrot.lane.b32.xlu2 %v6985_v39, %s3824_s9  ;;  %2293 = vrot.lane.b32.xlu1 %v6961_v22, %s3826_s11  ;;  %v6992_v22 = vld [vmem:[#allocation11_spill] sm:$0xff] }
 0x409   : > { %2220 = vrot.lane.b32.xlu0 %v6984_v17, %s3824_s9  ;;  %v2626_v17 = vsel %vm2623_vm13, %v2601_v19, %v2282_v26  ;;  %v2201_v26 = vsel %vm618_vm1, %v6994_v24, %v2200_v0 }
 0x40a   : > { %v2385_v58 = vpop.permute.xlu2 %2384  ;;  %v2359_v25 = vpop.permute.xlu1 %2358 }
 0x40b   : > { %v2233_v10 = vpop.permute.xlu0 %2232 }
 0x40c   : > { %v2613_v33 = vsel %vm2598_vm12, %v6013_v57, %v2233_v10  ;;  %v2651_v57 = vsel %vm2648_vm14, %v2626_v17, %v2359_v25  ;;  %v2202_v25 = vrot.slane %v6999_v29, 2  ;;  %v1738_v10 = vpop.f32.mrf.mxu2 }
 0x40d   : > { %v2638_v39 = vsel %vm2623_vm13, %v2613_v33, %v2306_v37  ;;  %v6995_v37 = vld [vmem:[#allocation74_spill] sm:$0xff] }
 0x40e   : > { %v2203_v33 = vsel %vm618_vm1, %v2200_v0, %v2202_v25 }
 0x410   : > { %2446 = vrot.lane.b32.xlu2 %v6990_v12, %s3827_s12  ;;  %2317 = vrot.lane.b32.xlu1 %v6991_v60, %s3826_s11 }
 0x411   : > { %2370 = vrot.lane.b32.xlu0 %v6992_v22, %s3825_s10 }
 0x412   : > { %v2237_v40 = vpop.permute.xlu2 %2236  ;;  %v2383_v51 = vpop.permute.xlu1 %2382 }
 0x413   : > { %v2663_v62 = vsel %vm2648_vm14, %v2638_v39, %v2383_v51  ;;  %v2435_v18 = vpop.permute.xlu0 %2434 }
 0x414   : > { %v2676_v13 = vsel %vm2673_vm15, %v2651_v57, %v2435_v18  ;;  %v2688_v56 = vsel %vm2673_vm15, %v2663_v62, %v2459_v21  ;;  %v2602_v21 = vsel %vm2598_vm12, %v6019_v1, %v6238_v43  ;;  %v7000_v57 = vld [vmem:[#allocation38_spill] sm:$0xff]  ;;  %v2615_v62 = vsel %vm2598_vm12, %v6146_v27, %v2237_v40  ;;  %v7002_v27 = vld [vmem:[#allocation19_spill] sm:$0xff] }
 0x415   : > { %3070 = vmatmul.msk.f32.gmra.mxu1 %vm2701_vm2, %v2676_v13  ;;  %3082 = vmatmul.msk.f32.gmra.mxu3 %vm2701_vm2, %v2688_v56 }
 0x418   : > { %2222 = vrot.lane.b32.xlu2 %v6989_v20, %s3824_s9  ;;  %2470 = vrot.lane.b32.xlu1 %v2201_v26, %s3827_s12 }
 0x419   : > { %2394 = vrot.lane.b32.xlu0 %v6995_v37, %s3825_s10 }
 0x41a   : > { %v2439_v38 = vpop.permute.xlu2 %2438  ;;  %v2235_v47 = vpop.permute.xlu1 %2234 }
 0x41b   : > { %v2284_v23 = vpop.permute.xlu0 %2283  ;;  %v2614_v1 = vsel %vm2598_vm12, %v6152_v16, %v2235_v47 }
 0x41c   : > { %v2627_v45 = vsel %vm2623_vm13, %v2602_v21, %v2284_v23 }
 0x41d   : > { %v2652_v20 = vsel %vm2648_vm14, %v2627_v45, %v2361_v63 }
 0x420   : > { %2372 = vrot.lane.b32.xlu2 %v6996_v15, %s3825_s10  ;;  %2246 = vrot.lane.b32.xlu1 %v6987_v6, %s3824_s9  ;;  %v6998_v6 = vld [vmem:[#allocation5_spill] sm:$0xff]  ;;  %v1741_v15 = vpop.f32.mrf.mxu2 }
 0x421   : > { %2295 = vrot.lane.b32.xlu0 %v6959_v52, %s3826_s11 }
 0x422   : > { %v2288_v53 = vpop.permute.xlu2 %2287  ;;  %v2437_v42 = vpop.permute.xlu1 %2436 }
 0x423   : > { %v2308_v7 = vpop.permute.xlu0 %2307  ;;  %v2677_v28 = vsel %vm2673_vm15, %v2652_v20, %v2437_v42  ;;  %v2629_v42 = vsel %vm2623_vm13, %v6185_v2, %v2288_v53  ;;  %v7003_v2 = vld [vmem:[#allocation27_spill] sm:$0xff]  ;;  %v7004_v53 = vld [vmem:[#allocation9_spill] sm:$0xff] }
 0x424   : > { %3071 = vmatmul.msk.f32.gmra.mxu1 %vm2701_vm2, %v2677_v28  ;;  %v2639_v43 = vsel %vm2623_vm13, %v2614_v1, %v2308_v7 }
 0x425   : > { %v2664_v34 = vsel %vm2648_vm14, %v2639_v43, %v2385_v58  ;;  %v3790_v58 = vld [vmem:[%s6584_s3] ss:$0 sm:$0xff] }
 0x426   : > { %v1739_v22 = vadd.f32 %v3790_v58, %v1738_v10  ;;  %v1742_v1 = vadd.f32 %v3790_v58, %v1741_v15 }
 0x428   : > { %2396 = vrot.lane.b32.xlu2 %v6997_v32, %s3825_s10  ;;  %2448 = vrot.lane.b32.xlu1 %v6998_v6, %s3827_s12 }
 0x429   : > { %2319 = vrot.lane.b32.xlu0 %v6993_v5, %s3826_s11 }
 0x42a   : > { %v2312_v52 = vpop.permute.xlu2 %2311  ;;  %v2286_v63 = vpop.permute.xlu1 %2285 }
 0x42b   : > { %v2461_v46 = vpop.permute.xlu0 %2460  ;;  %v2628_v17 = vsel %vm2623_vm13, %v6236_v54, %v2286_v63 }
 0x42c   : > { %v2689_v16 = vsel %vm2673_vm15, %v2664_v34, %v2461_v46 }
 0x42d   : > { %3083 = vmatmul.msk.f32.gmra.mxu3 %vm2701_vm2, %v2689_v16 }
 0x430   : > { %2297 = vrot.lane.b32.xlu2 %v5349_v14, %s3826_s11  ;;  %2224 = vrot.lane.b32.xlu1 %v6990_v12, %s3824_s9  ;;  %v1771_v12 = vmax.f32 %v1739_v22, 0.0 }
 0x431   : > { %2472 = vrot.lane.b32.xlu0 %v2203_v33, %s3827_s12 }
 0x432   : > { %v2465_v60 = vpop.permute.xlu2 %2464  ;;  %v2310_v19 = vpop.permute.xlu1 %2309  ;;  %v2350_v5 = vrot.slane %v1771_v12, 1  ;;  %v2426_v0 = vrot.slane %v1771_v12, 2 }
 0x433   : > { %v2363_v51 = vpop.permute.xlu0 %2362  ;;  %v2640_v13 = vsel %vm2623_vm13, %v2615_v62, %v2310_v19 }
 0x434   : > { %v2653_v14 = vsel %vm2648_vm14, %v2628_v17, %v2363_v51 }
 0x435   : > { %v2678_v39 = vsel %vm2673_vm15, %v2653_v14, %v2439_v38  ;;  %v2427_v38 = vsel %vm618_vm1, %v2202_v25, %v2426_v0  ;;  %v7005_v14 = vld [vmem:[#allocation49_spill] sm:$0xff] }
 0x436   : > { %3072 = vmatmul.msk.f32.gmra.mxu1 %vm2701_vm2, %v2678_v39 }
 0x438   : > { %2321 = vrot.lane.b32.xlu2 %v6999_v29, %s3826_s11  ;;  %2374 = vrot.lane.b32.xlu1 %v7000_v57, %s3825_s10 }
 0x439   : > { %2248 = vrot.lane.b32.xlu0 %v2201_v26, %s3824_s9  ;;  %v7001_v26 = vrot.slane %v6999_v29, 1 }
 0x43a   : > { %v2367_v54 = vpop.permute.xlu2 %2366  ;;  %v2463_v18 = vpop.permute.xlu1 %2462 }
 0x43b   : > { %v2387_v56 = vpop.permute.xlu0 %2386  ;;  %v2351_v47 = vsel %vm473_vm0, %v7001_v26, %v2350_v5 }
 0x43c   : > { %v2665_v24 = vsel %vm2648_vm14, %v2640_v13, %v2387_v56 }
 0x43d   : > { %v2690_v37 = vsel %vm2673_vm15, %v2665_v24, %v2463_v18 }
 0x43e   : > { %3084 = vmatmul.msk.f32.gmra.mxu3 %vm2701_vm2, %v2690_v37 }
 0x440   : > { %2474 = vrot.lane.b32.xlu2 %v2427_v38, %s3827_s12  ;;  %2398 = vrot.lane.b32.xlu1 %v2351_v47, %s3825_s10 }
 0x441   : > { %2450 = vrot.lane.b32.xlu0 %v7002_v27, %s3827_s12 }
 0x442   : > { %v2391_v40 = vpop.permute.xlu2 %2390  ;;  %v2365_v23 = vpop.permute.xlu1 %2364 }
 0x443   : > { %v2239_v21 = vpop.permute.xlu0 %2238  ;;  %v2654_v43 = vsel %vm2648_vm14, %v2629_v42, %v2365_v23 }
 0x444   : > { %v2616_v45 = vsel %vm2598_vm12, %v6049_v55, %v2239_v21 }
 0x445   : > { %v2641_v28 = vsel %vm2623_vm13, %v2616_v45, %v2312_v52 }
 0x448   : > { %2250 = vrot.lane.b32.xlu2 %v2203_v33, %s3824_s9  ;;  %2299 = vrot.lane.b32.xlu1 %v6968_v49, %s3826_s11 }
 0x449   : > { %2226 = vrot.lane.b32.xlu0 %v6998_v6, %s3824_s9  ;;  %v1772_v6 = vmax.f32 %v1742_v1, 0.0 }
 0x44a   : > { %v2292_v20 = vpop.permute.xlu2 %2291  ;;  %v2389_v7 = vpop.permute.xlu1 %2388 }
 0x44b   : > { %v2666_v55 = vsel %vm2648_vm14, %v2641_v28, %v2389_v7  ;;  %v2441_v32 = vpop.permute.xlu0 %2440  ;;  %v2428_v46 = vrot.slane %v1772_v6, 2  ;;  %v2352_v29 = vrot.slane %v1772_v6, 1 }
 0x44c   : > { %v2679_v63 = vsel %vm2673_vm15, %v2654_v43, %v2441_v32  ;;  %v2691_v49 = vsel %vm2673_vm15, %v2666_v55, %v2465_v60 }
 0x44d   : > { %3073 = vmatmul.msk.f32.gmra.mxu1 %vm2701_vm2, %v2679_v63  ;;  %3085 = vmatmul.msk.f32.gmra.mxu3 %vm2701_vm2, %v2691_v49  ;;  %v2429_v10 = vsel %vm618_vm1, %v2426_v0, %v2428_v46  ;;  %v2353_v33 = vsel %vm473_vm0, %v2350_v5, %v2352_v29  ;;  %v6428_v5 = vld [vmem:[%s6586_s5] ss:$0 sm:$0xff] }
 0x450   : > { %2452 = vrot.lane.b32.xlu2 %v7003_v2, %s3827_s12  ;;  %2323 = vrot.lane.b32.xlu1 %v1771_v12, %s3826_s11 }
 0x451   : > { %2376 = vrot.lane.b32.xlu0 %v7004_v53, %s3825_s10 }
 0x452   : > { %v2241_v52 = vpop.permute.xlu1 %2240  ;;  %v2316_v25 = vpop.permute.xlu2 %2315 }
 0x453   : > { %v2290_v34 = vpop.permute.xlu0 %2289  ;;  %v2617_v17 = vsel %vm2598_vm12, %v6194_v35, %v2241_v52 }
 0x454   : > { %v2630_v16 = vsel %vm2623_vm13, %v6248_v41, %v2290_v34 }
 0x455   : > { %v2655_v19 = vsel %vm2648_vm14, %v2630_v16, %v2367_v54 }
 0x458   : > { %2228 = vrot.lane.b32.xlu2 %v7002_v27, %s3824_s9  ;;  %2476 = vrot.lane.b32.xlu1 %v2429_v10, %s3827_s12 }
 0x459   : > { %2400 = vrot.lane.b32.xlu0 %v2353_v33, %s3825_s10 }
 0x45a   : > { %v2443_v60 = vpop.permute.xlu1 %2442  ;;  %v2469_v41 = vpop.permute.xlu2 %2468 }
 0x45b   : > { %v2314_v58 = vpop.permute.xlu0 %2313  ;;  %v2680_v22 = vsel %vm2673_vm15, %v2655_v19, %v2443_v60 }
 0x45c   : > { %3074 = vmatmul.msk.f32.gmra.mxu1 %vm2701_vm2, %v2680_v22  ;;  %v2642_v51 = vsel %vm2623_vm13, %v2617_v17, %v2314_v58 }
 0x45d   : > { %v2667_v57 = vsel %vm2648_vm14, %v2642_v51, %v2391_v40 }
 0x460   : > { %2454 = vrot.lane.b32.xlu2 %v6935_v3, %s3827_s12  ;;  %2378 = vrot.lane.b32.xlu1 %v7005_v14, %s3825_s10  ;;  %s3190_s10 = smul.u32 192, %s7011_s21 }
 0x461   : > { %2301 = vrot.lane.b32.xlu0 %v6966_v8, %s3826_s11 }
 0x462   : > { %v2219_v39 = vpop.permute.xlu1 %2218  ;;  %v2245_v35 = vpop.permute.xlu2 %2244  ;;  %s6440_s18 = scalar_lea.vmem %s6587_s6, %s3190_s10 }
 0x463   : > { %v2467_v12 = vpop.permute.xlu0 %2466  ;;  %v2606_v3 = vsel %vm2598_vm12, %v6052_v31, %v2219_v39  ;;  %v2619_v2 = vsel %vm2598_vm12, %v6085_v50, %v2245_v35 }
 0x464   : > { %v2692_v62 = vsel %vm2673_vm15, %v2667_v57, %v2467_v12  ;;  %v2631_v13 = vsel %vm2623_vm13, %v2606_v3, %v2292_v20 }
 0x465   : > { %3086 = vmatmul.msk.f32.gmra.mxu3 %vm2701_vm2, %v2692_v62 }
 0x46a   : > { %v2369_v54 = vpop.permute.xlu1 %2368  ;;  %v2447_v0 = vpop.permute.xlu2 %2446 }
 0x46b   : > { %v2243_v18 = vpop.permute.xlu0 %2242  ;;  %v2656_v24 = vsel %vm2648_vm14, %v2631_v13, %v2369_v54 }
 0x46c   : > { %v2618_v8 = vsel %vm2598_vm12, %v6188_v61, %v2243_v18 }
 0x46d   : > { %v2643_v31 = vsel %vm2623_vm13, %v2618_v8, %v2316_v25 }
 0x472   : > { %v2791_v56 = vpop.f32.mrf.mxu1  ;;  %v2393_v38 = vpop.permute.xlu1 %2392 }
 0x473   : > { %v2792_v37 = vadd.f32 %v6428_v5, %v2791_v56  ;;  %v2445_v26 = vpop.permute.xlu0 %2444  ;;  %v2668_v61 = vsel %vm2648_vm14, %v2643_v31, %v2393_v38  ;;  %v2223_v45 = vpop.permute.xlu2 %2222 }
 0x474   : > { %v2681_v47 = vsel %vm2673_vm15, %v2656_v24, %v2445_v26  ;;  %v2693_v40 = vsel %vm2673_vm15, %v2668_v61, %v2469_v41  ;;  %v2608_v19 = vsel %vm2598_vm12, %v6091_v48, %v2223_v45 }
 0x475   : > { %v2863_v27 = vmax.f32 %v2792_v37, 0.0  ;;  %3075 = vmatmul.msk.f32.gmra.mxu1 %vm2701_vm2, %v2681_v47  ;;  %3087 = vmatmul.msk.f32.gmra.mxu3 %vm2701_vm2, %v2693_v40 }
 0x477   : > { %2887 = vst.msk [vmem:[%s6440_s18] sm:$0xff] %vm1335_vm3, %v2863_v27 }
 0x47a   : > { %v2294_v23 = vpop.permute.xlu1 %2293 }
 0x47b   : > { %v2794_v21 = vpop.f32.mrf.mxu1  ;;  %v2221_v42 = vpop.permute.xlu0 %2220 }
 0x47c   : > { %v2795_v15 = vadd.f32 %v6428_v5, %v2794_v21  ;;  %v2607_v7 = vsel %vm2598_vm12, %v5941_v36, %v2221_v42  ;;  %v2373_v32 = vpop.permute.xlu2 %2372 }
 0x47d   : > { %v2632_v1 = vsel %vm2623_vm13, %v2607_v7, %v2294_v23 }
 0x47e   : > { %v2864_v20 = vmax.f32 %v2795_v15, 0.0 }
 0x480   : > { %2888 = vst.msk [vmem:[%s6440_s18 + $0x8] sm:$0xff] %vm1335_vm3, %v2864_v20 }
 0x482   : > { %v2318_v28 = vpop.permute.xlu1 %2317 }
 0x483   : > { %v2371_v43 = vpop.permute.xlu0 %2370  ;;  %v2644_v53 = vsel %vm2623_vm13, %v2619_v2, %v2318_v28 }
 0x484   : > { %v2657_v55 = vsel %vm2648_vm14, %v2632_v1, %v2371_v43  ;;  %v2397_v25 = vpop.permute.xlu2 %2396 }
 0x485   : > { %v2682_v63 = vsel %vm2673_vm15, %v2657_v55, %v2447_v0 }
 0x486   : > { %3076 = vmatmul.msk.f32.gmra.mxu1 %vm2701_vm2, %v2682_v63 }
 0x489   : > { %v2830_v49 = vpop.f32.mrf.mxu3 }
 0x48a   : > { %v2831_v6 = vadd.f32 %v6428_v5, %v2830_v49  ;;  %v2471_v36 = vpop.permute.xlu1 %2470 }
 0x48b   : > { %v2395_v46 = vpop.permute.xlu0 %2394 }
 0x48c   : > { %v2876_v52 = vmax.f32 %v2831_v6, 0.0  ;;  %v2669_v34 = vsel %vm2648_vm14, %v2644_v53, %v2395_v46  ;;  %v2298_v17 = vpop.permute.xlu2 %2297 }
 0x48d   : > { %v2694_v29 = vsel %vm2673_vm15, %v2669_v34, %v2471_v36 }
 0x48e   : > { %2900 = vst.msk [vmem:[%s6440_s18 + $0x68] sm:$0xff] %vm1335_vm3, %v2876_v52  ;;  %3088 = vmatmul.msk.f32.gmra.mxu3 %vm2701_vm2, %v2694_v29 }
 0x492   : > { %v2797_v16 = vpop.f32.mrf.mxu1  ;;  %v2247_v50 = vpop.permute.xlu1 %2246 }
 0x493   : > { %v2798_v10 = vadd.f32 %v6428_v5, %v2797_v16  ;;  %v2296_v33 = vpop.permute.xlu0 %2295  ;;  %v2620_v48 = vsel %vm2598_vm12, %v6220_v11, %v2247_v50 }
 0x494   : > { %v2633_v58 = vsel %vm2623_vm13, %v2608_v19, %v2296_v33  ;;  %v2322_v3 = vpop.permute.xlu2 %2321 }
 0x495   : > { %v2865_v60 = vmax.f32 %v2798_v10, 0.0  ;;  %v2658_v39 = vsel %vm2648_vm14, %v2633_v58, %v2373_v32 }
 0x497   : > { %2889 = vst.msk [vmem:[%s6440_s18 + $0x10] sm:$0xff] %vm1335_vm3, %v2865_v60 }
 0x498   : > { %v2833_v22 = vpop.f32.mrf.mxu3 }
 0x499   : > { %v2834_v41 = vadd.f32 %v6428_v5, %v2833_v22 }
 0x49a   : > { %v2449_v14 = vpop.permute.xlu1 %2448 }
 0x49b   : > { %v2877_v51 = vmax.f32 %v2834_v41, 0.0  ;;  %v2320_v12 = vpop.permute.xlu0 %2319  ;;  %v2683_v57 = vsel %vm2673_vm15, %v2658_v39, %v2449_v14 }
 0x49c   : > { %3077 = vmatmul.msk.f32.gmra.mxu1 %vm2701_vm2, %v2683_v57  ;;  %v2645_v62 = vsel %vm2623_vm13, %v2620_v48, %v2320_v12  ;;  %v2475_v37 = vpop.permute.xlu2 %2474 }
 0x49d   : > { %2901 = vst.msk [vmem:[%s6440_s18 + $0x70] sm:$0xff] %vm1335_vm3, %v2877_v51  ;;  %v2670_v13 = vsel %vm2648_vm14, %v2645_v62, %v2397_v25 }
 0x4a1   : > { %v2800_v35 = vpop.f32.mrf.mxu1 }
 0x4a2   : > { %v2801_v54 = vadd.f32 %v6428_v5, %v2800_v35  ;;  %v2225_v18 = vpop.permute.xlu1 %2224 }
 0x4a3   : > { %v2473_v0 = vpop.permute.xlu0 %2472  ;;  %v2609_v38 = vsel %vm2598_vm12, %v6088_v30, %v2225_v18 }
 0x4a4   : > { %v2866_v8 = vmax.f32 %v2801_v54, 0.0  ;;  %v2695_v56 = vsel %vm2673_vm15, %v2670_v13, %v2473_v0  ;;  %v2634_v47 = vsel %vm2623_vm13, %v2609_v38, %v2298_v17  ;;  %v2251_v28 = vpop.permute.xlu2 %2250 }
 0x4a5   : > { %3089 = vmatmul.msk.f32.gmra.mxu3 %vm2701_vm2, %v2695_v56 }
 0x4a6   : > { %2890 = vst.msk [vmem:[%s6440_s18 + $0x18] sm:$0xff] %vm1335_vm3, %v2866_v8 }
 0x4aa   : > { %v2375_v24 = vpop.permute.xlu1 %2374 }
 0x4ab   : > { %v2249_v11 = vpop.permute.xlu0 %2248  ;;  %v2659_v45 = vsel %vm2648_vm14, %v2634_v47, %v2375_v24 }
 0x4ac   : > { %v2621_v31 = vsel %vm2598_vm12, %v6213_v59, %v2249_v11  ;;  %v2453_v63 = vpop.permute.xlu2 %2452 }
 0x4ad   : > { %v2646_v23 = vsel %vm2623_vm13, %v2621_v31, %v2322_v3 }
 0x4b0   : > { %v2836_v26 = vpop.f32.mrf.mxu3 }
 0x4b1   : > { %v2837_v61 = vadd.f32 %v6428_v5, %v2836_v26 }
 0x4b2   : > { %v2399_v40 = vpop.permute.xlu1 %2398 }
 0x4b3   : > { %v2878_v27 = vmax.f32 %v2837_v61, 0.0  ;;  %v2803_v21 = vpop.f32.mrf.mxu1  ;;  %v2671_v15 = vsel %vm2648_vm14, %v2646_v23, %v2399_v40  ;;  %v2451_v42 = vpop.permute.xlu0 %2450 }
 0x4b4   : > { %v2804_v30 = vadd.f32 %v6428_v5, %v2803_v21  ;;  %v2684_v59 = vsel %vm2673_vm15, %v2659_v45, %v2451_v42  ;;  %v2696_v20 = vsel %vm2673_vm15, %v2671_v15, %v2475_v37  ;;  %v2229_v16 = vpop.permute.xlu2 %2228 }
 0x4b5   : > { %2902 = vst.msk [vmem:[%s6440_s18 + $0x78] sm:$0xff] %vm1335_vm3, %v2878_v27  ;;  %3078 = vmatmul.msk.f32.gmra.mxu1 %vm2701_vm2, %v2684_v59  ;;  %3090 = vmatmul.msk.f32.gmra.mxu3 %vm2701_vm2, %v2696_v20  ;;  %v2611_v17 = vsel %vm2598_vm12, %v6121_v44, %v2229_v16 }
 0x4b6   : > { %v2867_v7 = vmax.f32 %v2804_v30, 0.0 }
 0x4b8   : > { %2891 = vst.msk [vmem:[%s6440_s18 + $0x20] sm:$0xff] %vm1335_vm3, %v2867_v7 }
 0x4ba   : > { %v2300_v1 = vpop.permute.xlu1 %2299 }
 0x4bb   : > { %v2227_v43 = vpop.permute.xlu0 %2226 }
 0x4bc   : > { %v2610_v55 = vsel %vm2598_vm12, %v5977_v9, %v2227_v43  ;;  %v2622_v9 = vsel %vm2598_vm12, %v6115_v4, %v2251_v28  ;;  %v2455_v39 = vpop.permute.xlu2 %2454 }
 0x4bd   : > { %v2635_v36 = vsel %vm2623_vm13, %v2610_v55, %v2300_v1 }
 0x4c1   : > { %v2839_v32 = vpop.f32.mrf.mxu3 }
 0x4c2   : > { %v2840_v49 = vadd.f32 %v6428_v5, %v2839_v32  ;;  %v2324_v6 = vpop.permute.xlu1 %2323 }
 0x4c3   : > { %v2377_v53 = vpop.permute.xlu0 %2376  ;;  %v2647_v10 = vsel %vm2623_vm13, %v2622_v9, %v2324_v6 }
 0x4c4   : > { %v2879_v2 = vmax.f32 %v2840_v49, 0.0  ;;  %v2660_v52 = vsel %vm2648_vm14, %v2635_v36, %v2377_v53 }
 0x4c5   : > { %v2685_v46 = vsel %vm2673_vm15, %v2660_v52, %v2453_v63 }
 0x4c6   : > { %2903 = vst.msk [vmem:[%s6440_s18 + $0x80] sm:$0xff] %vm1335_vm3, %v2879_v2  ;;  %3079 = vmatmul.msk.f32.gmra.mxu1 %vm2701_vm2, %v2685_v46 }
 0x4ca   : > { %v2806_v34 = vpop.f32.mrf.mxu1  ;;  %v2477_v25 = vpop.permute.xlu1 %2476 }
 0x4cb   : > { %v2807_v29 = vadd.f32 %v6428_v5, %v2806_v34  ;;  %v2401_v50 = vpop.permute.xlu0 %2400 }
 0x4cc   : > { %v2672_v60 = vsel %vm2648_vm14, %v2647_v10, %v2401_v50 }
 0x4cd   : > { %v2868_v33 = vmax.f32 %v2807_v29, 0.0  ;;  %v2697_v19 = vsel %vm2673_vm15, %v2672_v60, %v2477_v25 }
 0x4ce   : > { %3091 = vmatmul.msk.f32.gmra.mxu3 %vm2701_vm2, %v2697_v19 }
 0x4cf   : > { %2892 = vst.msk [vmem:[%s6440_s18 + $0x28] sm:$0xff] %vm1335_vm3, %v2868_v33 }
 0x4d0   : > { %v2842_v58 = vpop.f32.mrf.mxu3 }
 0x4d1   : > { %v2843_v4 = vadd.f32 %v6428_v5, %v2842_v58 }
 0x4d2   : > { %v2379_v41 = vpop.permute.xlu1 %2378 }
 0x4d3   : > { %v2880_v22 = vmax.f32 %v2843_v4, 0.0  ;;  %v2302_v51 = vpop.permute.xlu0 %2301 }
 0x4d4   : > { %v2636_v14 = vsel %vm2623_vm13, %v2611_v17, %v2302_v51 }
 0x4d5   : > { %2904 = vst.msk [vmem:[%s6440_s18 + $0x88] sm:$0xff] %vm1335_vm3, %v2880_v22  ;;  %v2661_v12 = vsel %vm2648_vm14, %v2636_v14, %v2379_v41 }
 0x4d6   : > { %v2686_v57 = vsel %vm2673_vm15, %v2661_v12, %v2455_v39 }
 0x4d7   : > { %3080 = vmatmul.msk.f32.gmra.mxu1 %vm2701_vm2, %v2686_v57 }
 0x4d9   : > { %v2809_v48 = vpop.f32.mrf.mxu1 }
 0x4da   : > { %v2810_v62 = vadd.f32 %v6428_v5, %v2809_v48 }
 0x4dc   : > { %v2869_v35 = vmax.f32 %v2810_v62, 0.0 }
 0x4de   : > { %2893 = vst.msk [vmem:[%s6440_s18 + $0x30] sm:$0xff] %vm1335_vm3, %v2869_v35 }
 0x4e8   : > { %v2845_v44 = vpop.f32.mrf.mxu3 }
 0x4e9   : > { %v2846_v54 = vadd.f32 %v6428_v5, %v2845_v44 }
 0x4eb   : > { %v2881_v18 = vmax.f32 %v2846_v54, 0.0 }
 0x4ed   : > { %2905 = vst.msk [vmem:[%s6440_s18 + $0x90] sm:$0xff] %vm1335_vm3, %v2881_v18 }
 0x4f2   : > { %v2812_v3 = vpop.f32.mrf.mxu1 }
 0x4f3   : > { %v2813_v8 = vadd.f32 %v6428_v5, %v2812_v3 }
 0x4f5   : > { %v2870_v0 = vmax.f32 %v2813_v8, 0.0 }
 0x4f7   : > { %2894 = vst.msk [vmem:[%s6440_s18 + $0x38] sm:$0xff] %vm1335_vm3, %v2870_v0 }
 0x4f8   : > { %v2848_v13 = vpop.f32.mrf.mxu3 }
 0x4f9   : > { %v2849_v56 = vadd.f32 %v6428_v5, %v2848_v13 }
 0x4fb   : > { %v2882_v24 = vmax.f32 %v2849_v56, 0.0 }
 0x4fd   : > { %2906 = vst.msk [vmem:[%s6440_s18 + $0x98] sm:$0xff] %vm1335_vm3, %v2882_v24 }
 0x503   : > { %v2815_v11 = vpop.f32.mrf.mxu1 }
 0x504   : > { %v2816_v37 = vadd.f32 %v6428_v5, %v2815_v11 }
 0x506   : > { %v2871_v38 = vmax.f32 %v2816_v37, 0.0 }
 0x508   : > { %2895 = vst.msk [vmem:[%s6440_s18 + $0x40] sm:$0xff] %vm1335_vm3, %v2871_v38 }
 0x511   : > { %v2851_v31 = vpop.f32.mrf.mxu3 }
 0x512   : > { %v2852_v26 = vadd.f32 %v6428_v5, %v2851_v31 }
 0x514   : > { %v2883_v61 = vmax.f32 %v2852_v26, 0.0 }
 0x516   : > { %2907 = vst.msk [vmem:[%s6440_s18 + $0xa0] sm:$0xff] %vm1335_vm3, %v2883_v61 }
 0x519   : > { %v2818_v47 = vpop.f32.mrf.mxu1 }
 0x51a   : > { %v2819_v27 = vadd.f32 %v6428_v5, %v2818_v47 }
 0x51c   : > { %v2872_v40 = vmax.f32 %v2819_v27, 0.0 }
 0x51e   : > { %2896 = vst.msk [vmem:[%s6440_s18 + $0x48] sm:$0xff] %vm1335_vm3, %v2872_v40 }
 0x528   : > { %v2854_v23 = vpop.f32.mrf.mxu3 }
 0x529   : > { %v2855_v21 = vadd.f32 %v6428_v5, %v2854_v23 }
 0x52b   : > { %v2884_v45 = vmax.f32 %v2855_v21, 0.0 }
 0x52d   : > { %2908 = vst.msk [vmem:[%s6440_s18 + $0xa8] sm:$0xff] %vm1335_vm3, %v2884_v45 }
 0x532   : > { %v2821_v15 = vpop.f32.mrf.mxu1 }
 0x533   : > { %v2822_v30 = vadd.f32 %v6428_v5, %v2821_v15 }
 0x535   : > { %v2873_v42 = vmax.f32 %v2822_v30, 0.0 }
 0x537   : > { %2897 = vst.msk [vmem:[%s6440_s18 + $0x50] sm:$0xff] %vm1335_vm3, %v2873_v42 }
 0x538   : > { %v2857_v59 = vpop.f32.mrf.mxu3 }
 0x539   : > { %v2858_v20 = vadd.f32 %v6428_v5, %v2857_v59 }
 0x53b   : > { %v2885_v7 = vmax.f32 %v2858_v20, 0.0 }
 0x53d   : > { %2909 = vst.msk [vmem:[%s6440_s18 + $0xb0] sm:$0xff] %vm1335_vm3, %v2885_v7 }
 0x543   : > { %v2824_v28 = vpop.f32.mrf.mxu1 }
 0x544   : > { %v2825_v1 = vadd.f32 %v6428_v5, %v2824_v28 }
 0x546   : > { %v2874_v43 = vmax.f32 %v2825_v1, 0.0 }
 0x548   : > { %2898 = vst.msk [vmem:[%s6440_s18 + $0x58] sm:$0xff] %vm1335_vm3, %v2874_v43 }
 0x551   : > { %v2860_v55 = vpop.f32.mrf.mxu3 }
 0x552   : > { %v2861_v32 = vadd.f32 %v6428_v5, %v2860_v55 }
 0x554   : > { %v2886_v63 = vmax.f32 %v2861_v32, 0.0  ;;  %v2827_v49 = vpop.f32.mrf.mxu1 }
 0x555   : > { %v2828_v6 = vadd.f32 %v6428_v5, %v2827_v49 }
 0x556   : > { %2910 = vst.msk [vmem:[%s6440_s18 + $0xb8] sm:$0xff] %vm1335_vm3, %v2886_v63 }
 0x557   : > { %v2875_v2 = vmax.f32 %v2828_v6, 0.0 }
 0x559   : > { %2899 = vst.msk [vmem:[%s6440_s18 + $0x60] sm:$0xff] %vm1335_vm3, %v2875_v2 }
 0x55a PF: > { %s16_s23 = sadd.s32 1, %s3813_s23   ;;  %s7006_s21 = smov %s3809_s22 }
 0x55b   : > { %p13_p5 = scmp.ge.s32.totalorder %s16_s23, 4   ;;  %s7007_s22 = smov %s7009_s24 }
 0x55d   :  { %15 = sbr.rel (!%p13_p5) target bundleno = 2 (0x2), region = 77 }

</bundles_post_ra>
